<compile_context>
chip_gen: v6e
topology: v6e:2x2x1
jax: 0.10.0
libtpu: 0.0.40
codegen_flags: <defaults>
</compile_context>

<pallas_src>
import jax
import jax.numpy as jnp
from jax.experimental import pallas as pl
from jax.experimental.pallas import tpu as pltpu


def decoder_kernel(x_ref, w1_ref, b1_ref, w2_ref, b2_ref, out_ref):
    # fc1 + ReLU, recomputed per grid step (cheap: re-reads 0.5 MiB of W1 per
    # tile vs. the 3 MiB W2 tile; x/W1/b1 have constant block indices so they
    # are only fetched once per core anyway).
    h = jnp.dot(x_ref[...], w1_ref[...], preferred_element_type=jnp.float32)
    h = jnp.maximum(h + b1_ref[...], 0.0).astype(jnp.bfloat16)
    # fc2: one lane-dense output-column tile  y = h @ W2[:, j*tn:(j+1)*tn] + b2
    y = jnp.dot(h, w2_ref[...], preferred_element_type=jnp.float32)
    out_ref[...] = (y + b2_ref[...]).astype(out_ref.dtype)


def prepare_params(w1, b1, w2, b2):
    """One-time parameter prep (init time, NOT per forward call): bf16 weights.

    w1 : [F, H]  fc1 weight (transpose of PyTorch's [H, F])
    b1 : [1, H]  fc1 bias (kept f32)
    w2 : [H, O]  fc2 weight (transpose of PyTorch's [O, H])
    b2 : [1, O]  fc2 bias (kept f32)
    """
    return (
        w1.astype(jnp.bfloat16),
        b1.astype(jnp.float32),
        w2.astype(jnp.bfloat16),
        b2.astype(jnp.float32),
    )


def _pick_tile(O, max_tn=1536):
    # Largest multiple of 128 that divides O and is <= max_tn.
    tn = min(max_tn, O)
    tn -= tn % 128
    while tn >= 128:
        if O % tn == 0:
            return tn
        tn -= 128
    return O  # fall back to a single full-extent tile


def pointnet_decoder_forward(x, w1_bf, b1, w2_bf, b2):
    """
    x     : [B, F]   input features (any float dtype; cast to bf16 in-wrapper,
                     negligible: B*F elements)
    w1_bf : [F, H]   bf16 fc1 weight (from prepare_params)
    b1    : [1, H]   f32 fc1 bias
    w2_bf : [H, O]   bf16 fc2 weight (from prepare_params)
    b2    : [1, O]   f32 fc2 bias
    returns [B, O // 3, 3] float32
    """
    B, F = x.shape
    H = w1_bf.shape[1]
    O = w2_bf.shape[1]
    tn = _pick_tile(O)
    n_tiles = O // tn

    x_bf = x.astype(jnp.bfloat16)

    # TODO(synk): if the real workload has batch >> 2, add a batch grid axis
    # (innermost, W2 index_map independent of it) so the dominant W2 read is
    # amortized across batch tiles.
    out = pl.pallas_call(
        decoder_kernel,
        out_shape=jax.ShapeDtypeStruct((B, O), jnp.float32),
        grid=(n_tiles,),
        in_specs=[
            pl.BlockSpec((B, F), lambda j: (0, 0)),    # x   (resident)
            pl.BlockSpec((F, H), lambda j: (0, 0)),    # W1  (resident)
            pl.BlockSpec((1, H), lambda j: (0, 0)),    # b1  (resident)
            pl.BlockSpec((H, tn), lambda j: (0, j)),   # W2 column tile (strided rows, 3 KiB contiguous segments)
            pl.BlockSpec((1, tn), lambda j: (0, j)),   # b2 tile
        ],
        out_specs=pl.BlockSpec((B, tn), lambda j: (0, j)),   # lane-dense output
        compiler_params=pltpu.CompilerParams(
            dimension_semantics=("parallel",),  # grid=(2,) -> both TCs on v7x
            vmem_limit_bytes=32 * 1024 * 1024,
        ),
        cost_estimate=pl.CostEstimate(
            flops=2 * B * F * H * n_tiles + 2 * B * H * O,
            transcendentals=0,
            bytes_accessed=(
                B * F * 2          # x
                + F * H * 2        # W1 (fetched once)
                + H * 4            # b1
                + H * O * 2        # W2 (dominant)
                + O * 4            # b2
                + B * O * 4        # out
            ),
        ),
    )(x_bf, w1_bf, b1, w2_bf, b2)

    # Matches PyTorch's x.view(batch_size, -1, 3); kept outside the kernel so
    # in-kernel stores stay lane-dense (tn is a multiple of 128).
    return out.reshape(B, -1, 3)


if __name__ == "__main__":
    # Small but module-consistent sizes: feature_dim is configurable,
    # fc1 hidden (1024) and fc2 output (1024 * output_dim=3) are hard-coded
    # by the module's __init__.
    batch = 2
    feature_dim = 256
    hidden = 1024
    output_dim = 3
    out_dim = hidden * output_dim  # 3072

    key = jax.random.PRNGKey(0)
    kx, k1, k2, k3, k4 = jax.random.split(key, 5)

    x = jax.random.normal(kx, (batch, feature_dim), dtype=jnp.float32)
    # PyTorch Linear weight is [out, in]; we store the transpose [in, out].
    w1 = jax.random.normal(k1, (feature_dim, hidden), dtype=jnp.float32) * 0.02
    b1 = jax.random.normal(k2, (1, hidden), dtype=jnp.float32) * 0.02
    w2 = jax.random.normal(k3, (hidden, out_dim), dtype=jnp.float32) * 0.02
    b2 = jax.random.normal(k4, (1, out_dim), dtype=jnp.float32) * 0.02

    # One-time parameter preparation (init time, outside the forward path).
    w1_bf, b1_p, w2_bf, b2_p = prepare_params(w1, b1, w2, b2)
    w1_bf, b1_p, w2_bf, b2_p = jax.block_until_ready((w1_bf, b1_p, w2_bf, b2_p))

    y = pointnet_decoder_forward(x, w1_bf, b1_p, w2_bf, b2_p)
    y = jax.block_until_ready(y)

    # Pure-JAX reference with the same bf16-weight / f32-accumulate recipe.
    x_bf = x.astype(jnp.bfloat16)
    h_ref = jnp.maximum(
        jnp.dot(x_bf, w1_bf, preferred_element_type=jnp.float32) + b1, 0.0
    ).astype(jnp.bfloat16)
    y_ref = (
        jnp.dot(h_ref, w2_bf, preferred_element_type=jnp.float32) + b2
    ).reshape(batch, -1, 3)

    assert y.shape == (batch, hidden, output_dim), y.shape
    assert jnp.allclose(y, y_ref, atol=1e-2, rtol=1e-2)

    # Sanity check against the pure-f32 PyTorch-equivalent math (looser tol:
    # bf16 weights are an intentional accuracy tradeoff).
    h32 = jnp.maximum(jnp.dot(x, w1) + b1, 0.0)
    y32 = (jnp.dot(h32, w2) + b2).reshape(batch, -1, 3)
    assert jnp.allclose(y, y32, atol=5e-2, rtol=5e-2)

    print("KERNEL_OK")
</pallas_src>

<mosaic_0001>
module attributes {stable_mosaic.version = 11 : i64} {
  func.func @decoder_kernel(%arg0: i32, %arg1: memref<2x256xbf16, #tpu.memory_space<vmem>>, %arg2: memref<256x1024xbf16, #tpu.memory_space<vmem>>, %arg3: memref<1x1024xf32, #tpu.memory_space<vmem>>, %arg4: memref<1024x1536xbf16, #tpu.memory_space<vmem>>, %arg5: memref<1x1536xf32, #tpu.memory_space<vmem>>, %arg6: memref<2x1536xf32, #tpu.memory_space<vmem>>) attributes {dimension_semantics = [#tpu.dimension_semantics<parallel>], iteration_bounds = array<i64: 2>, scalar_prefetch = 0 : i64, scratch_operands = 0 : i64, tpu.core_type = #tpu.core_type<tc>, window_params = [{pipeline_mode = #tpu.pipeline_mode<synchronous>, transform_indices = @transform_0, window_bounds = array<i64: 2, 256>}, {pipeline_mode = #tpu.pipeline_mode<synchronous>, transform_indices = @transform_1, window_bounds = array<i64: 256, 1024>}, {pipeline_mode = #tpu.pipeline_mode<synchronous>, transform_indices = @transform_2, window_bounds = array<i64: 1, 1024>}, {transform_indices = @transform_3, window_bounds = array<i64: 1024, 1536>}, {transform_indices = @transform_4, window_bounds = array<i64: 1, 1536>}, {transform_indices = @transform_5, window_bounds = array<i64: 2, 1536>}]} {
    %c0 = arith.constant 0 : index
    %c0_0 = arith.constant 0 : index
    %0 = vector.load %arg1[%c0, %c0_0] : memref<2x256xbf16, #tpu.memory_space<vmem>>, vector<2x256xbf16>
    %c0_1 = arith.constant 0 : index
    %c0_2 = arith.constant 0 : index
    %1 = vector.load %arg2[%c0_1, %c0_2] : memref<256x1024xbf16, #tpu.memory_space<vmem>>, vector<256x1024xbf16>
    %cst = arith.constant dense<0.000000e+00> : vector<2x1024xf32>
    %2 = tpu.matmul %0, %1, %cst {dimension_numbers = #tpu.dot_dimension_numbers<[1], [0], [0], [1], [0, 0, 1, 1], [], []>} : vector<2x256xbf16>, vector<256x1024xbf16>, vector<2x1024xf32> -> vector<2x1024xf32>
    %c0_3 = arith.constant 0 : index
    %c0_4 = arith.constant 0 : index
    %3 = vector.load %arg3[%c0_3, %c0_4] : memref<1x1024xf32, #tpu.memory_space<vmem>>, vector<1x1024xf32>
    %4 = vector.broadcast %3 : vector<1x1024xf32> to vector<2x1024xf32>
    %5 = arith.addf %2, %4 : vector<2x1024xf32>
    %cst_5 = arith.constant 0.000000e+00 : f32
    %6 = vector.broadcast %cst_5 : f32 to vector<2x1024xf32>
    %7 = arith.maximumf %5, %6 : vector<2x1024xf32>
    %8 = arith.truncf %7 : vector<2x1024xf32> to vector<2x1024xbf16>
    %c0_6 = arith.constant 0 : index
    %c0_7 = arith.constant 0 : index
    %9 = vector.load %arg4[%c0_6, %c0_7] : memref<1024x1536xbf16, #tpu.memory_space<vmem>>, vector<1024x1536xbf16>
    %cst_8 = arith.constant dense<0.000000e+00> : vector<2x1536xf32>
    %10 = tpu.matmul %8, %9, %cst_8 {dimension_numbers = #tpu.dot_dimension_numbers<[1], [0], [0], [1], [0, 0, 1, 1], [], []>} : vector<2x1024xbf16>, vector<1024x1536xbf16>, vector<2x1536xf32> -> vector<2x1536xf32>
    %c0_9 = arith.constant 0 : index
    %c0_10 = arith.constant 0 : index
    %11 = vector.load %arg5[%c0_9, %c0_10] : memref<1x1536xf32, #tpu.memory_space<vmem>>, vector<1x1536xf32>
    %12 = vector.broadcast %11 : vector<1x1536xf32> to vector<2x1536xf32>
    %13 = arith.addf %10, %12 : vector<2x1536xf32>
    %c0_11 = arith.constant 0 : index
    %c0_12 = arith.constant 0 : index
    %14 = vector.load %arg6[%c0_11, %c0_12] : memref<2x1536xf32, #tpu.memory_space<vmem>>, vector<2x1536xf32>
    tpu.vector_store %arg6[%c0_11, %c0_12], %13 {strides = array<i32>} : memref<2x1536xf32, #tpu.memory_space<vmem>>, vector<2x1536xf32>,
    return
  }
  func.func @transform_0(%arg0: i32) -> (i32, i32) {
    %c0_i32 = arith.constant 0 : i32
    %c0_i32_0 = arith.constant 0 : i32
    %c0_i32_1 = arith.constant 0 : i32
    return %c0_i32, %c0_i32_0 : i32, i32
  }
  func.func @transform_1(%arg0: i32) -> (i32, i32) {
    %c0_i32 = arith.constant 0 : i32
    %c0_i32_0 = arith.constant 0 : i32
    %c0_i32_1 = arith.constant 0 : i32
    return %c0_i32, %c0_i32_0 : i32, i32
  }
  func.func @transform_2(%arg0: i32) -> (i32, i32) {
    %c0_i32 = arith.constant 0 : i32
    %c0_i32_0 = arith.constant 0 : i32
    %c0_i32_1 = arith.constant 0 : i32
    return %c0_i32, %c0_i32_0 : i32, i32
  }
  func.func @transform_3(%arg0: i32) -> (i32, i32) {
    %c0_i32 = arith.constant 0 : i32
    %c0_i32_0 = arith.constant 0 : i32
    return %c0_i32, %arg0 : i32, i32
  }
  func.func @transform_4(%arg0: i32) -> (i32, i32) {
    %c0_i32 = arith.constant 0 : i32
    %c0_i32_0 = arith.constant 0 : i32
    return %c0_i32, %arg0 : i32, i32
  }
  func.func @transform_5(%arg0: i32) -> (i32, i32) {
    %c0_i32 = arith.constant 0 : i32
    %c0_i32_0 = arith.constant 0 : i32
    return %c0_i32, %arg0 : i32, i32
  }
}

</mosaic_0001>

<bundles_post_ra>
// kernel: tpu_custom_call.1
= control target key start
LH: loop header
LB: loop body
LE: loop exit
PB: predicated region body
PF: predicated region fallthrough
CT: control target
= control target key end

     0   :  { %10 = vsyncpa [#allocation3], 0  ;;  %s10833_s0 = inlined_call_operand.hbm [shape: bf16[2,256], index: 0, kind: input, shape index: {}]   ;;  %s10834_s1 = inlined_call_operand.hbm [shape: bf16[256,1024], index: 1, kind: input, shape index: {}]   ;;  %s10835_s2 = inlined_call_operand.hbm [shape: f32[1,1024], index: 2, kind: input, shape index: {}]   ;;  %s10836_s3 = inlined_call_operand.hbm [shape: bf16[1024,3072], index: 3, kind: input, shape index: {}]   ;;  %s10837_s4 = inlined_call_operand.hbm [shape: f32[1,3072], index: 4, kind: input, shape index: {}]   ;;  %s10838_s5 = inlined_call_operand.hbm [shape: f32[2,3072], index: 5, kind: output, shape index: {}]  }
   0x1   :  { %11 = vsyncpa [#allocation6], 0 }
   0x2   :  { %12 = vsyncpa [#allocation9], 0 }
   0x3   :  { %14 = vsyncpa [#allocation9 + $0x1], 0 }
   0x4   :  { %15 = vsyncpa [#allocation4], 0 }
   0x5   :  { %17 = vsyncpa [#allocation4 + $0x1], 0  ;;  %s9611_s18 = smov 0   ;;  %s9613_s19 = smov 0  }
   0x6   :  { %s9615_s20 = smov 0   ;;  %s9617_s21 = smov 0  }
   0x7 LB: > { %s9632_s22 = sadd.s32 4294967295, %s9566_s21   ;;  %s7198_s23 = sadd.s32 4294967294, %s9566_s21   ;;  %s9566_s21 = sphi %s9617_s21, %s10875_s21   ;;  %s9562_s20 = sphi %s9615_s20, %s10874_s20   ;;  %s9558_s19 = sphi %s9613_s19, %s10873_s19   ;;  %s9554_s18 = sphi %s9611_s18, %s10872_s18  }
   0x8   : > { %s9636_s24 = sadd.s32 1, %s9566_s21   ;;  %s93_s25 = sadd.s32 1, %s9562_s20 }
   0x9   : > { %s90_s26 = ssub.s32 %s9566_s21, %s9636_s24  ;;  %p100_p0 = scmp.ne.s32.totalorder %s9562_s20, %s9558_s19 }
   0xa   : > { %p91_p1 = scmp.eq.s32.totalorder %s90_s26, 0  ;;  %p101_p2 = scmp.eq.s32.totalorder %s9566_s21, 0 }
   0xb   : > { %p106_p3 = scmp.ne.s32.totalorder %s9558_s19, %s9554_s18  ;;  %p10841_p4 = scmp.eq.s32.totalorder %s9632_s22, 0 }
   0xc   : > { %s9648_s27 = scalar_select %p91_p1, %s9562_s20, %s93_s25  }
   0xd   : > { %p9650_p5 = por %p101_p2, %p100_p0  ;;  %p9656_p6 = por %p10841_p4, %p106_p3 }
   0xe   : > { %10848 = sst [smem:[#allocation16_spill]] %s9648_s27  ;;  %p156_p7 = scmp.eq.s32.totalorder %s9632_s22, 1 }
   0xf   : > { %s10850_s29 = scalar_select %p9656_p6, 1, 0 }
  0x10   : > { %p162_p8 = scmp.eq.s32.totalorder %s7198_s23, 1  ;;  %p7199_p9 = scmp.ge.s32.totalorder %s9566_s21, 1 }
  0x11   : > { %p169_p10 = scmp.lt.s32.totalorder %s9566_s21, 3  ;;  %p9663_p11 = por %p156_p7, %p100_p0 }
  0x12   : > { %p9667_p12 = por %p162_p8, %p106_p3  ;;  %s9568_s8 = smov [#allocation5]  }
  0x13   : > { %s10851_s30 = scalar_select %p9663_p11, 1, 0 }
  0x14   : > { %s10852_s6 = scalar_select %p9667_p12, 1, 0 }
  0x15   : > { %p9671_p13 = pnand %p7199_p9, %p169_p10  ;;  %s192_s9 = sshll.u32 %s9568_s8, 4  ;;  %s193_s9 = int_to_ptr.vmem [resolvable:$true] %s192_s9 }
  0x16   : > { %p8160_p3 = scmp.lt.s32.totalorder %s9566_s21, 2  ;;  %s217_s11 = sand.u32 1, %s9566_s21  }
  0x17   : > { %s10853_s7 = scalar_select %p9671_p13, 1, 0 }
  0x18   : > { %p8136_p1 = pneg %p9671_p13  ;;  %s9371_s12 = scalar_lea.vmem %s193_s9, 16384 }
  0x19   : > { %p9372_p8 = scmp.ne.s32.totalorder %s193_s9, %s9371_s12  ;;  %p9379_p12 = scmp.lt.s32.totalorder %s193_s9, %s193_s9 }
  0x1a   : > { %p9679_p2 = pnand %p8136_p1, %p10841_p4  ;;  %p9380_p11 = scmp.lt.s32.totalorder %s9371_s12, %s9371_s12 }
  0x1c   : > { %p10842_p7 = pneg %p9679_p2  ;;  %p9381_p6 = por %p9380_p11, %p9379_p12 }
  0x1e   : > { %p9374_p9 = pnand %p9372_p8, %p10842_p7 }
  0x20   : > { %p9375_p10 = pneg %p9374_p9 }
  0x22   : > { %p9382_p1 = pnand %p9381_p6, %p9375_p10 }
  0x24   : > { %9385 = shalt.err (!%p9382_p1)
}
  0x25   : > { %s9569_s13 = smov 512   ;;  %s9570_s14 = smov 32  }
  0x26   : > { %8142 = dma.hbm_to_vmem [thread:$0]  (!%p9679_p2), %s10834_s1, 16384, %s193_s9, [#allocation6], %s9569_s13, %s9569_s13, %s9570_s14  }
  0x27   : > { %p9700_p8 = pnand %p8160_p3, %p9650_p5  ;;  %s10844_s23 = sand.u32 1, %s9562_s20  }
  0x28   : > { %s8113_s25 = smul.u32 6144, %s10844_s23  ;;  %s9715_s13 = scalar_lea.sflag [#allocation9], %s217_s11 }
  0x29   : > { %s10855_s17 = scalar_select %p9700_p8, 1, 0 }
  0x2a   : > { %s8110_s26 = smul.u32 768, %s9566_s21  ;;  %s221_s28 = scalar_lea.vmem [#allocation8], %s8113_s25 }
  0x2b   : > { %s228_s9 = sshll.u32 %s221_s28, 4  ;;  %p10845_p6 = pneg %p9700_p8  ;;  %s9713_s9 = int_to_ptr.vmem [resolvable:$true] %s228_s9 }
  0x2c   : > { %s9711_s27 = scalar_lea.hbm %s10836_s3, %s8110_s26  ;;  %s9391_s26 = scalar_lea.hbm %s10836_s3, 196608 }
  0x2d   : > { %s9386_s14 = scalar_lea.hbm %s9711_s27, 98304  ;;  %p9392_p3 = scmp.lt.s32.totalorder %s9711_s27, %s10836_s3 }
  0x2e   : > { %p9387_p5 = scmp.ne.s32.totalorder %s9711_s27, %s9386_s14  ;;  %p9393_p9 = scmp.lt.s32.totalorder %s9391_s26, %s9386_s14 }
  0x30   : > { %p9389_p11 = pnand %p10845_p6, %p9387_p5  ;;  %p9394_p10 = por %p9393_p9, %p9392_p3 }
  0x32   : > { %p9390_p12 = pneg %p9389_p11 }
  0x34   : > { %p9395_p1 = pnand %p9394_p10, %p9390_p12 }
  0x36   : > { %9398 = shalt.err (!%p9395_p1)
}
  0x37   : > { %s9399_s11 = scalar_lea.vmem %s9713_s9, 98304  ;;  %s9571_s25 = smov [#allocation8]  }
  0x38   : > { %p9400_p0 = scmp.ne.s32.totalorder %s9713_s9, %s9399_s11  ;;  %s9404_s28 = sshll.u32 %s9571_s25, 4  ;;  %s9405_s28 = int_to_ptr.vmem [resolvable:$false] %s9404_s28 }
  0x39   : > { %s9406_s15 = scalar_lea.vmem %s9405_s28, 196608  ;;  %p9407_p4 = scmp.lt.s32.totalorder %s9713_s9, %s9405_s28 }
  0x3a   : > { %p9402_p5 = pnand %p9400_p0, %p10845_p6  ;;  %p9408_p7 = scmp.lt.s32.totalorder %s9406_s15, %s9399_s11 }
  0x3c   : > { %p9403_p11 = pneg %p9402_p5  ;;  %p9409_p13 = por %p9408_p7, %p9407_p4 }
  0x3e   : > { %p9410_p3 = pnand %p9409_p13, %p9403_p11 }
  0x40   : > { %9413 = shalt.err (!%p9410_p3)
}
  0x41   : > { %s9572_s14 = smov 1536   ;;  %s9573_s16 = smov 768  }
  0x42   : > { %s9574_s26 = smov 48   ;;  %s9575_s8 = smov [#allocation2]  }
  0x43   : > { %8149 = dma.hbm_to_vmem [thread:$0]  (!%p9700_p8), %s9711_s27, 98304, %s9713_s9, %s9715_s13, %s9572_s14, %s9573_s16, %s9574_s26  }
  0x44   : > { %s182_s12 = sshll.u32 %s9575_s8, 4  ;;  %s9576_s25 = smov [#allocation7]   ;;  %s183_s12 = int_to_ptr.vmem [resolvable:$true] %s182_s12 }
  0x45   : > { %s206_s23 = sshll.u32 %s9576_s25, 4  ;;  %s9425_s11 = scalar_lea.vmem %s183_s12, 32  ;;  %s207_s23 = int_to_ptr.vmem [resolvable:$true] %s206_s23 }
  0x46   : > { %p9426_p4 = scmp.ne.s32.totalorder %s183_s12, %s9425_s11  ;;  %p10856_p13 = pneg %p9679_p2 }
  0x47   : > { %p9433_p12 = scmp.lt.s32.totalorder %s183_s12, %s183_s12  ;;  %p9434_p9 = scmp.lt.s32.totalorder %s9425_s11, %s9425_s11 }
  0x48   : > { %p9428_p0 = pnand %p9426_p4, %p10856_p13 }
  0x49   : > { %p9435_p10 = por %p9434_p9, %p9433_p12 }
  0x4a   : > { %p9429_p7 = pneg %p9428_p0 }
  0x4c   : > { %p9436_p1 = pnand %p9435_p10, %p9429_p7 }
  0x4e   : > { %9439 = shalt.err (!%p9436_p1)
}
  0x4f   : > { %8139 = dma.hbm_to_vmem [thread:$0]  (!%p9679_p2), %s10833_s0, 32, %s183_s12, [#allocation3]  }
  0x50   : > { %s9451_s28 = scalar_lea.vmem %s207_s23, 128  ;;  %p10857_p11 = pmov %p10856_p13 }
  0x51   : > { %p9452_p5 = scmp.ne.s32.totalorder %s207_s23, %s9451_s28  ;;  %p9459_p4 = scmp.lt.s32.totalorder %s207_s23, %s207_s23 }
  0x52   : > { %p9460_p13 = scmp.lt.s32.totalorder %s9451_s28, %s9451_s28 }
  0x53   : > { %p9454_p3 = pnand %p9452_p5, %p10857_p11 }
  0x54   : > { %p9461_p0 = por %p9460_p13, %p9459_p4 }
  0x55   : > { %p9455_p6 = pneg %p9454_p3 }
  0x57   : > { %p9462_p8 = pnand %p9461_p0, %p9455_p6 }
  0x59   : > { %9465 = shalt.err (!%p9462_p8)
}
  0x5a   : > { %8145 = dma.hbm_to_vmem [thread:$0]  (!%p9679_p2), %s10835_s2, 128, %s207_s23, [#allocation6]  }
  0x5b   : > { %s10858_s16 = sand.u32 1, %s9562_s20   ;;  %s8111_s8 = smul.u32 192, %s9566_s21 }
  0x5c   : > { %s8114_s26 = smul.u32 12, %s10858_s16  ;;  %p10859_p6 = scmp.ne.s32.totalorder %s10855_s17, 0 }
  0x5d   : > { %s248_s11 = scalar_lea.hbm %s10837_s4, %s8111_s8  ;;  %s9471_s23 = scalar_lea.hbm %s10837_s4, 384 }
  0x5e   : > { %s242_s27 = scalar_lea.vmem [#allocation10], %s8114_s26  ;;  %s9466_s28 = scalar_lea.hbm %s248_s11, 192 }
  0x5f   : > { %s250_s9 = sshll.u32 %s242_s27, 4  ;;  %p9467_p8 = scmp.ne.s32.totalorder %s248_s11, %s9466_s28  ;;  %s251_s9 = int_to_ptr.vmem [resolvable:$true] %s250_s9 }
  0x60   : > { %p10860_p7 = pneg %p10859_p6  ;;  %p9472_p2 = scmp.lt.s32.totalorder %s248_s11, %s10837_s4 }
  0x61   : > { %p9473_p10 = scmp.lt.s32.totalorder %s9471_s23, %s9466_s28 }
  0x62   : > { %p9469_p12 = pnand %p9467_p8, %p10860_p7 }
  0x63   : > { %p9474_p1 = por %p9473_p10, %p9472_p2 }
  0x64   : > { %p9470_p9 = pneg %p9469_p12 }
  0x66   : > { %p9475_p5 = pnand %p9474_p1, %p9470_p9 }
  0x68   : > { %9478 = shalt.err (!%p9475_p5)
}
  0x69   : > { %s9479_s26 = scalar_lea.vmem %s251_s9, 192  ;;  %p10861_p3 = pmov %p10860_p7 }
  0x6a   : > { %p9480_p11 = scmp.ne.s32.totalorder %s251_s9, %s9479_s26  ;;  %s9577_s8 = smov [#allocation10]  }
  0x6b   : > { %s9484_s12 = sshll.u32 %s9577_s8, 4  ;;  %s9485_s12 = int_to_ptr.vmem [resolvable:$false] %s9484_s12 }
  0x6c   : > { %p9482_p4 = pnand %p9480_p11, %p10861_p3  ;;  %s9486_s25 = scalar_lea.vmem %s9485_s12, 384 }
  0x6d   : > { %p9487_p0 = scmp.lt.s32.totalorder %s251_s9, %s9485_s12  ;;  %p9488_p8 = scmp.lt.s32.totalorder %s9486_s25, %s9479_s26 }
  0x6e   : > { %p9483_p13 = pneg %p9482_p4 }
  0x6f   : > { %p9489_p7 = por %p9488_p8, %p9487_p0 }
  0x71   : > { %p9490_p12 = pnand %p9489_p7, %p9483_p13 }
  0x73   : > { %9493 = shalt.err (!%p9490_p12)
}
  0x74   : > { %8152 = dma.hbm_to_vmem [thread:$0]  (!%p10859_p6), %s248_s11, 192, %s251_s9, %s9715_s13  }
  0x75   : > { %p10862_p9 = scmp.ne.s32.totalorder %s10853_s7, 0 }
  0x76   : > { %p10863_p2 = scmp.eq.s32.totalorder (!%p10862_p9), %s9632_s22, 0 }
  0x77   : > { %259 = sbr.rel (%p10862_p9) target bundleno = 1325 (0x52d), region = 40 }
  0x7c   : > { %9537 = dma.done.wait (%p10863_p2), [#allocation3], 32   ;;  %p10864_p10 = pmov %p10863_p2 }
  0x7d   : > { %p10865_p1 = pmov %p10863_p2 }
  0x7e   : > { %9539 = vsyncadd (%p10864_p10), [#allocation3], 4294967264 }
  0x7f   : > { %9541 = dma.done.wait (%p10865_p1), [#allocation6], 16512   ;;  %p10866_p5 = pmov %p10865_p1 }
  0x80   : > { %s273_s17 = sand.u32 1, %s9632_s22   ;;  %s9791_s13 = sand.u32 1, %s9558_s19  }
  0x81   : > { %9543 = vsyncadd (%p10866_p5), [#allocation6], 4294950784  ;;  %s8115_s7 = smul.u32 6144, %s9791_s13  ;;  %s274_s11 = scalar_lea.sflag [#allocation9], %s273_s17 }
  0x82   : > { %p10867_p6 = scmp.ne.s32.totalorder %s10850_s29, 0 }
  0x83   : > { %s9794_s27 = scalar_lea.vmem [#allocation8], %s8115_s7 }
  0x84   : > { %9545 = dma.done.wait (%p10867_p6), %s274_s11, 98496  }
  0x85   : > { %9547 = vsyncadd (%p10867_p6), %s274_s11, 4294868800  ;;  %v378_v0 = vld [vmem:[#allocation5 + $0x1c0] sm:$0xff]  ;;  %v379_v2 = vld [vmem:[#allocation5 + $0x1c8] sm:$0xff]  ;;  %v452_v35 = vlaneseq  ;;  %v9578_v36 = vmov 1966171168   ;;  %s8116_s29 = smul.u32 12, %s9791_s13 }
  0x86   : > { %v382_v1 = vld [vmem:[#allocation5 + $0x1e0] sm:$0xff]  ;;  %v383_v4 = vld [vmem:[#allocation5 + $0x1e8] sm:$0xff]  ;;  %v502_v37 = vunpack.c.l.s4 %v9578_v36  ;;  %v9805_v59 = vld.sshfl [vmem:[#allocation2] sm:$0x11 pattern:$0x75316420] }
  0x87   : > { %v7268_v3 = vcombine.high %v378_v0, %v382_v1  ;;  %v7267_v5 = vcombine.low %v378_v0, %v382_v1  ;;  %v370_v6 = vld [vmem:[#allocation5 + $0x180] sm:$0xff]  ;;  %v7270_v8 = vcombine.high %v379_v2, %v383_v4  ;;  %v7269_v9 = vcombine.low %v379_v2, %v383_v4  ;;  %v371_v11 = vld [vmem:[#allocation5 + $0x188] sm:$0xff]  ;;  %s10150_s9 = scalar_lea.vmem [#allocation10], %s8116_s29  ;;  %s8117_s28 = smul.u32 24, %s9791_s13 }
  0x88   : > { %v374_v7 = vld [vmem:[#allocation5 + $0x1a0] sm:$0xff]  ;;  %v375_v12 = vld [vmem:[#allocation5 + $0x1a8] sm:$0xff]  ;;  %v9800_v46 = vshrl.u32 %v452_v35, 7  ;;  %v503_v47 = vunpack.c.0.s8 %v502_v37  ;;  %v500_v63 = vcombine.high %v9805_v59, %v9805_v59  ;;  %s8112_s15 = smul.u32 384, %s9632_s22  ;;  %s7063_s8 = scalar_lea.sflag [#allocation4], %s9791_s13 }
  0x89   : > { %v7260_v10 = vcombine.high %v370_v6, %v374_v7  ;;  %v362_v13 = vld [vmem:[#allocation5 + $0x140] sm:$0xff]  ;;  %1157 = vmatprep.subr.bf16.mxu0 %v7268_v3  ;;  %v7262_v14 = vcombine.high %v371_v11, %v375_v12  ;;  %v363_v16 = vld [vmem:[#allocation5 + $0x148] sm:$0xff]  ;;  %1198 = vmatprep.subr.bf16.mxu1 %v7270_v8  ;;  %v7259_v18 = vcombine.low %v370_v6, %v374_v7  ;;  %s10421_s10 = scalar_lea.vmem [#allocation11], %s8117_s28  ;;  %p10868_p3 = scmp.ne.s32.totalorder %s10851_s30, 0 }
  0x8a   : > { %v366_v15 = vld [vmem:[#allocation5 + $0x160] sm:$0xff]  ;;  %v367_v17 = vld [vmem:[#allocation5 + $0x168] sm:$0xff]  ;;  %1158 = vmatpush1.bf16.msra.mxu0 %v7267_v5  ;;  %1199 = vmatpush1.bf16.msra.mxu1 %v7269_v9  ;;  %v7261_v19 = vcombine.low %v371_v11, %v375_v12  ;;  %v9803_v56 = vsub.s32 %v503_v47, %v9800_v46  ;;  %s7077_s23 = sshll.u32 %s10421_s10, 4  ;;  %s7075_s26 = scalar_lea.hbm %s10838_s5, %s8112_s15  ;;  %s7078_s23 = int_to_ptr.vmem [resolvable:$true] %s7077_s23 }
  0x8b   : > { %1159 = vmatprep.subr.bf16.mxu0 %v7260_v10  ;;  %v7252_v20 = vcombine.high %v362_v13, %v366_v15  ;;  %1200 = vmatprep.subr.bf16.mxu1 %v7262_v14  ;;  %v7254_v21 = vcombine.high %v363_v16, %v367_v17  ;;  %v354_v22 = vld [vmem:[#allocation5 + $0x100] sm:$0xff]  ;;  %v355_v24 = vld [vmem:[#allocation5 + $0x108] sm:$0xff]  ;;  %v7251_v26 = vcombine.low %v362_v13, %v366_v15  ;;  %s9494_s12 = scalar_lea.vmem %s7078_s23, 384  ;;  %s9580_s25 = smov [#allocation11]  }
  0x8c   : > { %v358_v23 = vld [vmem:[#allocation5 + $0x120] sm:$0xff]  ;;  %v359_v25 = vld [vmem:[#allocation5 + $0x128] sm:$0xff]  ;;  %v7253_v27 = vcombine.low %v363_v16, %v367_v17  ;;  %v9810_v3 = vrot.slane %v500_v63, %v9803_v56  ;;  %p9495_p11 = scmp.ne.s32.totalorder %s7078_s23, %s9494_s12  ;;  %s9498_s22 = sshll.u32 %s9580_s25, 4  ;;  %s9499_s22 = int_to_ptr.vmem [resolvable:$false] %s9498_s22 }
  0x8d   : > { %v7244_v28 = vcombine.high %v354_v22, %v358_v23  ;;  %v7246_v29 = vcombine.high %v355_v24, %v359_v25  ;;  %v346_v30 = vld [vmem:[#allocation5 + $0xc0] sm:$0xff]  ;;  %v347_v32 = vld [vmem:[#allocation5 + $0xc8] sm:$0xff]  ;;  %v7243_v34 = vcombine.low %v354_v22, %v358_v23  ;;  %v7245_v38 = vcombine.low %v355_v24, %v359_v25  ;;  %s9500_s17 = scalar_lea.vmem %s9499_s22, 768  ;;  %p9501_p0 = scmp.lt.s32.totalorder %s7078_s23, %s9499_s22 }
  0x8e   : > { %1160 = vmatpush1.bf16.msra.mxu0 %v7259_v18  ;;  %1201 = vmatpush1.bf16.msra.mxu1 %v7261_v19  ;;  %v350_v31 = vld [vmem:[#allocation5 + $0xe0] sm:$0xff]  ;;  %v351_v33 = vld [vmem:[#allocation5 + $0xe8] sm:$0xff]  ;;  %p9496_p4 = pnand %p9495_p11, %p10868_p3  ;;  %p9502_p8 = scmp.lt.s32.totalorder %s9500_s17, %s9494_s12 }
  0x8f   : > { %1161 = vmatprep.subr.bf16.mxu0 %v7252_v20  ;;  %1202 = vmatprep.subr.bf16.mxu1 %v7254_v21  ;;  %v7236_v39 = vcombine.high %v346_v30, %v350_v31  ;;  %v7238_v40 = vcombine.high %v347_v32, %v351_v33  ;;  %v338_v41 = vld [vmem:[#allocation5 + $0x80] sm:$0xff]  ;;  %v339_v43 = vld [vmem:[#allocation5 + $0x88] sm:$0xff]  ;;  %v7235_v45 = vcombine.low %v346_v30, %v350_v31 }
  0x90   : > { %v342_v42 = vld [vmem:[#allocation5 + $0xa0] sm:$0xff]  ;;  %v343_v44 = vld [vmem:[#allocation5 + $0xa8] sm:$0xff]  ;;  %v7237_v48 = vcombine.low %v347_v32, %v351_v33  ;;  %1189 = vmatprep.mubr.bf16.mxu0 %v9810_v3  ;;  %1230 = vmatprep.mubr.bf16.mxu1 %v9810_v3  ;;  %p9497_p13 = pneg %p9496_p4  ;;  %p9503_p7 = por %p9502_p8, %p9501_p0 }
  0x91   : > { %v7228_v49 = vcombine.high %v338_v41, %v342_v42  ;;  %v7230_v50 = vcombine.high %v339_v43, %v343_v44  ;;  %v330_v51 = vld [vmem:[#allocation5 + $0x40] sm:$0xff]  ;;  %v331_v53 = vld [vmem:[#allocation5 + $0x48] sm:$0xff]  ;;  %v7227_v55 = vcombine.low %v338_v41, %v342_v42  ;;  %v7229_v57 = vcombine.low %v339_v43, %v343_v44 }
  0x92   : > { %1162 = vmatpush1.bf16.msra.mxu0 %v7251_v26  ;;  %1203 = vmatpush1.bf16.msra.mxu1 %v7253_v27  ;;  %v334_v52 = vld [vmem:[#allocation5 + $0x60] sm:$0xff]  ;;  %v335_v54 = vld [vmem:[#allocation5 + $0x68] sm:$0xff]  ;;  %p9504_p12 = pnand %p9503_p7, %p9497_p13 }
  0x93   : > { %1163 = vmatprep.subr.bf16.mxu0 %v7244_v28  ;;  %1204 = vmatprep.subr.bf16.mxu1 %v7246_v29  ;;  %v7220_v58 = vcombine.high %v330_v51, %v334_v52  ;;  %v7222_v60 = vcombine.high %v331_v53, %v335_v54  ;;  %v322_v61 = vld [vmem:[#allocation5] sm:$0xff]  ;;  %v323_v0 = vld [vmem:[#allocation5 + $0x8] sm:$0xff]  ;;  %v7219_v2 = vcombine.low %v330_v51, %v334_v52 }
  0x94   : > { %v326_v62 = vld [vmem:[#allocation5 + $0x20] sm:$0xff]  ;;  %v327_v1 = vld [vmem:[#allocation5 + $0x28] sm:$0xff]  ;;  %v7221_v4 = vcombine.low %v331_v53, %v335_v54 }
  0x95   : > { %v7212_v5 = vcombine.high %v322_v61, %v326_v62  ;;  %v7214_v6 = vcombine.high %v323_v0, %v327_v1  ;;  %v442_v7 = vld [vmem:[#allocation5 + $0x3c0] sm:$0xff]  ;;  %v443_v9 = vld [vmem:[#allocation5 + $0x3c8] sm:$0xff]  ;;  %v7211_v11 = vcombine.low %v322_v61, %v326_v62  ;;  %v7213_v12 = vcombine.low %v323_v0, %v327_v1 }
  0x96   : > { %1164 = vmatpush1.bf16.msra.mxu0 %v7243_v34  ;;  %1205 = vmatpush1.bf16.msra.mxu1 %v7245_v38  ;;  %v446_v8 = vld [vmem:[#allocation5 + $0x3e0] sm:$0xff]  ;;  %v447_v10 = vld [vmem:[#allocation5 + $0x3e8] sm:$0xff] }
  0x97   : > { %1165 = vmatprep.subr.bf16.mxu0 %v7236_v39  ;;  %1206 = vmatprep.subr.bf16.mxu1 %v7238_v40  ;;  %v7332_v13 = vcombine.high %v442_v7, %v446_v8  ;;  %v7334_v14 = vcombine.high %v443_v9, %v447_v10  ;;  %v434_v15 = vld [vmem:[#allocation5 + $0x380] sm:$0xff]  ;;  %v435_v17 = vld [vmem:[#allocation5 + $0x388] sm:$0xff]  ;;  %v7331_v19 = vcombine.low %v442_v7, %v446_v8 }
  0x98   : > { %v438_v16 = vld [vmem:[#allocation5 + $0x3a0] sm:$0xff]  ;;  %v439_v18 = vld [vmem:[#allocation5 + $0x3a8] sm:$0xff]  ;;  %v7333_v20 = vcombine.low %v443_v9, %v447_v10  ;;  %v380_v10 = vld [vmem:[#allocation5 + $0x1d0] sm:$0xff] }
  0x99   : > { %v7324_v21 = vcombine.high %v434_v15, %v438_v16  ;;  %v7326_v22 = vcombine.high %v435_v17, %v439_v18  ;;  %v426_v23 = vld [vmem:[#allocation5 + $0x340] sm:$0xff]  ;;  %v427_v25 = vld [vmem:[#allocation5 + $0x348] sm:$0xff]  ;;  %v7323_v27 = vcombine.low %v434_v15, %v438_v16  ;;  %v7325_v28 = vcombine.low %v435_v17, %v439_v18  ;;  %v372_v18 = vld [vmem:[#allocation5 + $0x190] sm:$0xff] }
  0x9a   : > { %1166 = vmatpush1.bf16.msra.mxu0 %v7235_v45  ;;  %1207 = vmatpush1.bf16.msra.mxu1 %v7237_v48  ;;  %v430_v24 = vld [vmem:[#allocation5 + $0x360] sm:$0xff]  ;;  %v431_v26 = vld [vmem:[#allocation5 + $0x368] sm:$0xff] }
  0x9b   : > { %1167 = vmatprep.subr.bf16.mxu0 %v7228_v49  ;;  %1208 = vmatprep.subr.bf16.mxu1 %v7230_v50  ;;  %v7316_v29 = vcombine.high %v426_v23, %v430_v24  ;;  %v7318_v30 = vcombine.high %v427_v25, %v431_v26  ;;  %v418_v31 = vld [vmem:[#allocation5 + $0x300] sm:$0xff]  ;;  %v419_v33 = vld [vmem:[#allocation5 + $0x308] sm:$0xff]  ;;  %v7315_v35 = vcombine.low %v426_v23, %v430_v24  ;;  %v377_v23 = vld [vmem:[#allocation5 + $0x1b8] sm:$0xff] }
  0x9c   : > { %v422_v32 = vld [vmem:[#allocation5 + $0x320] sm:$0xff]  ;;  %v423_v34 = vld [vmem:[#allocation5 + $0x328] sm:$0xff]  ;;  %v7317_v36 = vcombine.low %v427_v25, %v431_v26 }
  0x9d   : > { %v7308_v37 = vcombine.high %v418_v31, %v422_v32  ;;  %v7310_v38 = vcombine.high %v419_v33, %v423_v34  ;;  %v410_v39 = vld [vmem:[#allocation5 + $0x2c0] sm:$0xff]  ;;  %v411_v41 = vld [vmem:[#allocation5 + $0x2c8] sm:$0xff]  ;;  %v7307_v43 = vcombine.low %v418_v31, %v422_v32  ;;  %v7309_v44 = vcombine.low %v419_v33, %v423_v34  ;;  %v369_v31 = vld [vmem:[#allocation5 + $0x178] sm:$0xff] }
  0x9e   : > { %1168 = vmatpush1.bf16.msra.mxu0 %v7227_v55  ;;  %1209 = vmatpush1.bf16.msra.mxu1 %v7229_v57  ;;  %v414_v40 = vld [vmem:[#allocation5 + $0x2e0] sm:$0xff]  ;;  %v415_v42 = vld [vmem:[#allocation5 + $0x2e8] sm:$0xff]  ;;  %v356_v33 = vld [vmem:[#allocation5 + $0x110] sm:$0xff] }
  0x9f   : > { %1169 = vmatprep.subr.bf16.mxu0 %v7220_v58  ;;  %1210 = vmatprep.subr.bf16.mxu1 %v7222_v60  ;;  %v7300_v45 = vcombine.high %v410_v39, %v414_v40  ;;  %v402_v47 = vld [vmem:[#allocation5 + $0x280] sm:$0xff]  ;;  %v7302_v48 = vcombine.high %v411_v41, %v415_v42  ;;  %v403_v50 = vld [vmem:[#allocation5 + $0x288] sm:$0xff]  ;;  %v7299_v52 = vcombine.low %v410_v39, %v414_v40 }
  0xa0   : > { %v406_v49 = vld [vmem:[#allocation5 + $0x2a0] sm:$0xff]  ;;  %v407_v51 = vld [vmem:[#allocation5 + $0x2a8] sm:$0xff]  ;;  %v7301_v53 = vcombine.low %v411_v41, %v415_v42  ;;  %v348_v41 = vld [vmem:[#allocation5 + $0xd0] sm:$0xff] }
  0xa1   : > { %v7292_v54 = vcombine.high %v402_v47, %v406_v49  ;;  %v394_v55 = vld [vmem:[#allocation5 + $0x240] sm:$0xff]  ;;  %v7294_v57 = vcombine.high %v403_v50, %v407_v51  ;;  %v395_v60 = vld [vmem:[#allocation5 + $0x248] sm:$0xff]  ;;  %v7291_v62 = vcombine.low %v402_v47, %v406_v49  ;;  %v7293_v63 = vcombine.low %v403_v50, %v407_v51  ;;  %v340_v50 = vld [vmem:[#allocation5 + $0x90] sm:$0xff] }
  0xa2   : > { %1170 = vmatpush1.bf16.msra.mxu0 %v7219_v2  ;;  %1211 = vmatpush1.bf16.msra.mxu1 %v7221_v4  ;;  %v398_v58 = vld [vmem:[#allocation5 + $0x260] sm:$0xff]  ;;  %v399_v61 = vld [vmem:[#allocation5 + $0x268] sm:$0xff]  ;;  %v344_v51 = vld [vmem:[#allocation5 + $0xb0] sm:$0xff] }
  0xa3   : > { %1171 = vmatprep.subr.bf16.mxu0 %v7212_v5  ;;  %1212 = vmatprep.subr.bf16.mxu1 %v7214_v6  ;;  %v7284_v0 = vcombine.high %v394_v55, %v398_v58  ;;  %v386_v1 = vld [vmem:[#allocation5 + $0x200] sm:$0xff]  ;;  %v7286_v2 = vcombine.high %v395_v60, %v399_v61  ;;  %v387_v5 = vld [vmem:[#allocation5 + $0x208] sm:$0xff]  ;;  %v7283_v7 = vcombine.low %v394_v55, %v398_v58  ;;  %v332_v55 = vld [vmem:[#allocation5 + $0x50] sm:$0xff] }
  0xa4   : > { %v390_v4 = vld [vmem:[#allocation5 + $0x220] sm:$0xff]  ;;  %v391_v6 = vld [vmem:[#allocation5 + $0x228] sm:$0xff]  ;;  %v7285_v8 = vcombine.low %v395_v60, %v399_v61  ;;  %v7232_v60 = vcombine.high %v340_v50, %v344_v51  ;;  %v333_v61 = vld [vmem:[#allocation5 + $0x58] sm:$0xff] }
  0xa5   : > { %v7276_v9 = vcombine.high %v386_v1, %v390_v4  ;;  %v7275_v15 = vcombine.low %v386_v1, %v390_v4  ;;  %v7277_v16 = vcombine.low %v387_v5, %v391_v6  ;;  %v324_v1 = vld [vmem:[#allocation5 + $0x10] sm:$0xff] }
  0xa6   : > { %1172 = vmatpush1.bf16.msra.mxu0 %v7211_v11  ;;  %1213 = vmatpush1.bf16.msra.mxu1 %v7213_v12  ;;  %v7278_v11 = vcombine.high %v387_v5, %v391_v6  ;;  %v384_v12 = vld [vmem:[#allocation5 + $0x1f0] sm:$0xff]  ;;  %v325_v6 = vld [vmem:[#allocation5 + $0x18] sm:$0xff] }
  0xa7   : > { %1173 = vmatprep.subr.bf16.mxu0 %v7332_v13  ;;  %1214 = vmatprep.subr.bf16.mxu1 %v7334_v14  ;;  %v381_v13 = vld [vmem:[#allocation5 + $0x1d8] sm:$0xff]  ;;  %v7272_v17 = vcombine.high %v380_v10, %v384_v12  ;;  %v7271_v24 = vcombine.low %v380_v10, %v384_v12  ;;  %v444_v10 = vld [vmem:[#allocation5 + $0x3d0] sm:$0xff] }
  0xa8   : > { %v385_v14 = vld [vmem:[#allocation5 + $0x1f8] sm:$0xff] }
  0xa9   : > { %v7273_v25 = vcombine.low %v381_v13, %v385_v14 }
  0xaa   : > { %1174 = vmatpush2.bf16.msra.mxu0 %v7331_v19  ;;  %1215 = vmatpush2.bf16.msra.mxu1 %v7333_v20  ;;  %v7274_v19 = vcombine.high %v381_v13, %v385_v14  ;;  %v376_v20 = vld [vmem:[#allocation5 + $0x1b0] sm:$0xff]  ;;  %v445_v14 = vld [vmem:[#allocation5 + $0x3d8] sm:$0xff] }
  0xab   : > { %1175 = vmatprep.subr.bf16.mxu0 %v7324_v21  ;;  %1216 = vmatprep.subr.bf16.mxu1 %v7326_v22  ;;  %v373_v21 = vld [vmem:[#allocation5 + $0x198] sm:$0xff]  ;;  %v9816_v22 = vrot.slane %v9805_v59, %v9803_v56  ;;  %v7264_v26 = vcombine.high %v372_v18, %v376_v20  ;;  %v7263_v56 = vcombine.low %v372_v18, %v376_v20  ;;  %v436_v18 = vld [vmem:[#allocation5 + $0x390] sm:$0xff] }
  0xac   : > { %v7265_v59 = vcombine.low %v373_v21, %v377_v23 }
  0xae   : > { %1176 = vmatpush2.bf16.msra.mxu0 %v7323_v27  ;;  %1217 = vmatpush2.bf16.msra.mxu1 %v7325_v28  ;;  %v364_v27 = vld [vmem:[#allocation5 + $0x150] sm:$0xff]  ;;  %v7266_v28 = vcombine.high %v373_v21, %v377_v23  ;;  %v437_v23 = vld [vmem:[#allocation5 + $0x398] sm:$0xff] }
  0xaf   : > { %1177 = vmatprep.subr.bf16.mxu0 %v7316_v29  ;;  %1218 = vmatprep.subr.bf16.mxu1 %v7318_v30  ;;  %v368_v29 = vld [vmem:[#allocation5 + $0x170] sm:$0xff]  ;;  %v365_v30 = vld [vmem:[#allocation5 + $0x158] sm:$0xff] }
  0xb0   : > { %v7256_v32 = vcombine.high %v364_v27, %v368_v29  ;;  %v7258_v34 = vcombine.high %v365_v30, %v369_v31  ;;  %v7257_v39 = vcombine.low %v365_v30, %v369_v31  ;;  %v429_v31 = vld [vmem:[#allocation5 + $0x358] sm:$0xff] }
  0xb2   : > { %1178 = vmatpush2.bf16.msra.mxu0 %v7315_v35  ;;  %1219 = vmatpush2.bf16.msra.mxu1 %v7317_v36  ;;  %v360_v35 = vld [vmem:[#allocation5 + $0x130] sm:$0xff]  ;;  %v357_v36 = vld [vmem:[#allocation5 + $0x118] sm:$0xff] }
  0xb3   : > { %1179 = vmatprep.subr.bf16.mxu0 %v7308_v37  ;;  %1220 = vmatprep.subr.bf16.mxu1 %v7310_v38  ;;  %v361_v37 = vld [vmem:[#allocation5 + $0x138] sm:$0xff]  ;;  %v7255_v38 = vcombine.low %v364_v27, %v368_v29  ;;  %v7248_v40 = vcombine.high %v356_v33, %v360_v35  ;;  %v7247_v47 = vcombine.low %v356_v33, %v360_v35  ;;  %v428_v27 = vld [vmem:[#allocation5 + $0x350] sm:$0xff] }
  0xb4   : > { %v7250_v42 = vcombine.high %v357_v36, %v361_v37  ;;  %v420_v33 = vld [vmem:[#allocation5 + $0x310] sm:$0xff] }
  0xb6   : > { %1180 = vmatpush2.bf16.msra.mxu0 %v7307_v43  ;;  %1221 = vmatpush2.bf16.msra.mxu1 %v7309_v44  ;;  %v352_v43 = vld [vmem:[#allocation5 + $0xf0] sm:$0xff]  ;;  %v349_v44 = vld [vmem:[#allocation5 + $0xd8] sm:$0xff] }
  0xb7   : > { %1181 = vmatprep.subr.bf16.mxu0 %v7300_v45  ;;  %1222 = vmatprep.subr.bf16.mxu1 %v7302_v48  ;;  %v353_v45 = vld [vmem:[#allocation5 + $0xf8] sm:$0xff]  ;;  %v7249_v48 = vcombine.low %v357_v36, %v361_v37  ;;  %v7240_v49 = vcombine.high %v348_v41, %v352_v43 }
  0xb8   : > { %v7241_v58 = vcombine.low %v349_v44, %v353_v45  ;;  %v421_v37 = vld [vmem:[#allocation5 + $0x318] sm:$0xff] }
  0xba   : > { %1182 = vmatpush2.bf16.msra.mxu0 %v7299_v52  ;;  %1223 = vmatpush2.bf16.msra.mxu1 %v7301_v53  ;;  %v341_v52 = vld [vmem:[#allocation5 + $0x98] sm:$0xff] }
  0xbb   : > { %1183 = vmatprep.subr.bf16.mxu0 %v7292_v54  ;;  %1224 = vmatprep.subr.bf16.mxu1 %v7294_v57  ;;  %v345_v53 = vld [vmem:[#allocation5 + $0xb8] sm:$0xff]  ;;  %v7239_v54 = vcombine.low %v348_v41, %v352_v43  ;;  %v336_v57 = vld [vmem:[#allocation5 + $0x70] sm:$0xff] }
  0xbc   : > { %v7233_v4 = vcombine.low %v341_v52, %v345_v53  ;;  %v7224_v5 = vcombine.high %v332_v55, %v336_v57  ;;  %v412_v41 = vld [vmem:[#allocation5 + $0x2d0] sm:$0xff] }
  0xbe   : > { %1184 = vmatpush2.bf16.msra.mxu0 %v7291_v62  ;;  %1225 = vmatpush2.bf16.msra.mxu1 %v7293_v63  ;;  %v337_v62 = vld [vmem:[#allocation5 + $0x78] sm:$0xff]  ;;  %v7234_v63 = vcombine.high %v341_v52, %v345_v53 }
  0xbf   : > { %1185 = vmatprep.subr.bf16.mxu0 %v7284_v0  ;;  %1226 = vmatprep.subr.bf16.mxu1 %v7286_v2  ;;  %v7231_v0 = vcombine.low %v340_v50, %v344_v51  ;;  %v328_v2 = vld [vmem:[#allocation5 + $0x30] sm:$0xff]  ;;  %v7225_v12 = vcombine.low %v333_v61, %v337_v62  ;;  %v405_v53 = vld [vmem:[#allocation5 + $0x298] sm:$0xff] }
  0xc0   : > { %v7216_v13 = vcombine.high %v324_v1, %v328_v2  ;;  %v404_v50 = vld [vmem:[#allocation5 + $0x290] sm:$0xff] }
  0xc2   : > { %1186 = vmatpush2.bf16.msra.mxu0 %v7283_v7  ;;  %1227 = vmatpush2.bf16.msra.mxu1 %v7285_v8  ;;  %v329_v7 = vld [vmem:[#allocation5 + $0x38] sm:$0xff]  ;;  %v7226_v8 = vcombine.high %v333_v61, %v337_v62 }
  0xc3   : > { %1187 = vmatprep.subr.bf16.mxu0 %v7276_v9  ;;  %1228 = vmatprep.subr.bf16.mxu1 %v7278_v11  ;;  %v7223_v9 = vcombine.low %v332_v55, %v336_v57  ;;  %v448_v11 = vld [vmem:[#allocation5 + $0x3f0] sm:$0xff]  ;;  %v7217_v20 = vcombine.low %v325_v6, %v329_v7 }
  0xc4   : > { %v7336_v21 = vcombine.high %v444_v10, %v448_v11 }
  0xc6   : > { %1188 = vmatpush2.bf16.msra.mxu0 %v7275_v15  ;;  %1229 = vmatpush2.bf16.msra.mxu1 %v7277_v16  ;;  %v449_v15 = vld [vmem:[#allocation5 + $0x3f8] sm:$0xff]  ;;  %v7218_v16 = vcombine.high %v325_v6, %v329_v7 }
  0xc7   : > { %1239 = vmatprep.subr.bf16.mxu0 %v7272_v17  ;;  %1280 = vmatprep.subr.bf16.mxu1 %v7274_v19  ;;  %v7215_v17 = vcombine.low %v324_v1, %v328_v2  ;;  %v440_v19 = vld [vmem:[#allocation5 + $0x3b0] sm:$0xff]  ;;  %v7337_v29 = vcombine.low %v445_v14, %v449_v15 }
  0xc8   : > { %v7328_v30 = vcombine.high %v436_v18, %v440_v19 }
  0xc9   : > { %1190 = vmatmul.mubr.bf16.vlgmr.msra.gmra.mxu0 %v9816_v22  ;;  %1231 = vmatmul.mubr.bf16.vlgmr.msra.gmra.mxu1 %v9816_v22 }
  0xca   : > { %1240 = vmatpush1.bf16.msra.mxu0 %v7271_v24  ;;  %1281 = vmatpush1.bf16.msra.mxu1 %v7273_v25  ;;  %v441_v24 = vld [vmem:[#allocation5 + $0x3b8] sm:$0xff]  ;;  %v7338_v25 = vcombine.high %v445_v14, %v449_v15 }
  0xcb   : > { %1241 = vmatprep.subr.bf16.mxu0 %v7264_v26  ;;  %1282 = vmatprep.subr.bf16.mxu1 %v7266_v28  ;;  %v7335_v26 = vcombine.low %v444_v10, %v448_v11  ;;  %v432_v28 = vld [vmem:[#allocation5 + $0x370] sm:$0xff]  ;;  %v7329_v35 = vcombine.low %v437_v23, %v441_v24  ;;  %v8209_v15 = vld [vmem:[%s9794_s27 + $0x2a4] ss:$48 sps:$4 sm:$0xff]  }
  0xcc   : > { %1271 = vmatprep.mubr.bf16.mxu0 %v9810_v3  ;;  %1312 = vmatprep.mubr.bf16.mxu1 %v9810_v3  ;;  %v7242_v3 = vcombine.high %v349_v44, %v353_v45  ;;  %v7320_v36 = vcombine.high %v428_v27, %v432_v28  ;;  %v413_v45 = vld [vmem:[#allocation5 + $0x2d8] sm:$0xff] }
  0xce   : > { %1242 = vmatpush1.bf16.msra.mxu0 %v7263_v56  ;;  %1283 = vmatpush1.bf16.msra.mxu1 %v7265_v59  ;;  %v433_v56 = vld [vmem:[#allocation5 + $0x378] sm:$0xff]  ;;  %v7330_v59 = vcombine.high %v437_v23, %v441_v24 }
  0xcf   : > { %1243 = vmatprep.subr.bf16.mxu0 %v7256_v32  ;;  %1284 = vmatprep.subr.bf16.mxu1 %v7258_v34  ;;  %v7327_v32 = vcombine.low %v436_v18, %v440_v19  ;;  %v424_v34 = vld [vmem:[#allocation5 + $0x330] sm:$0xff]  ;;  %v7321_v43 = vcombine.low %v429_v31, %v433_v56  ;;  %v8207_v19 = vld [vmem:[%s9794_s27 + $0x2a0] ss:$48 sps:$4 sm:$0xff]   ;;  %v8218_v23 = vld [vmem:[%s9794_s27 + $0x844] ss:$48 sps:$4 sm:$0xff]  }
  0xd0   : > { %v7312_v44 = vcombine.high %v420_v33, %v424_v34  ;;  %v8213_v24 = vld [vmem:[%s9794_s27 + $0x240] ss:$48 sps:$4 sm:$0xff]  }
  0xd2   : > { %1244 = vmatpush1.bf16.msra.mxu0 %v7255_v38  ;;  %1285 = vmatpush1.bf16.msra.mxu1 %v7257_v39  ;;  %v425_v38 = vld [vmem:[#allocation5 + $0x338] sm:$0xff]  ;;  %v7322_v39 = vcombine.high %v429_v31, %v433_v56 }
  0xd3   : > { %1245 = vmatprep.subr.bf16.mxu0 %v7248_v40  ;;  %1286 = vmatprep.subr.bf16.mxu1 %v7250_v42  ;;  %v7319_v40 = vcombine.low %v428_v27, %v432_v28  ;;  %v416_v42 = vld [vmem:[#allocation5 + $0x2f0] sm:$0xff]  ;;  %v7313_v51 = vcombine.low %v421_v37, %v425_v38  ;;  %v8224_v27 = vld [vmem:[%s9794_s27 + $0x7e4] ss:$48 sps:$4 sm:$0xff]   ;;  %v8219_v28 = vld [vmem:[%s9794_s27 + $0x1e0] ss:$48 sps:$4 sm:$0xff]  }
  0xd4   : > { %v7304_v52 = vcombine.high %v412_v41, %v416_v42  ;;  %v7303_v57 = vcombine.low %v412_v41, %v416_v42  ;;  %v8230_v31 = vld [vmem:[%s9794_s27 + $0x784] ss:$48 sps:$4 sm:$0xff]   ;;  %v8228_v56 = vld [vmem:[%s9794_s27 + $0x780] ss:$48 sps:$4 sm:$0xff]  }
  0xd5   : > { %v8243_v41 = vld [vmem:[%s9794_s27 + $0x60] ss:$48 sps:$4 sm:$0xff]  }
  0xd6   : > { %1246 = vmatpush1.bf16.msra.mxu0 %v7247_v47  ;;  %1287 = vmatpush1.bf16.msra.mxu1 %v7249_v48  ;;  %v417_v47 = vld [vmem:[#allocation5 + $0x2f8] sm:$0xff]  ;;  %v7314_v48 = vcombine.high %v421_v37, %v425_v38 }
  0xd7   : > { %1247 = vmatprep.subr.bf16.mxu0 %v7240_v49  ;;  %1288 = vmatprep.subr.bf16.mxu1 %v7242_v3  ;;  %v7311_v49 = vcombine.low %v420_v33, %v424_v34  ;;  %v408_v3 = vld [vmem:[#allocation5 + $0x2b0] sm:$0xff]  ;;  %v7306_v55 = vcombine.high %v413_v45, %v417_v47  ;;  %v7305_v61 = vcombine.low %v413_v45, %v417_v47  ;;  %v8231_v33 = vld [vmem:[%s9794_s27 + $0x120] ss:$48 sps:$4 sm:$0xff]  }
  0xd8   : > { %v7296_v62 = vcombine.high %v404_v50, %v408_v3  ;;  %v7295_v2 = vcombine.low %v404_v50, %v408_v3  ;;  %v8234_v34 = vld [vmem:[%s9794_s27 + $0x720] ss:$48 sps:$4 sm:$0xff]  }
  0xd9   : > { %v8237_v37 = vld [vmem:[%s9794_s27 + $0xc0] ss:$48 sps:$4 sm:$0xff]  }
  0xda   : > { %1248 = vmatpush1.bf16.msra.mxu0 %v7239_v54  ;;  %1289 = vmatpush1.bf16.msra.mxu1 %v7241_v58  ;;  %v409_v54 = vld [vmem:[#allocation5 + $0x2b8] sm:$0xff]  ;;  %v396_v58 = vld [vmem:[#allocation5 + $0x250] sm:$0xff] }
  0xdb   : > { %1249 = vmatprep.subr.bf16.mxu0 %v7232_v60  ;;  %1290 = vmatprep.subr.bf16.mxu1 %v7234_v63  ;;  %v400_v60 = vld [vmem:[#allocation5 + $0x270] sm:$0xff]  ;;  %v397_v63 = vld [vmem:[#allocation5 + $0x258] sm:$0xff]  ;;  %v7298_v1 = vcombine.high %v405_v53, %v409_v54  ;;  %v7297_v6 = vcombine.low %v405_v53, %v409_v54 }
  0xdc   : > { %v7288_v7 = vcombine.high %v396_v58, %v400_v60  ;;  %v7287_v11 = vcombine.low %v396_v58, %v400_v60  ;;  %v8240_v38 = vld [vmem:[%s9794_s27 + $0x6c0] ss:$48 sps:$4 sm:$0xff]  }
  0xdd   : > { %v8246_v42 = vld [vmem:[%s9794_s27 + $0x660] ss:$48 sps:$4 sm:$0xff]  }
  0xde   : > { %1250 = vmatpush1.bf16.msra.mxu0 %v7231_v0  ;;  %1291 = vmatpush1.bf16.msra.mxu1 %v7233_v4  ;;  %v401_v0 = vld [vmem:[#allocation5 + $0x278] sm:$0xff]  ;;  %v388_v4 = vld [vmem:[#allocation5 + $0x210] sm:$0xff] }
  0xdf   : > { %1251 = vmatprep.subr.bf16.mxu0 %v7224_v5  ;;  %1292 = vmatprep.subr.bf16.mxu1 %v7226_v8  ;;  %v392_v5 = vld [vmem:[#allocation5 + $0x230] sm:$0xff]  ;;  %v389_v8 = vld [vmem:[#allocation5 + $0x218] sm:$0xff]  ;;  %v7290_v10 = vcombine.high %v397_v63, %v401_v0 }
  0xe0   : > { %v8249_v45 = vld [vmem:[%s9794_s27] ss:$48 sps:$4 sm:$0xff]  }
  0xe1   : > { %v8252_v47 = vld [vmem:[%s9794_s27 + $0x600] ss:$48 sps:$4 sm:$0xff]  }
  0xe2   : > { %1252 = vmatpush1.bf16.msra.mxu0 %v7223_v9  ;;  %1293 = vmatpush1.bf16.msra.mxu1 %v7225_v12  ;;  %v393_v9 = vld [vmem:[#allocation5 + $0x238] sm:$0xff]  ;;  %v7289_v12 = vcombine.low %v397_v63, %v401_v0 }
  0xe3   : > { %1253 = vmatprep.subr.bf16.mxu0 %v7216_v13  ;;  %1294 = vmatprep.subr.bf16.mxu1 %v7218_v16  ;;  %v7280_v13 = vcombine.high %v388_v4, %v392_v5  ;;  %v7282_v14 = vcombine.high %v389_v8, %v393_v9  ;;  %v7279_v16 = vcombine.low %v388_v4, %v392_v5  ;;  %v8255_v50 = vld [vmem:[%s9794_s27 + $0x5a0] ss:$48 sps:$4 sm:$0xff]  }
  0xe4   : > { %v7281_v18 = vcombine.low %v389_v8, %v393_v9  ;;  %v8258_v3 = vld [vmem:[%s9794_s27 + $0xba0] ss:$48 sps:$4 sm:$0xff]  }
  0xe5   : > { %v8261_v53 = vld [vmem:[%s9794_s27 + $0x540] ss:$48 sps:$4 sm:$0xff]  }
  0xe6   : > { %1254 = vmatpush1.bf16.msra.mxu0 %v7215_v17  ;;  %1295 = vmatpush1.bf16.msra.mxu1 %v7217_v20  ;;  %v8212_v17 = vld [vmem:[%s9794_s27 + $0x8a4] ss:$48 sps:$4 sm:$0xff]   ;;  %v8210_v20 = vld [vmem:[%s9794_s27 + $0x8a0] ss:$48 sps:$4 sm:$0xff]  }
  0xe7   : > { %1255 = vmatprep.subr.bf16.mxu0 %v7336_v21  ;;  %1296 = vmatprep.subr.bf16.mxu1 %v7338_v25  ;;  %v8215_v21 = vld [vmem:[%s9794_s27 + $0x244] ss:$48 sps:$4 sm:$0xff]   ;;  %v8216_v25 = vld [vmem:[%s9794_s27 + $0x840] ss:$48 sps:$4 sm:$0xff]  }
  0xe8   : > { %v8264_v54 = vld [vmem:[%s9794_s27 + $0xb40] ss:$48 sps:$4 sm:$0xff]  }
  0xe9   : > { %v8267_v58 = vld [vmem:[%s9794_s27 + $0x4e0] ss:$48 sps:$4 sm:$0xff]  }
  0xea   : > { %1256 = vmatpush2.bf16.msra.mxu0 %v7335_v26  ;;  %1297 = vmatpush2.bf16.msra.mxu1 %v7337_v29  ;;  %v8221_v26 = vld [vmem:[%s9794_s27 + $0x1e4] ss:$48 sps:$4 sm:$0xff]   ;;  %v8222_v29 = vld [vmem:[%s9794_s27 + $0x7e0] ss:$48 sps:$4 sm:$0xff]  }
  0xeb   : > { %1257 = vmatprep.subr.bf16.mxu0 %v7328_v30  ;;  %1298 = vmatprep.subr.bf16.mxu1 %v7330_v59  ;;  %v8227_v30 = vld [vmem:[%s9794_s27 + $0x184] ss:$48 sps:$4 sm:$0xff]   ;;  %v8270_v60 = vld [vmem:[%s9794_s27 + $0xae0] ss:$48 sps:$4 sm:$0xff]  }
  0xec   : > { %v8233_v59 = vld [vmem:[%s9794_s27 + $0x124] ss:$48 sps:$4 sm:$0xff]   ;;  %v8273_v63 = vld [vmem:[%s9794_s27 + $0x480] ss:$48 sps:$4 sm:$0xff]  }
  0xed   : > { %v8276_v0 = vld [vmem:[%s9794_s27 + $0xa80] ss:$48 sps:$4 sm:$0xff]  }
  0xee   : > { %1258 = vmatpush2.bf16.msra.mxu0 %v7327_v32  ;;  %1299 = vmatpush2.bf16.msra.mxu1 %v7329_v35  ;;  %v8236_v32 = vld [vmem:[%s9794_s27 + $0x724] ss:$48 sps:$4 sm:$0xff]   ;;  %v8279_v4 = vld [vmem:[%s9794_s27 + $0x420] ss:$48 sps:$4 sm:$0xff]  }
  0xef   : > { %1259 = vmatprep.subr.bf16.mxu0 %v7320_v36  ;;  %1300 = vmatprep.subr.bf16.mxu1 %v7322_v39  ;;  %v8239_v35 = vld [vmem:[%s9794_s27 + $0xc4] ss:$48 sps:$4 sm:$0xff]   ;;  %v8282_v5 = vld [vmem:[%s9794_s27 + $0xa20] ss:$48 sps:$4 sm:$0xff]  }
  0xf0   : > { %v8242_v36 = vld [vmem:[%s9794_s27 + $0x6c4] ss:$48 sps:$4 sm:$0xff]   ;;  %v8285_v8 = vld [vmem:[%s9794_s27 + $0x3c0] ss:$48 sps:$4 sm:$0xff]  }
  0xf1   : > { %v8245_v39 = vld [vmem:[%s9794_s27 + $0x64] ss:$48 sps:$4 sm:$0xff]   ;;  %v8288_v9 = vld [vmem:[%s9794_s27 + $0x9c0] ss:$48 sps:$4 sm:$0xff]  }
  0xf2   : > { %1260 = vmatpush2.bf16.msra.mxu0 %v7319_v40  ;;  %1301 = vmatpush2.bf16.msra.mxu1 %v7321_v43  ;;  %v8248_v40 = vld [vmem:[%s9794_s27 + $0x664] ss:$48 sps:$4 sm:$0xff]  }
  0xf3   : > { %1261 = vmatprep.subr.bf16.mxu0 %v7312_v44  ;;  %1302 = vmatprep.subr.bf16.mxu1 %v7314_v48  ;;  %v8251_v43 = vld [vmem:[%s9794_s27 + $0x4] ss:$48 sps:$4 sm:$0xff]  }
  0xf4   : > { %v8254_v44 = vld [vmem:[%s9794_s27 + $0x604] ss:$48 sps:$4 sm:$0xff]  }
  0xf5   : > { %v8257_v48 = vld [vmem:[%s9794_s27 + $0x5a4] ss:$48 sps:$4 sm:$0xff]  }
  0xf6   : > { %1262 = vmatpush2.bf16.msra.mxu0 %v7311_v49  ;;  %1303 = vmatpush2.bf16.msra.mxu1 %v7313_v51  ;;  %v8260_v49 = vld [vmem:[%s9794_s27 + $0xba4] ss:$48 sps:$4 sm:$0xff]  }
  0xf7   : > { %1263 = vmatprep.subr.bf16.mxu0 %v7304_v52  ;;  %1304 = vmatprep.subr.bf16.mxu1 %v7306_v55  ;;  %v8263_v51 = vld [vmem:[%s9794_s27 + $0x544] ss:$48 sps:$4 sm:$0xff]  }
  0xf8   : > { %v8266_v52 = vld [vmem:[%s9794_s27 + $0xb44] ss:$48 sps:$4 sm:$0xff]  }
  0xf9   : > { %v8269_v55 = vld [vmem:[%s9794_s27 + $0x4e4] ss:$48 sps:$4 sm:$0xff]  }
  0xfa   : > { %1264 = vmatpush2.bf16.msra.mxu0 %v7303_v57  ;;  %1305 = vmatpush2.bf16.msra.mxu1 %v7305_v61  ;;  %v8272_v57 = vld [vmem:[%s9794_s27 + $0xae4] ss:$48 sps:$4 sm:$0xff]  }
  0xfb   : > { %1265 = vmatprep.subr.bf16.mxu0 %v7296_v62  ;;  %1306 = vmatprep.subr.bf16.mxu1 %v7298_v1  ;;  %v8275_v61 = vld [vmem:[%s9794_s27 + $0x484] ss:$48 sps:$4 sm:$0xff]  }
  0xfc   : > { %v8278_v62 = vld [vmem:[%s9794_s27 + $0xa84] ss:$48 sps:$4 sm:$0xff]  }
  0xfd   : > { %v8281_v1 = vld [vmem:[%s9794_s27 + $0x424] ss:$48 sps:$4 sm:$0xff]  }
  0xfe   : > { %1266 = vmatpush2.bf16.msra.mxu0 %v7295_v2  ;;  %1307 = vmatpush2.bf16.msra.mxu1 %v7297_v6  ;;  %v8284_v2 = vld [vmem:[%s9794_s27 + $0xa24] ss:$48 sps:$4 sm:$0xff]  }
  0xff   : > { %1267 = vmatprep.subr.bf16.mxu0 %v7288_v7  ;;  %1308 = vmatprep.subr.bf16.mxu1 %v7290_v10  ;;  %v8287_v6 = vld [vmem:[%s9794_s27 + $0x3c4] ss:$48 sps:$4 sm:$0xff]  }
 0x100   : > { %v8290_v7 = vld [vmem:[%s9794_s27 + $0x9c4] ss:$48 sps:$4 sm:$0xff]  }
 0x101   : > { %v8293_v10 = vld [vmem:[%s9794_s27 + $0x364] ss:$48 sps:$4 sm:$0xff]  }
 0x102   : > { %1268 = vmatpush2.bf16.msra.mxu0 %v7287_v11  ;;  %1309 = vmatpush2.bf16.msra.mxu1 %v7289_v12  ;;  %v8296_v11 = vld [vmem:[%s9794_s27 + $0x964] ss:$48 sps:$4 sm:$0xff]   ;;  %v8291_v12 = vld [vmem:[%s9794_s27 + $0x360] ss:$48 sps:$4 sm:$0xff]  }
 0x103   : > { %1269 = vmatprep.subr.bf16.mxu0 %v7280_v13  ;;  %1310 = vmatprep.subr.bf16.mxu1 %v7282_v14  ;;  %v8294_v13 = vld [vmem:[%s9794_s27 + $0x960] ss:$48 sps:$4 sm:$0xff]   ;;  %v8299_v14 = vld [vmem:[%s9794_s27 + $0x304] ss:$48 sps:$4 sm:$0xff]  }
 0x106   : > { %1270 = vmatpush2.bf16.msra.mxu0 %v7279_v16  ;;  %1311 = vmatpush2.bf16.msra.mxu1 %v7281_v18  ;;  %v8297_v16 = vld [vmem:[%s9794_s27 + $0x300] ss:$48 sps:$4 sm:$0xff]   ;;  %v8305_v18 = vld [vmem:[%s9794_s27 + $0xea4] ss:$48 sps:$4 sm:$0xff]  }
 0x107   : > { %6009 = vmatprep.subr.bf16.mxu0 %v8209_v15  ;;  %6050 = vmatprep.subr.bf16.mxu1 %v8212_v17  ;;  %v8302_v15 = vld [vmem:[%s9794_s27 + $0x904] ss:$48 sps:$4 sm:$0xff]   ;;  %v8300_v17 = vld [vmem:[%s9794_s27 + $0x900] ss:$48 sps:$4 sm:$0xff]  }
 0x109   : > { %1272 = vmatmul.mubr.bf16.vlgmr.msra.gmra.mxu0 %v9816_v22  ;;  %1313 = vmatmul.mubr.bf16.vlgmr.msra.gmra.mxu1 %v9816_v22  ;;  %v8225_v22 = vld [vmem:[%s9794_s27 + $0x180] ss:$48 sps:$4 sm:$0xff]  }
 0x10a   : > { %6010 = vmatpush1.bf16.msra.mxu0 %v8207_v19  ;;  %6051 = vmatpush1.bf16.msra.mxu1 %v8210_v20  ;;  %v8308_v19 = vld [vmem:[%s9794_s27 + $0x14a4] ss:$48 sps:$4 sm:$0xff]   ;;  %v9890_v20 = vld [vmem:[#allocation7] sm:$0xff] }
 0x10b   : > { %6011 = vmatprep.subr.bf16.mxu0 %v8215_v21  ;;  %6052 = vmatprep.subr.bf16.mxu1 %v8218_v23  ;;  %v9893_v21 = vsub.s32 0, %v9800_v46  ;;  %v9896_v23 = vsub.s32 2, %v9800_v46 }
 0x10e   : > { %6012 = vmatpush1.bf16.msra.mxu0 %v8213_v24  ;;  %6053 = vmatpush1.bf16.msra.mxu1 %v8216_v25  ;;  %v9899_v24 = vsub.s32 1, %v9800_v46  ;;  %v9902_v25 = vsub.s32 3, %v9800_v46 }
 0x10f   : > { %6013 = vmatprep.subr.bf16.mxu0 %v8221_v26  ;;  %6054 = vmatprep.subr.bf16.mxu1 %v8224_v27  ;;  %v455_v26 = vrot.slane %v9890_v20, %v9893_v21  ;;  %v463_v27 = vrot.slane %v9890_v20, %v9896_v23 }
 0x112   : > { %6014 = vmatpush1.bf16.msra.mxu0 %v8219_v28  ;;  %6055 = vmatpush1.bf16.msra.mxu1 %v8222_v29  ;;  %v459_v28 = vrot.slane %v9890_v20, %v9899_v24 }
 0x113   : > { %6015 = vmatprep.subr.bf16.mxu0 %v8227_v30  ;;  %6056 = vmatprep.subr.bf16.mxu1 %v8230_v31  ;;  %v467_v30 = vrot.slane %v9890_v20, %v9902_v25 }
 0x116   : > { %6016 = vmatpush1.bf16.msra.mxu0 %v8225_v22  ;;  %6057 = vmatpush1.bf16.msra.mxu1 %v8228_v56 }
 0x117   : > { %6017 = vmatprep.subr.bf16.mxu0 %v8233_v59  ;;  %6058 = vmatprep.subr.bf16.mxu1 %v8236_v32 }
 0x11a   : > { %6018 = vmatpush1.bf16.msra.mxu0 %v8231_v33  ;;  %6059 = vmatpush1.bf16.msra.mxu1 %v8234_v34 }
 0x11b   : > { %6019 = vmatprep.subr.bf16.mxu0 %v8239_v35  ;;  %6060 = vmatprep.subr.bf16.mxu1 %v8242_v36 }
 0x11e   : > { %6020 = vmatpush1.bf16.msra.mxu0 %v8237_v37  ;;  %6061 = vmatpush1.bf16.msra.mxu1 %v8240_v38 }
 0x11f   : > { %6021 = vmatprep.subr.bf16.mxu0 %v8245_v39  ;;  %6062 = vmatprep.subr.bf16.mxu1 %v8248_v40  ;;  %v8303_v40 = vld [vmem:[%s9794_s27 + $0xea0] ss:$48 sps:$4 sm:$0xff]  }
 0x122   : > { %6022 = vmatpush1.bf16.msra.mxu0 %v8243_v41  ;;  %6063 = vmatpush1.bf16.msra.mxu1 %v8246_v42 }
 0x123   : > { %6023 = vmatprep.subr.bf16.mxu0 %v8251_v43  ;;  %6064 = vmatprep.subr.bf16.mxu1 %v8254_v44  ;;  %v8306_v43 = vld [vmem:[%s9794_s27 + $0x14a0] ss:$48 sps:$4 sm:$0xff]   ;;  %v8311_v44 = vld [vmem:[%s9794_s27 + $0xe44] ss:$48 sps:$4 sm:$0xff]  }
 0x126   : > { %6024 = vmatpush1.bf16.msra.mxu0 %v8249_v45  ;;  %6065 = vmatpush1.bf16.msra.mxu1 %v8252_v47 }
 0x127   : > { %6025 = vmatprep.subr.bf16.mxu0 %v8257_v48  ;;  %6066 = vmatprep.subr.bf16.mxu1 %v8260_v49 }
 0x12a   : > { %6026 = vmatpush2.bf16.msra.mxu0 %v8255_v50  ;;  %6067 = vmatpush2.bf16.msra.mxu1 %v8258_v3  ;;  %v8309_v3 = vld [vmem:[%s9794_s27 + $0xe40] ss:$48 sps:$4 sm:$0xff]  }
 0x12b   : > { %6027 = vmatprep.subr.bf16.mxu0 %v8263_v51  ;;  %6068 = vmatprep.subr.bf16.mxu1 %v8266_v52  ;;  %v8314_v51 = vld [vmem:[%s9794_s27 + $0x1444] ss:$48 sps:$4 sm:$0xff]   ;;  %v8312_v52 = vld [vmem:[%s9794_s27 + $0x1440] ss:$48 sps:$4 sm:$0xff]  }
 0x12e   : > { %6028 = vmatpush2.bf16.msra.mxu0 %v8261_v53  ;;  %6069 = vmatpush2.bf16.msra.mxu1 %v8264_v54  ;;  %v8317_v53 = vld [vmem:[%s9794_s27 + $0xde4] ss:$48 sps:$4 sm:$0xff]  }
 0x12f   : > { %6029 = vmatprep.subr.bf16.mxu0 %v8269_v55  ;;  %6070 = vmatprep.subr.bf16.mxu1 %v8272_v57  ;;  %v8320_v54 = vld [vmem:[%s9794_s27 + $0x13e4] ss:$48 sps:$4 sm:$0xff]   ;;  %v8315_v55 = vld [vmem:[%s9794_s27 + $0xde0] ss:$48 sps:$4 sm:$0xff]  }
 0x130   : > { %v8318_v57 = vld [vmem:[%s9794_s27 + $0x13e0] ss:$48 sps:$4 sm:$0xff]  }
 0x132   : > { %6030 = vmatpush2.bf16.msra.mxu0 %v8267_v58  ;;  %6071 = vmatpush2.bf16.msra.mxu1 %v8270_v60  ;;  %v8323_v58 = vld [vmem:[%s9794_s27 + $0xd84] ss:$48 sps:$4 sm:$0xff]   ;;  %v8321_v60 = vld [vmem:[%s9794_s27 + $0xd80] ss:$48 sps:$4 sm:$0xff]  }
 0x133   : > { %6031 = vmatprep.subr.bf16.mxu0 %v8275_v61  ;;  %6072 = vmatprep.subr.bf16.mxu1 %v8278_v62  ;;  %v8326_v61 = vld [vmem:[%s9794_s27 + $0x1384] ss:$48 sps:$4 sm:$0xff]   ;;  %v8324_v62 = vld [vmem:[%s9794_s27 + $0x1380] ss:$48 sps:$4 sm:$0xff]  }
 0x136   : > { %6032 = vmatpush2.bf16.msra.mxu0 %v8273_v63  ;;  %6073 = vmatpush2.bf16.msra.mxu1 %v8276_v0  ;;  %v8329_v63 = vld [vmem:[%s9794_s27 + $0xd24] ss:$48 sps:$4 sm:$0xff]   ;;  %v8327_v0 = vld [vmem:[%s9794_s27 + $0xd20] ss:$48 sps:$4 sm:$0xff]  }
 0x137   : > { %6033 = vmatprep.subr.bf16.mxu0 %v8281_v1  ;;  %6074 = vmatprep.subr.bf16.mxu1 %v8284_v2  ;;  %v8332_v1 = vld [vmem:[%s9794_s27 + $0x1324] ss:$48 sps:$4 sm:$0xff]   ;;  %v8330_v2 = vld [vmem:[%s9794_s27 + $0x1320] ss:$48 sps:$4 sm:$0xff]  }
 0x13a   : > { %6034 = vmatpush2.bf16.msra.mxu0 %v8279_v4  ;;  %6075 = vmatpush2.bf16.msra.mxu1 %v8282_v5  ;;  %v8335_v4 = vld [vmem:[%s9794_s27 + $0xcc4] ss:$48 sps:$4 sm:$0xff]   ;;  %v8333_v5 = vld [vmem:[%s9794_s27 + $0xcc0] ss:$48 sps:$4 sm:$0xff]  }
 0x13b   : > { %6035 = vmatprep.subr.bf16.mxu0 %v8287_v6  ;;  %6076 = vmatprep.subr.bf16.mxu1 %v8290_v7  ;;  %v8338_v6 = vld [vmem:[%s9794_s27 + $0x12c4] ss:$48 sps:$4 sm:$0xff]   ;;  %v8336_v7 = vld [vmem:[%s9794_s27 + $0x12c0] ss:$48 sps:$4 sm:$0xff]  }
 0x13e   : > { %6036 = vmatpush2.bf16.msra.mxu0 %v8285_v8  ;;  %6077 = vmatpush2.bf16.msra.mxu1 %v8288_v9  ;;  %v8341_v8 = vld [vmem:[%s9794_s27 + $0xc64] ss:$48 sps:$4 sm:$0xff]   ;;  %v8339_v9 = vld [vmem:[%s9794_s27 + $0xc60] ss:$48 sps:$4 sm:$0xff]  }
 0x13f   : > { %6037 = vmatprep.subr.bf16.mxu0 %v8293_v10  ;;  %6078 = vmatprep.subr.bf16.mxu1 %v8296_v11  ;;  %v8344_v10 = vld [vmem:[%s9794_s27 + $0x1264] ss:$48 sps:$4 sm:$0xff]   ;;  %v8342_v11 = vld [vmem:[%s9794_s27 + $0x1260] ss:$48 sps:$4 sm:$0xff]  }
 0x142   : > { %6038 = vmatpush2.bf16.msra.mxu0 %v8291_v12  ;;  %6079 = vmatpush2.bf16.msra.mxu1 %v8294_v13  ;;  %v8347_v12 = vld [vmem:[%s9794_s27 + $0xc04] ss:$48 sps:$4 sm:$0xff]   ;;  %v8345_v13 = vld [vmem:[%s9794_s27 + $0xc00] ss:$48 sps:$4 sm:$0xff]  }
 0x143   : > { %6039 = vmatprep.subr.bf16.mxu0 %v8299_v14  ;;  %6080 = vmatprep.subr.bf16.mxu1 %v8302_v15  ;;  %v8350_v14 = vld [vmem:[%s9794_s27 + $0x1204] ss:$48 sps:$4 sm:$0xff]   ;;  %v8348_v15 = vld [vmem:[%s9794_s27 + $0x1200] ss:$48 sps:$4 sm:$0xff]  }
 0x146   : > { %6040 = vmatpush2.bf16.msra.mxu0 %v8297_v16  ;;  %6081 = vmatpush2.bf16.msra.mxu1 %v8300_v17  ;;  %v8353_v16 = vld [vmem:[%s9794_s27 + $0x11a4] ss:$48 sps:$4 sm:$0xff]   ;;  %v8351_v17 = vld [vmem:[%s9794_s27 + $0x11a0] ss:$48 sps:$4 sm:$0xff]  }
 0x147   : > { %6091 = vmatprep.subr.bf16.mxu0 %v8305_v18  ;;  %6132 = vmatprep.subr.bf16.mxu1 %v8308_v19  ;;  %v8356_v18 = vld [vmem:[%s9794_s27 + $0x17a4] ss:$48 sps:$4 sm:$0xff]   ;;  %v8354_v19 = vld [vmem:[%s9794_s27 + $0x17a0] ss:$48 sps:$4 sm:$0xff]  }
 0x189   : > { %v1191_v29 = vpop.f32.mrf.mxu0  ;;  %v1232_v22 = vpop.f32.mrf.mxu1 }
 0x18a   : > { %v1192_v31 = vadd.f32 %v1191_v29, %v455_v26  ;;  %v1233_v56 = vadd.f32 %v1232_v22, %v463_v27  ;;  %v8359_v26 = vld [vmem:[%s9794_s27 + $0x1144] ss:$48 sps:$4 sm:$0xff]   ;;  %v8357_v27 = vld [vmem:[%s9794_s27 + $0x1140] ss:$48 sps:$4 sm:$0xff]  }
 0x18b   : > { %v1193_v59 = vpop.f32.mrf.mxu0  ;;  %v1234_v33 = vpop.f32.mrf.mxu1  ;;  %v8360_v29 = vld [vmem:[%s9794_s27 + $0x1740] ss:$48 sps:$4 sm:$0xff]   ;;  %v8368_v22 = vld [vmem:[%s9794_s27 + $0x16e4] ss:$48 sps:$4 sm:$0xff]  }
 0x18c   : > { %v1194_v32 = vadd.f32 %v1193_v59, %v459_v28  ;;  %v1321_v34 = vmax.f32 %v1192_v31, 0.0  ;;  %v1323_v35 = vmax.f32 %v1233_v56, 0.0  ;;  %v1235_v36 = vadd.f32 %v1234_v33, %v467_v30  ;;  %v8362_v28 = vld [vmem:[%s9794_s27 + $0x1744] ss:$48 sps:$4 sm:$0xff]   ;;  %v8363_v31 = vld [vmem:[%s9794_s27 + $0x10e0] ss:$48 sps:$4 sm:$0xff]  }
 0x18d   : > { %v1195_v37 = vpop.f32.mrf.mxu0  ;;  %v1236_v39 = vpop.f32.mrf.mxu1  ;;  %v8365_v30 = vld [vmem:[%s9794_s27 + $0x10e4] ss:$48 sps:$4 sm:$0xff]   ;;  %v8366_v56 = vld [vmem:[%s9794_s27 + $0x16e0] ss:$48 sps:$4 sm:$0xff]  }
 0x18e   : > { %v1322_v38 = vmax.f32 %v1194_v32, 0.0  ;;  %v1324_v41 = vmax.f32 %v1235_v36, 0.0  ;;  %v9915_v45 = vpack.c.bf16 %v1323_v35, %v1323_v35  ;;  %v9919_v49 = vpack.c.bf16 %v1321_v34, %v1321_v34  ;;  %v8371_v59 = vld [vmem:[%s9794_s27 + $0x1084] ss:$48 sps:$4 sm:$0xff]   ;;  %v8369_v32 = vld [vmem:[%s9794_s27 + $0x1080] ss:$48 sps:$4 sm:$0xff]  }
 0x18f   : > { %v1196_v42 = vpop.f32.mrf.mxu0  ;;  %v1237_v48 = vpop.f32.mrf.mxu1  ;;  %v8374_v33 = vld [vmem:[%s9794_s27 + $0x1684] ss:$48 sps:$4 sm:$0xff]   ;;  %v8372_v34 = vld [vmem:[%s9794_s27 + $0x1680] ss:$48 sps:$4 sm:$0xff]  }
 0x190   : > { %v9917_v47 = vpack.c.bf16 %v1322_v38, %v1322_v38  ;;  %v9921_v50 = vpack.c.bf16 %v1324_v41, %v1324_v41  ;;  %v8377_v35 = vld [vmem:[%s9794_s27 + $0x1024] ss:$48 sps:$4 sm:$0xff]   ;;  %v8375_v36 = vld [vmem:[%s9794_s27 + $0x1020] ss:$48 sps:$4 sm:$0xff]   ;;  %v470_v42 = vsub.s32 4, %v9800_v46  ;;  %v474_v48 = vsub.s32 5, %v9800_v46 }
 0x191   : > { %v8380_v37 = vld [vmem:[%s9794_s27 + $0x1624] ss:$48 sps:$4 sm:$0xff]   ;;  %v8378_v38 = vld [vmem:[%s9794_s27 + $0x1620] ss:$48 sps:$4 sm:$0xff]  }
 0x192   : > { %6041 = vmatprep.mubr.bf16.mxu0 %v9917_v47  ;;  %6082 = vmatprep.mubr.bf16.mxu1 %v9921_v50  ;;  %v8383_v39 = vld [vmem:[%s9794_s27 + $0xfc4] ss:$48 sps:$4 sm:$0xff]  }
 0x193   : > { %6042 = vmatmul.mubr.bf16.vlgmr.msra.gmra.mxu0 %v9919_v49  ;;  %6083 = vmatmul.mubr.bf16.vlgmr.msra.gmra.mxu1 %v9915_v45  ;;  %v8386_v41 = vld [vmem:[%s9794_s27 + $0x15c4] ss:$48 sps:$4 sm:$0xff]  }
 0x194   : > { %6092 = vmatpush1.bf16.msra.mxu0 %v8303_v40  ;;  %6133 = vmatpush1.bf16.msra.mxu1 %v8306_v43  ;;  %v8381_v40 = vld [vmem:[%s9794_s27 + $0xfc0] ss:$48 sps:$4 sm:$0xff]  }
 0x195   : > { %6093 = vmatprep.subr.bf16.mxu0 %v8311_v44  ;;  %6134 = vmatprep.subr.bf16.mxu1 %v8314_v51  ;;  %v8384_v43 = vld [vmem:[%s9794_s27 + $0x15c0] ss:$48 sps:$4 sm:$0xff]   ;;  %v478_v44 = vsub.s32 6, %v9800_v46  ;;  %v8392_v51 = vld [vmem:[%s9794_s27 + $0x1564] ss:$48 sps:$4 sm:$0xff]  }
 0x198   : > { %6094 = vmatpush1.bf16.msra.mxu0 %v8309_v3  ;;  %6135 = vmatpush1.bf16.msra.mxu1 %v8312_v52  ;;  %v8389_v3 = vld [vmem:[%s9794_s27 + $0xf64] ss:$48 sps:$4 sm:$0xff]   ;;  %v482_v52 = vsub.s32 7, %v9800_v46 }
 0x199   : > { %6095 = vmatprep.subr.bf16.mxu0 %v8317_v53  ;;  %6136 = vmatprep.subr.bf16.mxu1 %v8320_v54  ;;  %v471_v53 = vrot.slane %v9890_v20, %v470_v42  ;;  %v8387_v54 = vld [vmem:[%s9794_s27 + $0xf60] ss:$48 sps:$4 sm:$0xff]  }
 0x19c   : > { %6096 = vmatpush1.bf16.msra.mxu0 %v8315_v55  ;;  %6137 = vmatpush1.bf16.msra.mxu1 %v8318_v57  ;;  %v479_v55 = vrot.slane %v9890_v20, %v478_v44  ;;  %v475_v57 = vrot.slane %v9890_v20, %v474_v48 }
 0x19d   : > { %6097 = vmatprep.subr.bf16.mxu0 %v8323_v58  ;;  %6138 = vmatprep.subr.bf16.mxu1 %v8326_v61  ;;  %v483_v61 = vrot.slane %v9890_v20, %v482_v52 }
 0x1a0   : > { %6098 = vmatpush1.bf16.msra.mxu0 %v8321_v60  ;;  %6139 = vmatpush1.bf16.msra.mxu1 %v8324_v62  ;;  %v8390_v60 = vld [vmem:[%s9794_s27 + $0x1560] ss:$48 sps:$4 sm:$0xff]   ;;  %v8395_v62 = vld [vmem:[%s9794_s27 + $0xf04] ss:$48 sps:$4 sm:$0xff]  }
 0x1a1   : > { %6099 = vmatprep.subr.bf16.mxu0 %v8329_v63  ;;  %6140 = vmatprep.subr.bf16.mxu1 %v8332_v1  ;;  %v8398_v63 = vld [vmem:[%s9794_s27 + $0x1504] ss:$48 sps:$4 sm:$0xff]  }
 0x1a4   : > { %6100 = vmatpush1.bf16.msra.mxu0 %v8327_v0  ;;  %6141 = vmatpush1.bf16.msra.mxu1 %v8330_v2  ;;  %v8393_v2 = vld [vmem:[%s9794_s27 + $0xf00] ss:$48 sps:$4 sm:$0xff]  }
 0x1a5   : > { %6101 = vmatprep.subr.bf16.mxu0 %v8335_v4  ;;  %6142 = vmatprep.subr.bf16.mxu1 %v8338_v6  ;;  %v8396_v6 = vld [vmem:[%s9794_s27 + $0x1500] ss:$48 sps:$4 sm:$0xff]  }
 0x1a8   : > { %6102 = vmatpush1.bf16.msra.mxu0 %v8333_v5  ;;  %6143 = vmatpush1.bf16.msra.mxu1 %v8336_v7 }
 0x1a9   : > { %6103 = vmatprep.subr.bf16.mxu0 %v8341_v8  ;;  %6144 = vmatprep.subr.bf16.mxu1 %v8344_v10 }
 0x1ac   : > { %6104 = vmatpush1.bf16.msra.mxu0 %v8339_v9  ;;  %6145 = vmatpush1.bf16.msra.mxu1 %v8342_v11 }
 0x1ad   : > { %6105 = vmatprep.subr.bf16.mxu0 %v8347_v12  ;;  %6146 = vmatprep.subr.bf16.mxu1 %v8350_v14  ;;  %v8401_v12 = vld [vmem:[%s9794_s27 + $0x2ac] ss:$48 sps:$4 sm:$0xff]  }
 0x1b0   : > { %6106 = vmatpush1.bf16.msra.mxu0 %v8345_v13  ;;  %6147 = vmatpush1.bf16.msra.mxu1 %v8348_v15  ;;  %v8399_v15 = vld [vmem:[%s9794_s27 + $0x2a8] ss:$48 sps:$4 sm:$0xff]  }
 0x1b1   : > { %6107 = vmatprep.subr.bf16.mxu0 %v8353_v16  ;;  %6148 = vmatprep.subr.bf16.mxu1 %v8356_v18  ;;  %v8404_v16 = vld [vmem:[%s9794_s27 + $0x8ac] ss:$48 sps:$4 sm:$0xff]  }
 0x1b4   : > { %6108 = vmatpush2.bf16.msra.mxu0 %v8351_v17  ;;  %6149 = vmatpush2.bf16.msra.mxu1 %v8354_v19  ;;  %v8402_v19 = vld [vmem:[%s9794_s27 + $0x8a8] ss:$48 sps:$4 sm:$0xff]  }
 0x1b5   : > { %6109 = vmatprep.subr.bf16.mxu0 %v8359_v26  ;;  %6150 = vmatprep.subr.bf16.mxu1 %v8362_v28 }
 0x1b8   : > { %6110 = vmatpush2.bf16.msra.mxu0 %v8357_v27  ;;  %6151 = vmatpush2.bf16.msra.mxu1 %v8360_v29  ;;  %v8407_v29 = vld [vmem:[%s9794_s27 + $0x24c] ss:$48 sps:$4 sm:$0xff]  }
 0x1b9   : > { %6111 = vmatprep.subr.bf16.mxu0 %v8365_v30  ;;  %6152 = vmatprep.subr.bf16.mxu1 %v8368_v22  ;;  %v8405_v22 = vld [vmem:[%s9794_s27 + $0x248] ss:$48 sps:$4 sm:$0xff]  }
 0x1bc   : > { %6112 = vmatpush2.bf16.msra.mxu0 %v8363_v31  ;;  %6153 = vmatpush2.bf16.msra.mxu1 %v8366_v56  ;;  %v8410_v56 = vld [vmem:[%s9794_s27 + $0x84c] ss:$48 sps:$4 sm:$0xff]  }
 0x1bd   : > { %6113 = vmatprep.subr.bf16.mxu0 %v8371_v59  ;;  %6154 = vmatprep.subr.bf16.mxu1 %v8374_v33  ;;  %v8408_v59 = vld [vmem:[%s9794_s27 + $0x848] ss:$48 sps:$4 sm:$0xff]   ;;  %v8416_v33 = vld [vmem:[%s9794_s27 + $0x7ec] ss:$48 sps:$4 sm:$0xff]  }
 0x1c0   : > { %6114 = vmatpush2.bf16.msra.mxu0 %v8369_v32  ;;  %6155 = vmatpush2.bf16.msra.mxu1 %v8372_v34  ;;  %v8413_v32 = vld [vmem:[%s9794_s27 + $0x1ec] ss:$48 sps:$4 sm:$0xff]   ;;  %v8411_v34 = vld [vmem:[%s9794_s27 + $0x1e8] ss:$48 sps:$4 sm:$0xff]  }
 0x1c1   : > { %6115 = vmatprep.subr.bf16.mxu0 %v8377_v35  ;;  %6156 = vmatprep.subr.bf16.mxu1 %v8380_v37  ;;  %v8414_v35 = vld [vmem:[%s9794_s27 + $0x7e8] ss:$48 sps:$4 sm:$0xff]   ;;  %v8422_v37 = vld [vmem:[%s9794_s27 + $0x78c] ss:$48 sps:$4 sm:$0xff]  }
 0x1c4   : > { %6116 = vmatpush2.bf16.msra.mxu0 %v8375_v36  ;;  %6157 = vmatpush2.bf16.msra.mxu1 %v8378_v38  ;;  %v8419_v36 = vld [vmem:[%s9794_s27 + $0x18c] ss:$48 sps:$4 sm:$0xff]   ;;  %v8417_v38 = vld [vmem:[%s9794_s27 + $0x188] ss:$48 sps:$4 sm:$0xff]  }
 0x1c5   : > { %6117 = vmatprep.subr.bf16.mxu0 %v8383_v39  ;;  %6158 = vmatprep.subr.bf16.mxu1 %v8386_v41  ;;  %v8420_v39 = vld [vmem:[%s9794_s27 + $0x788] ss:$48 sps:$4 sm:$0xff]  }
 0x1c6   : > { %v8423_v41 = vld [vmem:[%s9794_s27 + $0x128] ss:$48 sps:$4 sm:$0xff]  }
 0x1c8   : > { %6118 = vmatpush2.bf16.msra.mxu0 %v8381_v40  ;;  %6159 = vmatpush2.bf16.msra.mxu1 %v8384_v43  ;;  %v8425_v40 = vld [vmem:[%s9794_s27 + $0x12c] ss:$48 sps:$4 sm:$0xff]  }
 0x1c9   : > { %v1273_v58 = vpop.f32.mrf.mxu0  ;;  %6119 = vmatprep.subr.bf16.mxu0 %v8389_v3  ;;  %v1314_v1 = vpop.f32.mrf.mxu1  ;;  %6160 = vmatprep.subr.bf16.mxu1 %v8392_v51  ;;  %v8428_v43 = vld [vmem:[%s9794_s27 + $0x72c] ss:$48 sps:$4 sm:$0xff]   ;;  %v8426_v3 = vld [vmem:[%s9794_s27 + $0x728] ss:$48 sps:$4 sm:$0xff]  }
 0x1ca   : > { %v1274_v0 = vadd.f32 %v1273_v58, %v471_v53  ;;  %v1315_v4 = vadd.f32 %v1314_v1, %v479_v55  ;;  %v8431_v51 = vld [vmem:[%s9794_s27 + $0xcc] ss:$48 sps:$4 sm:$0xff]   ;;  %v8429_v53 = vld [vmem:[%s9794_s27 + $0xc8] ss:$48 sps:$4 sm:$0xff]  }
 0x1cb   : > { %v1275_v5 = vpop.f32.mrf.mxu0  ;;  %v1316_v8 = vpop.f32.mrf.mxu1  ;;  %v8432_v55 = vld [vmem:[%s9794_s27 + $0x6c8] ss:$48 sps:$4 sm:$0xff]  }
 0x1cc   : > { %v1276_v7 = vadd.f32 %v1275_v5, %v475_v57  ;;  %6120 = vmatpush2.bf16.msra.mxu0 %v8387_v54  ;;  %v1325_v9 = vmax.f32 %v1274_v0, 0.0  ;;  %v1327_v10 = vmax.f32 %v1315_v4, 0.0  ;;  %v1317_v11 = vadd.f32 %v1316_v8, %v483_v61  ;;  %6161 = vmatpush2.bf16.msra.mxu1 %v8390_v60  ;;  %v8434_v54 = vld [vmem:[%s9794_s27 + $0x6cc] ss:$48 sps:$4 sm:$0xff]   ;;  %v8435_v58 = vld [vmem:[%s9794_s27 + $0x68] ss:$48 sps:$4 sm:$0xff]  }
 0x1cd   : > { %v1277_v20 = vpop.f32.mrf.mxu0  ;;  %6121 = vmatprep.subr.bf16.mxu0 %v8395_v62  ;;  %v1318_v14 = vpop.f32.mrf.mxu1  ;;  %6162 = vmatprep.subr.bf16.mxu1 %v8398_v63  ;;  %v8437_v57 = vld [vmem:[%s9794_s27 + $0x6c] ss:$48 sps:$4 sm:$0xff]   ;;  %v8438_v61 = vld [vmem:[%s9794_s27 + $0x668] ss:$48 sps:$4 sm:$0xff]  }
 0x1ce   : > { %v1326_v13 = vmax.f32 %v1276_v7, 0.0  ;;  %v1328_v17 = vmax.f32 %v1317_v11, 0.0  ;;  %v10006_v26 = vpack.c.bf16 %v1327_v10, %v1327_v10  ;;  %v10011_v30 = vpack.c.bf16 %v1325_v9, %v1325_v9  ;;  %v8440_v60 = vld [vmem:[%s9794_s27 + $0x66c] ss:$48 sps:$4 sm:$0xff]   ;;  %v8441_v63 = vld [vmem:[%s9794_s27 + $0x8] ss:$48 sps:$4 sm:$0xff]  }
 0x1cf   : > { %v1278_v18 = vpop.f32.mrf.mxu0  ;;  %v1319_v28 = vpop.f32.mrf.mxu1  ;;  %v8443_v62 = vld [vmem:[%s9794_s27 + $0xc] ss:$48 sps:$4 sm:$0xff]   ;;  %v8444_v1 = vld [vmem:[%s9794_s27 + $0x608] ss:$48 sps:$4 sm:$0xff]  }
 0x1d0   : > { %v10008_v27 = vpack.c.bf16 %v1326_v13, %v1326_v13  ;;  %6122 = vmatpush2.bf16.msra.mxu0 %v8393_v2  ;;  %v10013_v31 = vpack.c.bf16 %v1328_v17, %v1328_v17  ;;  %6163 = vmatpush2.bf16.msra.mxu1 %v8396_v6  ;;  %v8446_v0 = vld [vmem:[%s9794_s27 + $0x60c] ss:$48 sps:$4 sm:$0xff]   ;;  %v8447_v4 = vld [vmem:[%s9794_s27 + $0x5a8] ss:$48 sps:$4 sm:$0xff]  }
 0x1d1   : > { %6173 = vmatprep.subr.bf16.mxu0 %v8401_v12  ;;  %6214 = vmatprep.subr.bf16.mxu1 %v8404_v16  ;;  %v8449_v2 = vld [vmem:[%s9794_s27 + $0x5ac] ss:$48 sps:$4 sm:$0xff]   ;;  %v8450_v6 = vld [vmem:[%s9794_s27 + $0xba8] ss:$48 sps:$4 sm:$0xff]  }
 0x1d2   : > { %6123 = vmatprep.mubr.bf16.mxu0 %v10008_v27  ;;  %6164 = vmatprep.mubr.bf16.mxu1 %v10013_v31  ;;  %v8452_v5 = vld [vmem:[%s9794_s27 + $0xbac] ss:$48 sps:$4 sm:$0xff]   ;;  %v8453_v8 = vld [vmem:[%s9794_s27 + $0x548] ss:$48 sps:$4 sm:$0xff]  }
 0x1d3   : > { %6124 = vmatmul.mubr.bf16.vlgmr.msra.gmra.mxu0 %v10011_v30  ;;  %6165 = vmatmul.mubr.bf16.vlgmr.msra.gmra.mxu1 %v10006_v26  ;;  %v8455_v7 = vld [vmem:[%s9794_s27 + $0x54c] ss:$48 sps:$4 sm:$0xff]   ;;  %v8456_v10 = vld [vmem:[%s9794_s27 + $0xb48] ss:$48 sps:$4 sm:$0xff]  }
 0x1d4   : > { %6174 = vmatpush1.bf16.msra.mxu0 %v8399_v15  ;;  %6215 = vmatpush1.bf16.msra.mxu1 %v8402_v19  ;;  %v8458_v9 = vld [vmem:[%s9794_s27 + $0xb4c] ss:$48 sps:$4 sm:$0xff]   ;;  %v8459_v20 = vld [vmem:[%s9794_s27 + $0x4e8] ss:$48 sps:$4 sm:$0xff]  }
 0x1d5   : > { %6205 = vmatprep.mubr.bf16.mxu0 %v9917_v47  ;;  %6246 = vmatprep.mubr.bf16.mxu1 %v9921_v50  ;;  %v8461_v11 = vld [vmem:[%s9794_s27 + $0x4ec] ss:$48 sps:$4 sm:$0xff]   ;;  %v8462_v13 = vld [vmem:[%s9794_s27 + $0xae8] ss:$48 sps:$4 sm:$0xff]  }
 0x1d6   : > { %6175 = vmatprep.subr.bf16.mxu0 %v8407_v29  ;;  %6216 = vmatprep.subr.bf16.mxu1 %v8410_v56  ;;  %v8464_v12 = vld [vmem:[%s9794_s27 + $0xaec] ss:$48 sps:$4 sm:$0xff]   ;;  %v8465_v15 = vld [vmem:[%s9794_s27 + $0x488] ss:$48 sps:$4 sm:$0xff]  }
 0x1d7   : > { %v8467_v14 = vld [vmem:[%s9794_s27 + $0x48c] ss:$48 sps:$4 sm:$0xff]   ;;  %v8468_v17 = vld [vmem:[%s9794_s27 + $0xa88] ss:$48 sps:$4 sm:$0xff]  }
 0x1d8   : > { %6176 = vmatpush1.bf16.msra.mxu0 %v8405_v22  ;;  %6217 = vmatpush1.bf16.msra.mxu1 %v8408_v59  ;;  %v8470_v16 = vld [vmem:[%s9794_s27 + $0xa8c] ss:$48 sps:$4 sm:$0xff]   ;;  %v8471_v19 = vld [vmem:[%s9794_s27 + $0x428] ss:$48 sps:$4 sm:$0xff]  }
 0x1d9   : > { %6177 = vmatprep.subr.bf16.mxu0 %v8413_v32  ;;  %6218 = vmatprep.subr.bf16.mxu1 %v8416_v33  ;;  %v8473_v18 = vld [vmem:[%s9794_s27 + $0x42c] ss:$48 sps:$4 sm:$0xff]   ;;  %v8474_v29 = vld [vmem:[%s9794_s27 + $0xa28] ss:$48 sps:$4 sm:$0xff]  }
 0x1da   : > { %v8476_v28 = vld [vmem:[%s9794_s27 + $0xa2c] ss:$48 sps:$4 sm:$0xff]   ;;  %v8477_v56 = vld [vmem:[%s9794_s27 + $0x3c8] ss:$48 sps:$4 sm:$0xff]  }
 0x1db   : > { %v8479_v22 = vld [vmem:[%s9794_s27 + $0x3cc] ss:$48 sps:$4 sm:$0xff]   ;;  %v8480_v32 = vld [vmem:[%s9794_s27 + $0x9c8] ss:$48 sps:$4 sm:$0xff]  }
 0x1dc   : > { %6178 = vmatpush1.bf16.msra.mxu0 %v8411_v34  ;;  %6219 = vmatpush1.bf16.msra.mxu1 %v8414_v35  ;;  %v8482_v59 = vld [vmem:[%s9794_s27 + $0x9cc] ss:$48 sps:$4 sm:$0xff]   ;;  %v8483_v34 = vld [vmem:[%s9794_s27 + $0x368] ss:$48 sps:$4 sm:$0xff]  }
 0x1dd   : > { %6179 = vmatprep.subr.bf16.mxu0 %v8419_v36  ;;  %6220 = vmatprep.subr.bf16.mxu1 %v8422_v37  ;;  %v8485_v33 = vld [vmem:[%s9794_s27 + $0x36c] ss:$48 sps:$4 sm:$0xff]   ;;  %v8486_v36 = vld [vmem:[%s9794_s27 + $0x968] ss:$48 sps:$4 sm:$0xff]  }
 0x1de   : > { %v8488_v35 = vld [vmem:[%s9794_s27 + $0x96c] ss:$48 sps:$4 sm:$0xff]  }
 0x1df   : > { %v8491_v37 = vld [vmem:[%s9794_s27 + $0x30c] ss:$48 sps:$4 sm:$0xff]  }
 0x1e0   : > { %6180 = vmatpush1.bf16.msra.mxu0 %v8417_v38  ;;  %6221 = vmatpush1.bf16.msra.mxu1 %v8420_v39  ;;  %v8489_v38 = vld [vmem:[%s9794_s27 + $0x308] ss:$48 sps:$4 sm:$0xff]   ;;  %v8494_v39 = vld [vmem:[%s9794_s27 + $0x90c] ss:$48 sps:$4 sm:$0xff]  }
 0x1e1   : > { %6181 = vmatprep.subr.bf16.mxu0 %v8425_v40  ;;  %6222 = vmatprep.subr.bf16.mxu1 %v8428_v43  ;;  %v8492_v40 = vld [vmem:[%s9794_s27 + $0x908] ss:$48 sps:$4 sm:$0xff]   ;;  %v8500_v43 = vld [vmem:[%s9794_s27 + $0x14ac] ss:$48 sps:$4 sm:$0xff]  }
 0x1e4   : > { %6182 = vmatpush1.bf16.msra.mxu0 %v8423_v41  ;;  %6223 = vmatpush1.bf16.msra.mxu1 %v8426_v3  ;;  %v8497_v41 = vld [vmem:[%s9794_s27 + $0xeac] ss:$48 sps:$4 sm:$0xff]   ;;  %v8495_v3 = vld [vmem:[%s9794_s27 + $0xea8] ss:$48 sps:$4 sm:$0xff]  }
 0x1e5   : > { %6183 = vmatprep.subr.bf16.mxu0 %v8431_v51  ;;  %6224 = vmatprep.subr.bf16.mxu1 %v8434_v54  ;;  %v8498_v51 = vld [vmem:[%s9794_s27 + $0x14a8] ss:$48 sps:$4 sm:$0xff]  }
 0x1e6   : > { %v8501_v54 = vld [vmem:[%s9794_s27 + $0xe48] ss:$48 sps:$4 sm:$0xff]  }
 0x1e8   : > { %6184 = vmatpush1.bf16.msra.mxu0 %v8429_v53  ;;  %6225 = vmatpush1.bf16.msra.mxu1 %v8432_v55  ;;  %v8503_v53 = vld [vmem:[%s9794_s27 + $0xe4c] ss:$48 sps:$4 sm:$0xff]   ;;  %v8504_v55 = vld [vmem:[%s9794_s27 + $0x1448] ss:$48 sps:$4 sm:$0xff]  }
 0x1e9   : > { %6185 = vmatprep.subr.bf16.mxu0 %v8437_v57  ;;  %6226 = vmatprep.subr.bf16.mxu1 %v8440_v60  ;;  %v8506_v57 = vld [vmem:[%s9794_s27 + $0x144c] ss:$48 sps:$4 sm:$0xff]  }
 0x1ea   : > { %v8512_v60 = vld [vmem:[%s9794_s27 + $0x13ec] ss:$48 sps:$4 sm:$0xff]  }
 0x1ec   : > { %6186 = vmatpush1.bf16.msra.mxu0 %v8435_v58  ;;  %6227 = vmatpush1.bf16.msra.mxu1 %v8438_v61  ;;  %v8509_v58 = vld [vmem:[%s9794_s27 + $0xdec] ss:$48 sps:$4 sm:$0xff]   ;;  %v8507_v61 = vld [vmem:[%s9794_s27 + $0xde8] ss:$48 sps:$4 sm:$0xff]  }
 0x1ed   : > { %6187 = vmatprep.subr.bf16.mxu0 %v8443_v62  ;;  %6228 = vmatprep.subr.bf16.mxu1 %v8446_v0  ;;  %v8510_v62 = vld [vmem:[%s9794_s27 + $0x13e8] ss:$48 sps:$4 sm:$0xff]   ;;  %v8518_v0 = vld [vmem:[%s9794_s27 + $0x138c] ss:$48 sps:$4 sm:$0xff]  }
 0x1f0   : > { %6188 = vmatpush1.bf16.msra.mxu0 %v8441_v63  ;;  %6229 = vmatpush1.bf16.msra.mxu1 %v8444_v1  ;;  %v8515_v63 = vld [vmem:[%s9794_s27 + $0xd8c] ss:$48 sps:$4 sm:$0xff]   ;;  %v8513_v1 = vld [vmem:[%s9794_s27 + $0xd88] ss:$48 sps:$4 sm:$0xff]  }
 0x1f1   : > { %6189 = vmatprep.subr.bf16.mxu0 %v8449_v2  ;;  %6230 = vmatprep.subr.bf16.mxu1 %v8452_v5  ;;  %v8516_v2 = vld [vmem:[%s9794_s27 + $0x1388] ss:$48 sps:$4 sm:$0xff]  }
 0x1f2   : > { %v8519_v5 = vld [vmem:[%s9794_s27 + $0xd28] ss:$48 sps:$4 sm:$0xff]  }
 0x1f4   : > { %6190 = vmatpush2.bf16.msra.mxu0 %v8447_v4  ;;  %6231 = vmatpush2.bf16.msra.mxu1 %v8450_v6  ;;  %v8521_v4 = vld [vmem:[%s9794_s27 + $0xd2c] ss:$48 sps:$4 sm:$0xff]  }
 0x1f5   : > { %6191 = vmatprep.subr.bf16.mxu0 %v8455_v7  ;;  %6232 = vmatprep.subr.bf16.mxu1 %v8458_v9  ;;  %v8524_v6 = vld [vmem:[%s9794_s27 + $0x132c] ss:$48 sps:$4 sm:$0xff]   ;;  %v8522_v7 = vld [vmem:[%s9794_s27 + $0x1328] ss:$48 sps:$4 sm:$0xff]  }
 0x1f6   : > { %v8530_v9 = vld [vmem:[%s9794_s27 + $0x12cc] ss:$48 sps:$4 sm:$0xff]  }
 0x1f8   : > { %6192 = vmatpush2.bf16.msra.mxu0 %v8453_v8  ;;  %6233 = vmatpush2.bf16.msra.mxu1 %v8456_v10  ;;  %v8527_v8 = vld [vmem:[%s9794_s27 + $0xccc] ss:$48 sps:$4 sm:$0xff]   ;;  %v8525_v10 = vld [vmem:[%s9794_s27 + $0xcc8] ss:$48 sps:$4 sm:$0xff]  }
 0x1f9   : > { %6193 = vmatprep.subr.bf16.mxu0 %v8461_v11  ;;  %6234 = vmatprep.subr.bf16.mxu1 %v8464_v12  ;;  %v8528_v11 = vld [vmem:[%s9794_s27 + $0x12c8] ss:$48 sps:$4 sm:$0xff]   ;;  %v8536_v12 = vld [vmem:[%s9794_s27 + $0x126c] ss:$48 sps:$4 sm:$0xff]  }
 0x1fc   : > { %6194 = vmatpush2.bf16.msra.mxu0 %v8459_v20  ;;  %6235 = vmatpush2.bf16.msra.mxu1 %v8462_v13  ;;  %v8533_v20 = vld [vmem:[%s9794_s27 + $0xc6c] ss:$48 sps:$4 sm:$0xff]   ;;  %v8531_v13 = vld [vmem:[%s9794_s27 + $0xc68] ss:$48 sps:$4 sm:$0xff]  }
 0x1fd   : > { %6195 = vmatprep.subr.bf16.mxu0 %v8467_v14  ;;  %6236 = vmatprep.subr.bf16.mxu1 %v8470_v16  ;;  %v8534_v14 = vld [vmem:[%s9794_s27 + $0x1268] ss:$48 sps:$4 sm:$0xff]   ;;  %v8542_v16 = vld [vmem:[%s9794_s27 + $0x120c] ss:$48 sps:$4 sm:$0xff]  }
 0x200   : > { %6196 = vmatpush2.bf16.msra.mxu0 %v8465_v15  ;;  %6237 = vmatpush2.bf16.msra.mxu1 %v8468_v17  ;;  %v8539_v15 = vld [vmem:[%s9794_s27 + $0xc0c] ss:$48 sps:$4 sm:$0xff]   ;;  %v8537_v17 = vld [vmem:[%s9794_s27 + $0xc08] ss:$48 sps:$4 sm:$0xff]  }
 0x201   : > { %6197 = vmatprep.subr.bf16.mxu0 %v8473_v18  ;;  %6238 = vmatprep.subr.bf16.mxu1 %v8476_v28  ;;  %v8540_v18 = vld [vmem:[%s9794_s27 + $0x1208] ss:$48 sps:$4 sm:$0xff]   ;;  %v8548_v28 = vld [vmem:[%s9794_s27 + $0x17ac] ss:$48 sps:$4 sm:$0xff]  }
 0x204   : > { %6198 = vmatpush2.bf16.msra.mxu0 %v8471_v19  ;;  %6239 = vmatpush2.bf16.msra.mxu1 %v8474_v29  ;;  %v8545_v19 = vld [vmem:[%s9794_s27 + $0x11ac] ss:$48 sps:$4 sm:$0xff]   ;;  %v8543_v29 = vld [vmem:[%s9794_s27 + $0x11a8] ss:$48 sps:$4 sm:$0xff]  }
 0x205   : > { %6199 = vmatprep.subr.bf16.mxu0 %v8479_v22  ;;  %6240 = vmatprep.subr.bf16.mxu1 %v8482_v59  ;;  %v8546_v22 = vld [vmem:[%s9794_s27 + $0x17a8] ss:$48 sps:$4 sm:$0xff]   ;;  %v8554_v59 = vld [vmem:[%s9794_s27 + $0x174c] ss:$48 sps:$4 sm:$0xff]  }
 0x208   : > { %6200 = vmatpush2.bf16.msra.mxu0 %v8477_v56  ;;  %6241 = vmatpush2.bf16.msra.mxu1 %v8480_v32  ;;  %v8551_v56 = vld [vmem:[%s9794_s27 + $0x114c] ss:$48 sps:$4 sm:$0xff]   ;;  %v8549_v32 = vld [vmem:[%s9794_s27 + $0x1148] ss:$48 sps:$4 sm:$0xff]  }
 0x209   : > { %6201 = vmatprep.subr.bf16.mxu0 %v8485_v33  ;;  %6242 = vmatprep.subr.bf16.mxu1 %v8488_v35  ;;  %v8552_v33 = vld [vmem:[%s9794_s27 + $0x1748] ss:$48 sps:$4 sm:$0xff]   ;;  %v8560_v35 = vld [vmem:[%s9794_s27 + $0x16ec] ss:$48 sps:$4 sm:$0xff]  }
 0x20c   : > { %6202 = vmatpush2.bf16.msra.mxu0 %v8483_v34  ;;  %6243 = vmatpush2.bf16.msra.mxu1 %v8486_v36  ;;  %v8557_v34 = vld [vmem:[%s9794_s27 + $0x10ec] ss:$48 sps:$4 sm:$0xff]   ;;  %v8555_v36 = vld [vmem:[%s9794_s27 + $0x10e8] ss:$48 sps:$4 sm:$0xff]  }
 0x20d   : > { %6203 = vmatprep.subr.bf16.mxu0 %v8491_v37  ;;  %6244 = vmatprep.subr.bf16.mxu1 %v8494_v39  ;;  %v8558_v37 = vld [vmem:[%s9794_s27 + $0x16e8] ss:$48 sps:$4 sm:$0xff]   ;;  %v8566_v39 = vld [vmem:[%s9794_s27 + $0x168c] ss:$48 sps:$4 sm:$0xff]  }
 0x210   : > { %6204 = vmatpush2.bf16.msra.mxu0 %v8489_v38  ;;  %6245 = vmatpush2.bf16.msra.mxu1 %v8492_v40  ;;  %v8563_v38 = vld [vmem:[%s9794_s27 + $0x108c] ss:$48 sps:$4 sm:$0xff]   ;;  %v8561_v40 = vld [vmem:[%s9794_s27 + $0x1088] ss:$48 sps:$4 sm:$0xff]  }
 0x211   : > { %6255 = vmatprep.subr.bf16.mxu0 %v8497_v41  ;;  %6296 = vmatprep.subr.bf16.mxu1 %v8500_v43  ;;  %v8564_v41 = vld [vmem:[%s9794_s27 + $0x1688] ss:$48 sps:$4 sm:$0xff]   ;;  %v8569_v43 = vld [vmem:[%s9794_s27 + $0x102c] ss:$48 sps:$4 sm:$0xff]  }
 0x213   : > { %6206 = vmatmul.mubr.bf16.vlgmr.msra.gmra.mxu0 %v9919_v49  ;;  %6247 = vmatmul.mubr.bf16.vlgmr.msra.gmra.mxu1 %v9915_v45 }
 0x214   : > { %6256 = vmatpush1.bf16.msra.mxu0 %v8495_v3  ;;  %6287 = vmatprep.mubr.bf16.mxu0 %v10008_v27  ;;  %v8572_v3 = vld [vmem:[%s9794_s27 + $0x162c] ss:$48 sps:$4 sm:$0xff]  }
 0x215   : > { %6297 = vmatpush1.bf16.msra.mxu1 %v8498_v51  ;;  %6328 = vmatprep.mubr.bf16.mxu1 %v10013_v31  ;;  %v8567_v51 = vld [vmem:[%s9794_s27 + $0x1028] ss:$48 sps:$4 sm:$0xff]  }
 0x216   : > { %6257 = vmatprep.subr.bf16.mxu0 %v8503_v53  ;;  %6298 = vmatprep.subr.bf16.mxu1 %v8506_v57  ;;  %v8570_v53 = vld [vmem:[%s9794_s27 + $0x1628] ss:$48 sps:$4 sm:$0xff]  }
 0x217   : > { %v8573_v57 = vld [vmem:[%s9794_s27 + $0xfc8] ss:$48 sps:$4 sm:$0xff]  }
 0x218   : > { %6258 = vmatpush1.bf16.msra.mxu0 %v8501_v54  ;;  %v8575_v54 = vld [vmem:[%s9794_s27 + $0xfcc] ss:$48 sps:$4 sm:$0xff]  }
 0x219   : > { %6299 = vmatpush1.bf16.msra.mxu1 %v8504_v55  ;;  %6259 = vmatprep.subr.bf16.mxu0 %v8509_v58  ;;  %v8578_v55 = vld [vmem:[%s9794_s27 + $0x15cc] ss:$48 sps:$4 sm:$0xff]   ;;  %v8576_v58 = vld [vmem:[%s9794_s27 + $0x15c8] ss:$48 sps:$4 sm:$0xff]  }
 0x21a   : > { %6300 = vmatprep.subr.bf16.mxu1 %v8512_v60  ;;  %v8581_v60 = vld [vmem:[%s9794_s27 + $0xf6c] ss:$48 sps:$4 sm:$0xff]  }
 0x21c   : > { %6260 = vmatpush1.bf16.msra.mxu0 %v8507_v61  ;;  %v8584_v61 = vld [vmem:[%s9794_s27 + $0x156c] ss:$48 sps:$4 sm:$0xff]  }
 0x21d   : > { %6301 = vmatpush1.bf16.msra.mxu1 %v8510_v62  ;;  %6261 = vmatprep.subr.bf16.mxu0 %v8515_v63  ;;  %v8579_v62 = vld [vmem:[%s9794_s27 + $0xf68] ss:$48 sps:$4 sm:$0xff]  }
 0x21e   : > { %6302 = vmatprep.subr.bf16.mxu1 %v8518_v0  ;;  %v8582_v63 = vld [vmem:[%s9794_s27 + $0x1568] ss:$48 sps:$4 sm:$0xff]   ;;  %v8587_v0 = vld [vmem:[%s9794_s27 + $0xf0c] ss:$48 sps:$4 sm:$0xff]  }
 0x220   : > { %6262 = vmatpush1.bf16.msra.mxu0 %v8513_v1  ;;  %v8590_v1 = vld [vmem:[%s9794_s27 + $0x150c] ss:$48 sps:$4 sm:$0xff]  }
 0x221   : > { %6303 = vmatpush1.bf16.msra.mxu1 %v8516_v2  ;;  %6263 = vmatprep.subr.bf16.mxu0 %v8521_v4  ;;  %v8585_v2 = vld [vmem:[%s9794_s27 + $0xf08] ss:$48 sps:$4 sm:$0xff]  }
 0x222   : > { %6304 = vmatprep.subr.bf16.mxu1 %v8524_v6  ;;  %v8588_v4 = vld [vmem:[%s9794_s27 + $0x1508] ss:$48 sps:$4 sm:$0xff]   ;;  %v10153_v6 = vld [vmem:[%s10150_s9] sm:$0xff] }
 0x224   : > { %6264 = vmatpush1.bf16.msra.mxu0 %v8519_v5  ;;  %v8593_v5 = vld [vmem:[%s9794_s27 + $0x2b4] ss:$48 sps:$4 sm:$0xff]  }
 0x225   : > { %6305 = vmatpush1.bf16.msra.mxu1 %v8522_v7  ;;  %6265 = vmatprep.subr.bf16.mxu0 %v8527_v8  ;;  %v8596_v7 = vld [vmem:[%s9794_s27 + $0x8b4] ss:$48 sps:$4 sm:$0xff]   ;;  %v8591_v8 = vld [vmem:[%s9794_s27 + $0x2b0] ss:$48 sps:$4 sm:$0xff]  }
 0x226   : > { %6306 = vmatprep.subr.bf16.mxu1 %v8530_v9  ;;  %v2112_v9 = vrot.slane %v10153_v6, %v9893_v21 }
 0x228   : > { %6266 = vmatpush1.bf16.msra.mxu0 %v8525_v10  ;;  %v8594_v10 = vld [vmem:[%s9794_s27 + $0x8b0] ss:$48 sps:$4 sm:$0xff]  }
 0x229   : > { %6307 = vmatpush1.bf16.msra.mxu1 %v8528_v11  ;;  %6267 = vmatprep.subr.bf16.mxu0 %v8533_v20  ;;  %v2116_v11 = vrot.slane %v10153_v6, %v9899_v24  ;;  %v8599_v20 = vld [vmem:[%s9794_s27 + $0x254] ss:$48 sps:$4 sm:$0xff]  }
 0x22a   : > { %6308 = vmatprep.subr.bf16.mxu1 %v8536_v12 }
 0x22c   : > { %6268 = vmatpush1.bf16.msra.mxu0 %v8531_v13  ;;  %v8602_v13 = vld [vmem:[%s9794_s27 + $0x854] ss:$48 sps:$4 sm:$0xff]  }
 0x22d   : > { %6309 = vmatpush1.bf16.msra.mxu1 %v8534_v14  ;;  %6269 = vmatprep.subr.bf16.mxu0 %v8539_v15 }
 0x22e   : > { %6310 = vmatprep.subr.bf16.mxu1 %v8542_v16  ;;  %v8597_v16 = vld [vmem:[%s9794_s27 + $0x250] ss:$48 sps:$4 sm:$0xff]  }
 0x230   : > { %6270 = vmatpush1.bf16.msra.mxu0 %v8537_v17 }
 0x231   : > { %6311 = vmatpush1.bf16.msra.mxu1 %v8540_v18  ;;  %6271 = vmatprep.subr.bf16.mxu0 %v8545_v19  ;;  %v8600_v18 = vld [vmem:[%s9794_s27 + $0x850] ss:$48 sps:$4 sm:$0xff]   ;;  %v8605_v19 = vld [vmem:[%s9794_s27 + $0x1f4] ss:$48 sps:$4 sm:$0xff]  }
 0x232   : > { %6312 = vmatprep.subr.bf16.mxu1 %v8548_v28 }
 0x234   : > { %6272 = vmatpush2.bf16.msra.mxu0 %v8543_v29 }
 0x235   : > { %6313 = vmatpush2.bf16.msra.mxu1 %v8546_v22  ;;  %6273 = vmatprep.subr.bf16.mxu0 %v8551_v56  ;;  %v8608_v56 = vld [vmem:[%s9794_s27 + $0x7f4] ss:$48 sps:$4 sm:$0xff]  }
 0x236   : > { %6314 = vmatprep.subr.bf16.mxu1 %v8554_v59 }
 0x238   : > { %6274 = vmatpush2.bf16.msra.mxu0 %v8549_v32 }
 0x239   : > { %6315 = vmatpush2.bf16.msra.mxu1 %v8552_v33  ;;  %6275 = vmatprep.subr.bf16.mxu0 %v8557_v34  ;;  %v8603_v34 = vld [vmem:[%s9794_s27 + $0x1f0] ss:$48 sps:$4 sm:$0xff]  }
 0x23a   : > { %6316 = vmatprep.subr.bf16.mxu1 %v8560_v35 }
 0x23c   : > { %6276 = vmatpush2.bf16.msra.mxu0 %v8555_v36  ;;  %v8606_v36 = vld [vmem:[%s9794_s27 + $0x7f0] ss:$48 sps:$4 sm:$0xff]  }
 0x23d   : > { %6317 = vmatpush2.bf16.msra.mxu1 %v8558_v37  ;;  %6277 = vmatprep.subr.bf16.mxu0 %v8563_v38  ;;  %v8611_v37 = vld [vmem:[%s9794_s27 + $0x194] ss:$48 sps:$4 sm:$0xff]  }
 0x23e   : > { %6318 = vmatprep.subr.bf16.mxu1 %v8566_v39  ;;  %v8614_v39 = vld [vmem:[%s9794_s27 + $0x794] ss:$48 sps:$4 sm:$0xff]  }
 0x240   : > { %6278 = vmatpush2.bf16.msra.mxu0 %v8561_v40  ;;  %v8609_v40 = vld [vmem:[%s9794_s27 + $0x190] ss:$48 sps:$4 sm:$0xff]  }
 0x241   : > { %6319 = vmatpush2.bf16.msra.mxu1 %v8564_v41  ;;  %6279 = vmatprep.subr.bf16.mxu0 %v8569_v43  ;;  %v8612_v41 = vld [vmem:[%s9794_s27 + $0x790] ss:$48 sps:$4 sm:$0xff]   ;;  %v8617_v43 = vld [vmem:[%s9794_s27 + $0x134] ss:$48 sps:$4 sm:$0xff]  }
 0x242   : > { %6320 = vmatprep.subr.bf16.mxu1 %v8572_v3  ;;  %v8620_v3 = vld [vmem:[%s9794_s27 + $0x734] ss:$48 sps:$4 sm:$0xff]  }
 0x244   : > { %6280 = vmatpush2.bf16.msra.mxu0 %v8567_v51  ;;  %v8615_v51 = vld [vmem:[%s9794_s27 + $0x130] ss:$48 sps:$4 sm:$0xff]  }
 0x245   : > { %6321 = vmatpush2.bf16.msra.mxu1 %v8570_v53  ;;  %6281 = vmatprep.subr.bf16.mxu0 %v8575_v54  ;;  %v8618_v53 = vld [vmem:[%s9794_s27 + $0x730] ss:$48 sps:$4 sm:$0xff]   ;;  %v8623_v54 = vld [vmem:[%s9794_s27 + $0xd4] ss:$48 sps:$4 sm:$0xff]  }
 0x246   : > { %6322 = vmatprep.subr.bf16.mxu1 %v8578_v55  ;;  %v8626_v55 = vld [vmem:[%s9794_s27 + $0x6d4] ss:$48 sps:$4 sm:$0xff]  }
 0x248   : > { %6282 = vmatpush2.bf16.msra.mxu0 %v8573_v57  ;;  %v8621_v57 = vld [vmem:[%s9794_s27 + $0xd0] ss:$48 sps:$4 sm:$0xff]  }
 0x249   : > { %6323 = vmatpush2.bf16.msra.mxu1 %v8576_v58  ;;  %6283 = vmatprep.subr.bf16.mxu0 %v8581_v60  ;;  %v8624_v58 = vld [vmem:[%s9794_s27 + $0x6d0] ss:$48 sps:$4 sm:$0xff]   ;;  %v8629_v60 = vld [vmem:[%s9794_s27 + $0x74] ss:$48 sps:$4 sm:$0xff]  }
 0x24a   : > { %6324 = vmatprep.subr.bf16.mxu1 %v8584_v61  ;;  %v8632_v61 = vld [vmem:[%s9794_s27 + $0x674] ss:$48 sps:$4 sm:$0xff]  }
 0x24c   : > { %6284 = vmatpush2.bf16.msra.mxu0 %v8579_v62  ;;  %v8627_v62 = vld [vmem:[%s9794_s27 + $0x70] ss:$48 sps:$4 sm:$0xff]  }
 0x24d   : > { %6325 = vmatpush2.bf16.msra.mxu1 %v8582_v63  ;;  %6285 = vmatprep.subr.bf16.mxu0 %v8587_v0  ;;  %v8630_v63 = vld [vmem:[%s9794_s27 + $0x670] ss:$48 sps:$4 sm:$0xff]   ;;  %v8635_v0 = vld [vmem:[%s9794_s27 + $0x14] ss:$48 sps:$4 sm:$0xff]  }
 0x24e   : > { %6326 = vmatprep.subr.bf16.mxu1 %v8590_v1  ;;  %v8638_v1 = vld [vmem:[%s9794_s27 + $0x614] ss:$48 sps:$4 sm:$0xff]  }
 0x250   : > { %6286 = vmatpush2.bf16.msra.mxu0 %v8585_v2  ;;  %v8633_v2 = vld [vmem:[%s9794_s27 + $0x10] ss:$48 sps:$4 sm:$0xff]  }
 0x251   : > { %6327 = vmatpush2.bf16.msra.mxu1 %v8588_v4  ;;  %6337 = vmatprep.subr.bf16.mxu0 %v8593_v5  ;;  %v8636_v4 = vld [vmem:[%s9794_s27 + $0x610] ss:$48 sps:$4 sm:$0xff]   ;;  %v8641_v5 = vld [vmem:[%s9794_s27 + $0x5b4] ss:$48 sps:$4 sm:$0xff]  }
 0x252   : > { %6378 = vmatprep.subr.bf16.mxu1 %v8596_v7  ;;  %v8644_v7 = vld [vmem:[%s9794_s27 + $0xbb4] ss:$48 sps:$4 sm:$0xff]  }
 0x253   : > { %6288 = vmatmul.mubr.bf16.vlgmr.msra.gmra.mxu0 %v10011_v30  ;;  %v6043_v12 = vpop.f32.mrf.mxu0  ;;  %v6084_v15 = vpop.f32.mrf.mxu1 }
 0x254   : > { %6329 = vmatmul.mubr.bf16.vlgmr.msra.gmra.mxu1 %v10006_v26  ;;  %v6044_v14 = vadd.f32 %v6043_v12, %v2112_v9  ;;  %6338 = vmatpush1.bf16.msra.mxu0 %v8591_v8  ;;  %v8639_v8 = vld [vmem:[%s9794_s27 + $0x5b0] ss:$48 sps:$4 sm:$0xff]  }
 0x255   : > { %6369 = vmatprep.mubr.bf16.mxu0 %v9917_v47  ;;  %6379 = vmatpush1.bf16.msra.mxu1 %v8594_v10  ;;  %v6045_v17 = vpop.f32.mrf.mxu0  ;;  %v6086_v22 = vpop.f32.mrf.mxu1  ;;  %v8642_v9 = vld [vmem:[%s9794_s27 + $0xbb0] ss:$48 sps:$4 sm:$0xff]   ;;  %v8647_v10 = vld [vmem:[%s9794_s27 + $0x554] ss:$48 sps:$4 sm:$0xff]  }
 0x256   : > { %v10170_v28 = vadd.f32 %v6084_v15, %v6044_v14  ;;  %6410 = vmatprep.mubr.bf16.mxu1 %v9921_v50  ;;  %v6046_v29 = vadd.f32 %v6045_v17, %v2116_v11  ;;  %6339 = vmatprep.subr.bf16.mxu0 %v8599_v20  ;;  %v8650_v11 = vld [vmem:[%s9794_s27 + $0xb54] ss:$48 sps:$4 sm:$0xff]   ;;  %v8645_v20 = vld [vmem:[%s9794_s27 + $0x550] ss:$48 sps:$4 sm:$0xff]  }
 0x257   : > { %6380 = vmatprep.subr.bf16.mxu1 %v8602_v13  ;;  %v6047_v59 = vpop.f32.mrf.mxu0  ;;  %v6088_v33 = vpop.f32.mrf.mxu1  ;;  %v8648_v12 = vld [vmem:[%s9794_s27 + $0xb50] ss:$48 sps:$4 sm:$0xff]   ;;  %v8653_v13 = vld [vmem:[%s9794_s27 + $0x4f4] ss:$48 sps:$4 sm:$0xff]  }
 0x258   : > { %v10174_v32 = vadd.f32 %v6086_v22, %v6046_v29  ;;  %6340 = vmatpush1.bf16.msra.mxu0 %v8597_v16  ;;  %v8656_v14 = vld [vmem:[%s9794_s27 + $0xaf4] ss:$48 sps:$4 sm:$0xff]   ;;  %v8651_v15 = vld [vmem:[%s9794_s27 + $0x4f0] ss:$48 sps:$4 sm:$0xff]  }
 0x259   : > { %6381 = vmatpush1.bf16.msra.mxu1 %v8600_v18  ;;  %v6048_v35 = vpop.f32.mrf.mxu0  ;;  %6341 = vmatprep.subr.bf16.mxu0 %v8605_v19  ;;  %v6089_v38 = vpop.f32.mrf.mxu1  ;;  %v8654_v16 = vld [vmem:[%s9794_s27 + $0xaf0] ss:$48 sps:$4 sm:$0xff]   ;;  %v8659_v17 = vld [vmem:[%s9794_s27 + $0x494] ss:$48 sps:$4 sm:$0xff]  }
 0x25a   : > { %6382 = vmatprep.subr.bf16.mxu1 %v8608_v56  ;;  %v8662_v18 = vld [vmem:[%s9794_s27 + $0xa94] ss:$48 sps:$4 sm:$0xff]   ;;  %v8657_v19 = vld [vmem:[%s9794_s27 + $0x490] ss:$48 sps:$4 sm:$0xff]  }
 0x25b   : > { %v8660_v29 = vld [vmem:[%s9794_s27 + $0xa90] ss:$48 sps:$4 sm:$0xff]   ;;  %v8665_v22 = vld [vmem:[%s9794_s27 + $0x434] ss:$48 sps:$4 sm:$0xff]  }
 0x25c   : > { %6342 = vmatpush1.bf16.msra.mxu0 %v8603_v34  ;;  %v8668_v56 = vld [vmem:[%s9794_s27 + $0xa34] ss:$48 sps:$4 sm:$0xff]   ;;  %v8663_v59 = vld [vmem:[%s9794_s27 + $0x430] ss:$48 sps:$4 sm:$0xff]  }
 0x25d   : > { %6383 = vmatpush1.bf16.msra.mxu1 %v8606_v36  ;;  %6343 = vmatprep.subr.bf16.mxu0 %v8611_v37  ;;  %v8666_v33 = vld [vmem:[%s9794_s27 + $0xa30] ss:$48 sps:$4 sm:$0xff]   ;;  %v8671_v34 = vld [vmem:[%s9794_s27 + $0x3d4] ss:$48 sps:$4 sm:$0xff]  }
 0x25e   : > { %6384 = vmatprep.subr.bf16.mxu1 %v8614_v39  ;;  %v8674_v35 = vld [vmem:[%s9794_s27 + $0x9d4] ss:$48 sps:$4 sm:$0xff]   ;;  %v8669_v36 = vld [vmem:[%s9794_s27 + $0x3d0] ss:$48 sps:$4 sm:$0xff]  }
 0x25f   : > { %v8672_v37 = vld [vmem:[%s9794_s27 + $0x9d0] ss:$48 sps:$4 sm:$0xff]   ;;  %v8677_v38 = vld [vmem:[%s9794_s27 + $0x374] ss:$48 sps:$4 sm:$0xff]  }
 0x260   : > { %6344 = vmatpush1.bf16.msra.mxu0 %v8609_v40  ;;  %v8680_v39 = vld [vmem:[%s9794_s27 + $0x974] ss:$48 sps:$4 sm:$0xff]   ;;  %v8675_v40 = vld [vmem:[%s9794_s27 + $0x370] ss:$48 sps:$4 sm:$0xff]  }
 0x261   : > { %6385 = vmatpush1.bf16.msra.mxu1 %v8612_v41  ;;  %6345 = vmatprep.subr.bf16.mxu0 %v8617_v43  ;;  %v8678_v41 = vld [vmem:[%s9794_s27 + $0x970] ss:$48 sps:$4 sm:$0xff]   ;;  %v8683_v43 = vld [vmem:[%s9794_s27 + $0x314] ss:$48 sps:$4 sm:$0xff]  }
 0x262   : > { %6386 = vmatprep.subr.bf16.mxu1 %v8620_v3  ;;  %v8686_v3 = vld [vmem:[%s9794_s27 + $0x914] ss:$48 sps:$4 sm:$0xff]  }
 0x264   : > { %6346 = vmatpush1.bf16.msra.mxu0 %v8615_v51  ;;  %v8681_v51 = vld [vmem:[%s9794_s27 + $0x310] ss:$48 sps:$4 sm:$0xff]  }
 0x265   : > { %6387 = vmatpush1.bf16.msra.mxu1 %v8618_v53  ;;  %6347 = vmatprep.subr.bf16.mxu0 %v8623_v54  ;;  %v8684_v53 = vld [vmem:[%s9794_s27 + $0x910] ss:$48 sps:$4 sm:$0xff]   ;;  %v8689_v54 = vld [vmem:[%s9794_s27 + $0xeb4] ss:$48 sps:$4 sm:$0xff]  }
 0x266   : > { %6388 = vmatprep.subr.bf16.mxu1 %v8626_v55  ;;  %v8692_v55 = vld [vmem:[%s9794_s27 + $0x14b4] ss:$48 sps:$4 sm:$0xff]  }
 0x268   : > { %6348 = vmatpush1.bf16.msra.mxu0 %v8621_v57  ;;  %v8687_v57 = vld [vmem:[%s9794_s27 + $0xeb0] ss:$48 sps:$4 sm:$0xff]  }
 0x269   : > { %6389 = vmatpush1.bf16.msra.mxu1 %v8624_v58  ;;  %6349 = vmatprep.subr.bf16.mxu0 %v8629_v60  ;;  %v8690_v58 = vld [vmem:[%s9794_s27 + $0x14b0] ss:$48 sps:$4 sm:$0xff]   ;;  %v8695_v60 = vld [vmem:[%s9794_s27 + $0xe54] ss:$48 sps:$4 sm:$0xff]  }
 0x26a   : > { %6390 = vmatprep.subr.bf16.mxu1 %v8632_v61 }
 0x26c   : > { %6350 = vmatpush1.bf16.msra.mxu0 %v8627_v62  ;;  %v8698_v62 = vld [vmem:[%s9794_s27 + $0x1454] ss:$48 sps:$4 sm:$0xff]  }
 0x26d   : > { %6391 = vmatpush1.bf16.msra.mxu1 %v8630_v63  ;;  %6351 = vmatprep.subr.bf16.mxu0 %v8635_v0 }
 0x26e   : > { %6392 = vmatprep.subr.bf16.mxu1 %v8638_v1  ;;  %v8693_v1 = vld [vmem:[%s9794_s27 + $0xe50] ss:$48 sps:$4 sm:$0xff]  }
 0x270   : > { %6352 = vmatpush1.bf16.msra.mxu0 %v8633_v2 }
 0x271   : > { %6393 = vmatpush1.bf16.msra.mxu1 %v8636_v4  ;;  %6353 = vmatprep.subr.bf16.mxu0 %v8641_v5  ;;  %v8696_v4 = vld [vmem:[%s9794_s27 + $0x1450] ss:$48 sps:$4 sm:$0xff]   ;;  %v8701_v5 = vld [vmem:[%s9794_s27 + $0xdf4] ss:$48 sps:$4 sm:$0xff]  }
 0x272   : > { %6394 = vmatprep.subr.bf16.mxu1 %v8644_v7 }
 0x274   : > { %6354 = vmatpush2.bf16.msra.mxu0 %v8639_v8 }
 0x275   : > { %6395 = vmatpush2.bf16.msra.mxu1 %v8642_v9  ;;  %6355 = vmatprep.subr.bf16.mxu0 %v8647_v10 }
 0x276   : > { %6396 = vmatprep.subr.bf16.mxu1 %v8650_v11 }
 0x278   : > { %6356 = vmatpush2.bf16.msra.mxu0 %v8645_v20 }
 0x279   : > { %6397 = vmatpush2.bf16.msra.mxu1 %v8648_v12  ;;  %6357 = vmatprep.subr.bf16.mxu0 %v8653_v13  ;;  %v8699_v12 = vld [vmem:[%s9794_s27 + $0xdf0] ss:$48 sps:$4 sm:$0xff]  }
 0x27a   : > { %6398 = vmatprep.subr.bf16.mxu1 %v8656_v14  ;;  %v8707_v14 = vld [vmem:[%s9794_s27 + $0xd94] ss:$48 sps:$4 sm:$0xff]  }
 0x27c   : > { %6358 = vmatpush2.bf16.msra.mxu0 %v8651_v15 }
 0x27d   : > { %6399 = vmatpush2.bf16.msra.mxu1 %v8654_v16  ;;  %6359 = vmatprep.subr.bf16.mxu0 %v8659_v17  ;;  %v8710_v17 = vld [vmem:[%s9794_s27 + $0x1394] ss:$48 sps:$4 sm:$0xff]  }
 0x27e   : > { %6400 = vmatprep.subr.bf16.mxu1 %v8662_v18  ;;  %v8705_v18 = vld [vmem:[%s9794_s27 + $0xd90] ss:$48 sps:$4 sm:$0xff]  }
 0x280   : > { %6360 = vmatpush2.bf16.msra.mxu0 %v8657_v19  ;;  %v8708_v19 = vld [vmem:[%s9794_s27 + $0x1390] ss:$48 sps:$4 sm:$0xff]  }
 0x281   : > { %6401 = vmatpush2.bf16.msra.mxu1 %v8660_v29  ;;  %6361 = vmatprep.subr.bf16.mxu0 %v8665_v22  ;;  %v8713_v29 = vld [vmem:[%s9794_s27 + $0xd34] ss:$48 sps:$4 sm:$0xff]  }
 0x282   : > { %6402 = vmatprep.subr.bf16.mxu1 %v8668_v56  ;;  %v8716_v22 = vld [vmem:[%s9794_s27 + $0x1334] ss:$48 sps:$4 sm:$0xff]   ;;  %v8711_v56 = vld [vmem:[%s9794_s27 + $0xd30] ss:$48 sps:$4 sm:$0xff]  }
 0x284   : > { %6362 = vmatpush2.bf16.msra.mxu0 %v8663_v59  ;;  %v8714_v59 = vld [vmem:[%s9794_s27 + $0x1330] ss:$48 sps:$4 sm:$0xff]  }
 0x285   : > { %6403 = vmatpush2.bf16.msra.mxu1 %v8666_v33  ;;  %6363 = vmatprep.subr.bf16.mxu0 %v8671_v34  ;;  %v8719_v33 = vld [vmem:[%s9794_s27 + $0xcd4] ss:$48 sps:$4 sm:$0xff]  }
 0x286   : > { %6404 = vmatprep.subr.bf16.mxu1 %v8674_v35  ;;  %v8722_v34 = vld [vmem:[%s9794_s27 + $0x12d4] ss:$48 sps:$4 sm:$0xff]   ;;  %v8717_v35 = vld [vmem:[%s9794_s27 + $0xcd0] ss:$48 sps:$4 sm:$0xff]  }
 0x288   : > { %6364 = vmatpush2.bf16.msra.mxu0 %v8669_v36  ;;  %v8720_v36 = vld [vmem:[%s9794_s27 + $0x12d0] ss:$48 sps:$4 sm:$0xff]  }
 0x289   : > { %6405 = vmatpush2.bf16.msra.mxu1 %v8672_v37  ;;  %6365 = vmatprep.subr.bf16.mxu0 %v8677_v38  ;;  %v8725_v37 = vld [vmem:[%s9794_s27 + $0xc74] ss:$48 sps:$4 sm:$0xff]  }
 0x28a   : > { %6406 = vmatprep.subr.bf16.mxu1 %v8680_v39  ;;  %v8728_v38 = vld [vmem:[%s9794_s27 + $0x1274] ss:$48 sps:$4 sm:$0xff]   ;;  %v8723_v39 = vld [vmem:[%s9794_s27 + $0xc70] ss:$48 sps:$4 sm:$0xff]  }
 0x28c   : > { %6366 = vmatpush2.bf16.msra.mxu0 %v8675_v40  ;;  %v8726_v40 = vld [vmem:[%s9794_s27 + $0x1270] ss:$48 sps:$4 sm:$0xff]  }
 0x28d   : > { %6407 = vmatpush2.bf16.msra.mxu1 %v8678_v41  ;;  %6367 = vmatprep.subr.bf16.mxu0 %v8683_v43  ;;  %v8731_v41 = vld [vmem:[%s9794_s27 + $0xc14] ss:$48 sps:$4 sm:$0xff]  }
 0x28e   : > { %6408 = vmatprep.subr.bf16.mxu1 %v8686_v3  ;;  %v8734_v43 = vld [vmem:[%s9794_s27 + $0x1214] ss:$48 sps:$4 sm:$0xff]   ;;  %v8729_v3 = vld [vmem:[%s9794_s27 + $0xc10] ss:$48 sps:$4 sm:$0xff]  }
 0x290   : > { %6368 = vmatpush2.bf16.msra.mxu0 %v8681_v51  ;;  %v8732_v51 = vld [vmem:[%s9794_s27 + $0x1210] ss:$48 sps:$4 sm:$0xff]  }
 0x291   : > { %6409 = vmatpush2.bf16.msra.mxu1 %v8684_v53  ;;  %6419 = vmatprep.subr.bf16.mxu0 %v8689_v54  ;;  %v8737_v53 = vld [vmem:[%s9794_s27 + $0x11b4] ss:$48 sps:$4 sm:$0xff]  }
 0x292   : > { %6460 = vmatprep.subr.bf16.mxu1 %v8692_v55  ;;  %v8740_v54 = vld [vmem:[%s9794_s27 + $0x17b4] ss:$48 sps:$4 sm:$0xff]   ;;  %v8735_v55 = vld [vmem:[%s9794_s27 + $0x11b0] ss:$48 sps:$4 sm:$0xff]  }
 0x293   : > { %6370 = vmatmul.mubr.bf16.vlgmr.msra.gmra.mxu0 %v9919_v49  ;;  %v6125_v61 = vpop.f32.mrf.mxu0  ;;  %v6166_v0 = vpop.f32.mrf.mxu1 }
 0x294   : > { %6411 = vmatmul.mubr.bf16.vlgmr.msra.gmra.mxu1 %v9915_v45  ;;  %v6126_v63 = vadd.f32 %v6125_v61, %v10170_v28  ;;  %6420 = vmatpush1.bf16.msra.mxu0 %v8687_v57  ;;  %v8704_v28 = vld [vmem:[%s9794_s27 + $0x13f4] ss:$48 sps:$4 sm:$0xff]   ;;  %v8738_v57 = vld [vmem:[%s9794_s27 + $0x17b0] ss:$48 sps:$4 sm:$0xff]  }
 0x295   : > { %6451 = vmatprep.mubr.bf16.mxu0 %v10008_v27  ;;  %6461 = vmatpush1.bf16.msra.mxu1 %v8690_v58  ;;  %v6127_v2 = vpop.f32.mrf.mxu0  ;;  %v6168_v9 = vpop.f32.mrf.mxu1  ;;  %v8743_v58 = vld [vmem:[%s9794_s27 + $0x1154] ss:$48 sps:$4 sm:$0xff]   ;;  %v8741_v61 = vld [vmem:[%s9794_s27 + $0x1150] ss:$48 sps:$4 sm:$0xff]  }
 0x296   : > { %v10243_v7 = vadd.f32 %v6166_v0, %v6126_v63  ;;  %6492 = vmatprep.mubr.bf16.mxu1 %v10013_v31  ;;  %v6128_v8 = vadd.f32 %v6127_v2, %v10174_v32  ;;  %6421 = vmatprep.subr.bf16.mxu0 %v8695_v60  ;;  %v8702_v32 = vld [vmem:[%s9794_s27 + $0x13f0] ss:$48 sps:$4 sm:$0xff]   ;;  %v8746_v60 = vld [vmem:[%s9794_s27 + $0x1754] ss:$48 sps:$4 sm:$0xff]  }
 0x297   : > { %6462 = vmatprep.subr.bf16.mxu1 %v8698_v62  ;;  %v6129_v10 = vpop.f32.mrf.mxu0  ;;  %v6170_v20 = vpop.f32.mrf.mxu1  ;;  %v8744_v62 = vld [vmem:[%s9794_s27 + $0x1750] ss:$48 sps:$4 sm:$0xff]   ;;  %v8749_v63 = vld [vmem:[%s9794_s27 + $0x10f4] ss:$48 sps:$4 sm:$0xff]  }
 0x298   : > { %v10248_v11 = vadd.f32 %v6168_v9, %v6128_v8  ;;  %6422 = vmatpush1.bf16.msra.mxu0 %v8693_v1  ;;  %v8752_v0 = vld [vmem:[%s9794_s27 + $0x16f4] ss:$48 sps:$4 sm:$0xff]   ;;  %v8747_v1 = vld [vmem:[%s9794_s27 + $0x10f0] ss:$48 sps:$4 sm:$0xff]  }
 0x299   : > { %6463 = vmatpush1.bf16.msra.mxu1 %v8696_v4  ;;  %v6130_v13 = vpop.f32.mrf.mxu0  ;;  %6423 = vmatprep.subr.bf16.mxu0 %v8701_v5  ;;  %v6171_v16 = vpop.f32.mrf.mxu1  ;;  %v8750_v2 = vld [vmem:[%s9794_s27 + $0x16f0] ss:$48 sps:$4 sm:$0xff]   ;;  %v8755_v4 = vld [vmem:[%s9794_s27 + $0x1094] ss:$48 sps:$4 sm:$0xff]  }
 0x29a   : > { %v7005_v15 = vcombine.low %v10243_v7, %v10248_v11  ;;  %6464 = vmatprep.subr.bf16.mxu1 %v8704_v28  ;;  %v8758_v5 = vld [vmem:[%s9794_s27 + $0x1694] ss:$48 sps:$4 sm:$0xff]   ;;  %v8753_v8 = vld [vmem:[%s9794_s27 + $0x1090] ss:$48 sps:$4 sm:$0xff]   ;;  %v8903_v7 = vld [vmem:[%s9794_s27 + $0xd38] ss:$48 sps:$4 sm:$0xff]  }
 0x29b   : > { %v8756_v9 = vld [vmem:[%s9794_s27 + $0x1690] ss:$48 sps:$4 sm:$0xff]   ;;  %v8761_v28 = vld [vmem:[%s9794_s27 + $0x1034] ss:$48 sps:$4 sm:$0xff]   ;;  %v8906_v11 = vld [vmem:[%s9794_s27 + $0x1338] ss:$48 sps:$4 sm:$0xff]  }
 0x29c   : > { %6424 = vmatpush1.bf16.msra.mxu0 %v8699_v12  ;;  %v8764_v10 = vld [vmem:[%s9794_s27 + $0x1634] ss:$48 sps:$4 sm:$0xff]   ;;  %v8759_v20 = vld [vmem:[%s9794_s27 + $0x1030] ss:$48 sps:$4 sm:$0xff]  }
 0x29d   : > { %6465 = vmatpush1.bf16.msra.mxu1 %v8702_v32  ;;  %6425 = vmatprep.subr.bf16.mxu0 %v8707_v14  ;;  %v8762_v12 = vld [vmem:[%s9794_s27 + $0x1630] ss:$48 sps:$4 sm:$0xff]   ;;  %v8767_v13 = vld [vmem:[%s9794_s27 + $0xfd4] ss:$48 sps:$4 sm:$0xff]  }
 0x29e   : > { %6466 = vmatprep.subr.bf16.mxu1 %v8710_v17  ;;  %v8770_v32 = vld [vmem:[%s9794_s27 + $0x15d4] ss:$48 sps:$4 sm:$0xff]   ;;  %v8765_v14 = vld [vmem:[%s9794_s27 + $0xfd0] ss:$48 sps:$4 sm:$0xff]  }
 0x29f   : > { %v8768_v16 = vld [vmem:[%s9794_s27 + $0x15d0] ss:$48 sps:$4 sm:$0xff]   ;;  %v8773_v17 = vld [vmem:[%s9794_s27 + $0xf74] ss:$48 sps:$4 sm:$0xff]  }
 0x2a0   : > { %6426 = vmatpush1.bf16.msra.mxu0 %v8705_v18  ;;  %v8776_v18 = vld [vmem:[%s9794_s27 + $0x1574] ss:$48 sps:$4 sm:$0xff]  }
 0x2a1   : > { %6467 = vmatpush1.bf16.msra.mxu1 %v8708_v19  ;;  %6427 = vmatprep.subr.bf16.mxu0 %v8713_v29  ;;  %v8771_v19 = vld [vmem:[%s9794_s27 + $0xf70] ss:$48 sps:$4 sm:$0xff]  }
 0x2a2   : > { %6468 = vmatprep.subr.bf16.mxu1 %v8716_v22  ;;  %v8774_v29 = vld [vmem:[%s9794_s27 + $0x1570] ss:$48 sps:$4 sm:$0xff]   ;;  %v8779_v22 = vld [vmem:[%s9794_s27 + $0xf14] ss:$48 sps:$4 sm:$0xff]  }
 0x2a4   : > { %6428 = vmatpush1.bf16.msra.mxu0 %v8711_v56  ;;  %v8782_v56 = vld [vmem:[%s9794_s27 + $0x1514] ss:$48 sps:$4 sm:$0xff]  }
 0x2a5   : > { %6469 = vmatpush1.bf16.msra.mxu1 %v8714_v59  ;;  %6429 = vmatprep.subr.bf16.mxu0 %v8719_v33  ;;  %v8777_v59 = vld [vmem:[%s9794_s27 + $0xf10] ss:$48 sps:$4 sm:$0xff]  }
 0x2a6   : > { %6470 = vmatprep.subr.bf16.mxu1 %v8722_v34  ;;  %v8780_v33 = vld [vmem:[%s9794_s27 + $0x1510] ss:$48 sps:$4 sm:$0xff]   ;;  %v8785_v34 = vld [vmem:[%s9794_s27 + $0x2bc] ss:$48 sps:$4 sm:$0xff]  }
 0x2a8   : > { %6430 = vmatpush1.bf16.msra.mxu0 %v8717_v35  ;;  %v8788_v35 = vld [vmem:[%s9794_s27 + $0x8bc] ss:$48 sps:$4 sm:$0xff]  }
 0x2a9   : > { %6471 = vmatpush1.bf16.msra.mxu1 %v8720_v36  ;;  %6431 = vmatprep.subr.bf16.mxu0 %v8725_v37  ;;  %v8783_v36 = vld [vmem:[%s9794_s27 + $0x2b8] ss:$48 sps:$4 sm:$0xff]  }
 0x2aa   : > { %6472 = vmatprep.subr.bf16.mxu1 %v8728_v38  ;;  %v8786_v37 = vld [vmem:[%s9794_s27 + $0x8b8] ss:$48 sps:$4 sm:$0xff]   ;;  %v8791_v38 = vld [vmem:[%s9794_s27 + $0x25c] ss:$48 sps:$4 sm:$0xff]  }
 0x2ac   : > { %6432 = vmatpush1.bf16.msra.mxu0 %v8723_v39 }
 0x2ad   : > { %6473 = vmatpush1.bf16.msra.mxu1 %v8726_v40  ;;  %6433 = vmatprep.subr.bf16.mxu0 %v8731_v41  ;;  %v8794_v40 = vld [vmem:[%s9794_s27 + $0x85c] ss:$48 sps:$4 sm:$0xff]  }
 0x2ae   : > { %6474 = vmatprep.subr.bf16.mxu1 %v8734_v43  ;;  %v8789_v43 = vld [vmem:[%s9794_s27 + $0x258] ss:$48 sps:$4 sm:$0xff]  }
 0x2b0   : > { %6434 = vmatpush1.bf16.msra.mxu0 %v8729_v3 }
 0x2b1   : > { %6475 = vmatpush1.bf16.msra.mxu1 %v8732_v51  ;;  %6435 = vmatprep.subr.bf16.mxu0 %v8737_v53  ;;  %v8792_v51 = vld [vmem:[%s9794_s27 + $0x858] ss:$48 sps:$4 sm:$0xff]   ;;  %v8797_v53 = vld [vmem:[%s9794_s27 + $0x1fc] ss:$48 sps:$4 sm:$0xff]  }
 0x2b2   : > { %6476 = vmatprep.subr.bf16.mxu1 %v8740_v54 }
 0x2b4   : > { %6436 = vmatpush2.bf16.msra.mxu0 %v8735_v55  ;;  %v8800_v55 = vld [vmem:[%s9794_s27 + $0x7fc] ss:$48 sps:$4 sm:$0xff]  }
 0x2b5   : > { %6477 = vmatpush2.bf16.msra.mxu1 %v8738_v57  ;;  %6437 = vmatprep.subr.bf16.mxu0 %v8743_v58 }
 0x2b6   : > { %6478 = vmatprep.subr.bf16.mxu1 %v8746_v60  ;;  %v8795_v60 = vld [vmem:[%s9794_s27 + $0x1f8] ss:$48 sps:$4 sm:$0xff]  }
 0x2b8   : > { %6438 = vmatpush2.bf16.msra.mxu0 %v8741_v61 }
 0x2b9   : > { %6479 = vmatpush2.bf16.msra.mxu1 %v8744_v62  ;;  %6439 = vmatprep.subr.bf16.mxu0 %v8749_v63  ;;  %v8798_v62 = vld [vmem:[%s9794_s27 + $0x7f8] ss:$48 sps:$4 sm:$0xff]   ;;  %v8803_v63 = vld [vmem:[%s9794_s27 + $0x19c] ss:$48 sps:$4 sm:$0xff]  }
 0x2ba   : > { %6480 = vmatprep.subr.bf16.mxu1 %v8752_v0 }
 0x2bc   : > { %6440 = vmatpush2.bf16.msra.mxu0 %v8747_v1  ;;  %v8806_v1 = vld [vmem:[%s9794_s27 + $0x79c] ss:$48 sps:$4 sm:$0xff]  }
 0x2bd   : > { %6481 = vmatpush2.bf16.msra.mxu1 %v8750_v2  ;;  %6441 = vmatprep.subr.bf16.mxu0 %v8755_v4  ;;  %v8801_v2 = vld [vmem:[%s9794_s27 + $0x198] ss:$48 sps:$4 sm:$0xff]  }
 0x2be   : > { %6482 = vmatprep.subr.bf16.mxu1 %v8758_v5  ;;  %v8804_v4 = vld [vmem:[%s9794_s27 + $0x798] ss:$48 sps:$4 sm:$0xff]   ;;  %v8809_v5 = vld [vmem:[%s9794_s27 + $0x13c] ss:$48 sps:$4 sm:$0xff]  }
 0x2c0   : > { %6442 = vmatpush2.bf16.msra.mxu0 %v8753_v8  ;;  %v8812_v8 = vld [vmem:[%s9794_s27 + $0x73c] ss:$48 sps:$4 sm:$0xff]  }
 0x2c1   : > { %6483 = vmatpush2.bf16.msra.mxu1 %v8756_v9  ;;  %6443 = vmatprep.subr.bf16.mxu0 %v8761_v28  ;;  %v8807_v9 = vld [vmem:[%s9794_s27 + $0x138] ss:$48 sps:$4 sm:$0xff]  }
 0x2c2   : > { %6484 = vmatprep.subr.bf16.mxu1 %v8764_v10  ;;  %v8810_v28 = vld [vmem:[%s9794_s27 + $0x738] ss:$48 sps:$4 sm:$0xff]   ;;  %v8815_v10 = vld [vmem:[%s9794_s27 + $0xdc] ss:$48 sps:$4 sm:$0xff]  }
 0x2c4   : > { %6444 = vmatpush2.bf16.msra.mxu0 %v8759_v20  ;;  %v8818_v20 = vld [vmem:[%s9794_s27 + $0x6dc] ss:$48 sps:$4 sm:$0xff]  }
 0x2c5   : > { %6485 = vmatpush2.bf16.msra.mxu1 %v8762_v12  ;;  %6445 = vmatprep.subr.bf16.mxu0 %v8767_v13  ;;  %v8813_v12 = vld [vmem:[%s9794_s27 + $0xd8] ss:$48 sps:$4 sm:$0xff]  }
 0x2c6   : > { %6486 = vmatprep.subr.bf16.mxu1 %v8770_v32  ;;  %v8816_v13 = vld [vmem:[%s9794_s27 + $0x6d8] ss:$48 sps:$4 sm:$0xff]   ;;  %v8821_v32 = vld [vmem:[%s9794_s27 + $0x7c] ss:$48 sps:$4 sm:$0xff]  }
 0x2c8   : > { %6446 = vmatpush2.bf16.msra.mxu0 %v8765_v14  ;;  %v8824_v14 = vld [vmem:[%s9794_s27 + $0x67c] ss:$48 sps:$4 sm:$0xff]  }
 0x2c9   : > { %6487 = vmatpush2.bf16.msra.mxu1 %v8768_v16  ;;  %6447 = vmatprep.subr.bf16.mxu0 %v8773_v17  ;;  %v8819_v16 = vld [vmem:[%s9794_s27 + $0x78] ss:$48 sps:$4 sm:$0xff]  }
 0x2ca   : > { %6488 = vmatprep.subr.bf16.mxu1 %v8776_v18  ;;  %v8822_v17 = vld [vmem:[%s9794_s27 + $0x678] ss:$48 sps:$4 sm:$0xff]   ;;  %v8827_v18 = vld [vmem:[%s9794_s27 + $0x1c] ss:$48 sps:$4 sm:$0xff]  }
 0x2cc   : > { %6448 = vmatpush2.bf16.msra.mxu0 %v8771_v19  ;;  %v8830_v19 = vld [vmem:[%s9794_s27 + $0x61c] ss:$48 sps:$4 sm:$0xff]  }
 0x2cd   : > { %6489 = vmatpush2.bf16.msra.mxu1 %v8774_v29  ;;  %6449 = vmatprep.subr.bf16.mxu0 %v8779_v22  ;;  %v8825_v29 = vld [vmem:[%s9794_s27 + $0x18] ss:$48 sps:$4 sm:$0xff]  }
 0x2ce   : > { %6490 = vmatprep.subr.bf16.mxu1 %v8782_v56  ;;  %v8828_v22 = vld [vmem:[%s9794_s27 + $0x618] ss:$48 sps:$4 sm:$0xff]   ;;  %v8833_v56 = vld [vmem:[%s9794_s27 + $0x5bc] ss:$48 sps:$4 sm:$0xff]  }
 0x2d0   : > { %6450 = vmatpush2.bf16.msra.mxu0 %v8777_v59  ;;  %v8836_v59 = vld [vmem:[%s9794_s27 + $0xbbc] ss:$48 sps:$4 sm:$0xff]  }
 0x2d1   : > { %6491 = vmatpush2.bf16.msra.mxu1 %v8780_v33  ;;  %6501 = vmatprep.subr.bf16.mxu0 %v8785_v34  ;;  %v8831_v33 = vld [vmem:[%s9794_s27 + $0x5b8] ss:$48 sps:$4 sm:$0xff]  }
 0x2d2   : > { %6542 = vmatprep.subr.bf16.mxu1 %v8788_v35  ;;  %v8834_v34 = vld [vmem:[%s9794_s27 + $0xbb8] ss:$48 sps:$4 sm:$0xff]   ;;  %v8839_v35 = vld [vmem:[%s9794_s27 + $0x55c] ss:$48 sps:$4 sm:$0xff]  }
 0x2d3   : > { %v10311_v39 = vpop.f32.mrf.mxu0  ;;  %6452 = vmatmul.mubr.bf16.vlgmr.msra.gmra.mxu0 %v10011_v30  ;;  %v10315_v41 = vpop.f32.mrf.mxu1 }
 0x2d4   : > { %6493 = vmatmul.mubr.bf16.vlgmr.msra.gmra.mxu1 %v10006_v26  ;;  %6502 = vmatpush1.bf16.msra.mxu0 %v8783_v36  ;;  %v8842_v36 = vld [vmem:[%s9794_s27 + $0xb5c] ss:$48 sps:$4 sm:$0xff]  }
 0x2d5   : > { %6533 = vmatprep.mubr.bf16.mxu0 %v9917_v47  ;;  %6543 = vmatpush1.bf16.msra.mxu1 %v8786_v37  ;;  %v10320_v3 = vpop.f32.mrf.mxu0  ;;  %v10325_v54 = vpop.f32.mrf.mxu1  ;;  %v8837_v37 = vld [vmem:[%s9794_s27 + $0x558] ss:$48 sps:$4 sm:$0xff]  }
 0x2d6   : > { %6574 = vmatprep.mubr.bf16.mxu1 %v9921_v50  ;;  %6503 = vmatprep.subr.bf16.mxu0 %v8791_v38  ;;  %v8840_v38 = vld [vmem:[%s9794_s27 + $0xb58] ss:$48 sps:$4 sm:$0xff]  }
 0x2d7   : > { %v6211_v57 = vpop.f32.mrf.mxu0  ;;  %6544 = vmatprep.subr.bf16.mxu1 %v8794_v40  ;;  %v6252_v58 = vpop.f32.mrf.mxu1  ;;  %v8845_v40 = vld [vmem:[%s9794_s27 + $0x4fc] ss:$48 sps:$4 sm:$0xff]  }
 0x2d8   : > { %6504 = vmatpush1.bf16.msra.mxu0 %v8789_v43  ;;  %v8848_v43 = vld [vmem:[%s9794_s27 + $0xafc] ss:$48 sps:$4 sm:$0xff]   ;;  %v8849_v58 = vld [vmem:[%s9794_s27 + $0x498] ss:$48 sps:$4 sm:$0xff]  }
 0x2d9   : > { %6545 = vmatpush1.bf16.msra.mxu1 %v8792_v51  ;;  %v6212_v61 = vpop.f32.mrf.mxu0  ;;  %6505 = vmatprep.subr.bf16.mxu0 %v8797_v53  ;;  %v6253_v0 = vpop.f32.mrf.mxu1  ;;  %v8843_v51 = vld [vmem:[%s9794_s27 + $0x4f8] ss:$48 sps:$4 sm:$0xff]   ;;  %v8854_v57 = vld [vmem:[%s9794_s27 + $0xa9c] ss:$48 sps:$4 sm:$0xff]  }
 0x2da   : > { %6546 = vmatprep.subr.bf16.mxu1 %v8800_v55  ;;  %v8846_v53 = vld [vmem:[%s9794_s27 + $0xaf8] ss:$48 sps:$4 sm:$0xff]   ;;  %v8851_v55 = vld [vmem:[%s9794_s27 + $0x49c] ss:$48 sps:$4 sm:$0xff]  }
 0x2db   : > { %v8857_v61 = vld [vmem:[%s9794_s27 + $0x43c] ss:$48 sps:$4 sm:$0xff]   ;;  %v8858_v0 = vld [vmem:[%s9794_s27 + $0xa38] ss:$48 sps:$4 sm:$0xff]  }
 0x2dc   : > { %6506 = vmatpush1.bf16.msra.mxu0 %v8795_v60  ;;  %v8852_v60 = vld [vmem:[%s9794_s27 + $0xa98] ss:$48 sps:$4 sm:$0xff]  }
 0x2dd   : > { %6547 = vmatpush1.bf16.msra.mxu1 %v8798_v62  ;;  %6507 = vmatprep.subr.bf16.mxu0 %v8803_v63  ;;  %v8860_v62 = vld [vmem:[%s9794_s27 + $0xa3c] ss:$48 sps:$4 sm:$0xff]   ;;  %v8855_v63 = vld [vmem:[%s9794_s27 + $0x438] ss:$48 sps:$4 sm:$0xff]  }
 0x2de   : > { %6548 = vmatprep.subr.bf16.mxu1 %v8806_v1  ;;  %v8863_v1 = vld [vmem:[%s9794_s27 + $0x3dc] ss:$48 sps:$4 sm:$0xff]  }
 0x2e0   : > { %6508 = vmatpush1.bf16.msra.mxu0 %v8801_v2  ;;  %v8866_v2 = vld [vmem:[%s9794_s27 + $0x9dc] ss:$48 sps:$4 sm:$0xff]  }
 0x2e1   : > { %6549 = vmatpush1.bf16.msra.mxu1 %v8804_v4  ;;  %6509 = vmatprep.subr.bf16.mxu0 %v8809_v5  ;;  %v8861_v4 = vld [vmem:[%s9794_s27 + $0x3d8] ss:$48 sps:$4 sm:$0xff]  }
 0x2e2   : > { %6550 = vmatprep.subr.bf16.mxu1 %v8812_v8  ;;  %v8864_v5 = vld [vmem:[%s9794_s27 + $0x9d8] ss:$48 sps:$4 sm:$0xff]   ;;  %v8869_v8 = vld [vmem:[%s9794_s27 + $0x37c] ss:$48 sps:$4 sm:$0xff]  }
 0x2e4   : > { %6510 = vmatpush1.bf16.msra.mxu0 %v8807_v9  ;;  %v8872_v9 = vld [vmem:[%s9794_s27 + $0x97c] ss:$48 sps:$4 sm:$0xff]  }
 0x2e5   : > { %6551 = vmatpush1.bf16.msra.mxu1 %v8810_v28  ;;  %6511 = vmatprep.subr.bf16.mxu0 %v8815_v10  ;;  %v8867_v28 = vld [vmem:[%s9794_s27 + $0x378] ss:$48 sps:$4 sm:$0xff]  }
 0x2e6   : > { %6552 = vmatprep.subr.bf16.mxu1 %v8818_v20  ;;  %v8870_v10 = vld [vmem:[%s9794_s27 + $0x978] ss:$48 sps:$4 sm:$0xff]   ;;  %v8875_v20 = vld [vmem:[%s9794_s27 + $0x31c] ss:$48 sps:$4 sm:$0xff]  }
 0x2e8   : > { %6512 = vmatpush1.bf16.msra.mxu0 %v8813_v12  ;;  %v2120_v12 = vrot.slane %v10153_v6, %v9896_v23 }
 0x2e9   : > { %6553 = vmatpush1.bf16.msra.mxu1 %v8816_v13  ;;  %6513 = vmatprep.subr.bf16.mxu0 %v8821_v32  ;;  %v8878_v13 = vld [vmem:[%s9794_s27 + $0x91c] ss:$48 sps:$4 sm:$0xff]   ;;  %v2124_v32 = vrot.slane %v10153_v6, %v9902_v25  ;;  %v8882_v6 = vld [vmem:[%s9794_s27 + $0x14b8] ss:$48 sps:$4 sm:$0xff]  }
 0x2ea   : > { %6554 = vmatprep.subr.bf16.mxu1 %v8824_v14  ;;  %v8873_v14 = vld [vmem:[%s9794_s27 + $0x318] ss:$48 sps:$4 sm:$0xff]  }
 0x2ec   : > { %6514 = vmatpush1.bf16.msra.mxu0 %v8819_v16  ;;  %v8876_v16 = vld [vmem:[%s9794_s27 + $0x918] ss:$48 sps:$4 sm:$0xff]  }
 0x2ed   : > { %6555 = vmatpush1.bf16.msra.mxu1 %v8822_v17  ;;  %6515 = vmatprep.subr.bf16.mxu0 %v8827_v18  ;;  %v8881_v17 = vld [vmem:[%s9794_s27 + $0xebc] ss:$48 sps:$4 sm:$0xff]   ;;  %v6208_v18 = vadd.f32 %v10311_v39, %v2120_v12 }
 0x2ee   : > { %6556 = vmatprep.subr.bf16.mxu1 %v8830_v19  ;;  %v8884_v19 = vld [vmem:[%s9794_s27 + $0x14bc] ss:$48 sps:$4 sm:$0xff]  }
 0x2ef   : > { %v8905_v12 = vld [vmem:[%s9794_s27 + $0xd3c] ss:$48 sps:$4 sm:$0xff]  }
 0x2f0   : > { %6516 = vmatpush1.bf16.msra.mxu0 %v8825_v29  ;;  %v9579_v29 = vmov 1983009808  }
 0x2f1   : > { %6557 = vmatpush1.bf16.msra.mxu1 %v8828_v22  ;;  %6517 = vmatprep.subr.bf16.mxu0 %v8833_v56  ;;  %v7008_v22 = vunpack.c.l.s4 %v9579_v29  ;;  %v6210_v56 = vadd.f32 %v10320_v3, %v2124_v32  ;;  %v8908_v32 = vld [vmem:[%s9794_s27 + $0x133c] ss:$48 sps:$4 sm:$0xff]   ;;  %v8915_v29 = vld [vmem:[%s9794_s27 + $0xc78] ss:$48 sps:$4 sm:$0xff]  }
 0x2f2   : > { %6558 = vmatprep.subr.bf16.mxu1 %v8836_v59  ;;  %v8879_v59 = vld [vmem:[%s9794_s27 + $0xeb8] ss:$48 sps:$4 sm:$0xff]  }
 0x2f3   : > { %v6251_v3 = vadd.f32 %v10325_v54, %v6210_v56  ;;  %v8896_v54 = vld [vmem:[%s9794_s27 + $0x13fc] ss:$48 sps:$4 sm:$0xff]  }
 0x2f4   : > { %6518 = vmatpush2.bf16.msra.mxu0 %v8831_v33  ;;  %v6249_v33 = vadd.f32 %v10315_v41, %v6208_v18  ;;  %v8917_v18 = vld [vmem:[%s9794_s27 + $0xc7c] ss:$48 sps:$4 sm:$0xff]  }
 0x2f5   : > { %6559 = vmatpush2.bf16.msra.mxu1 %v8834_v34  ;;  %6519 = vmatprep.subr.bf16.mxu0 %v8839_v35  ;;  %v8887_v34 = vld [vmem:[%s9794_s27 + $0xe5c] ss:$48 sps:$4 sm:$0xff]  }
 0x2f6   : > { %6560 = vmatprep.subr.bf16.mxu1 %v8842_v36  ;;  %v8890_v35 = vld [vmem:[%s9794_s27 + $0x145c] ss:$48 sps:$4 sm:$0xff]   ;;  %v7009_v36 = vunpack.c.0.s8 %v7008_v22  ;;  %v8918_v22 = vld [vmem:[%s9794_s27 + $0x1278] ss:$48 sps:$4 sm:$0xff]  }
 0x2f7   : > { %v8923_v56 = vld [vmem:[%s9794_s27 + $0xc1c] ss:$48 sps:$4 sm:$0xff]  }
 0x2f8   : > { %6520 = vmatpush2.bf16.msra.mxu0 %v8837_v37 }
 0x2f9   : > { %6561 = vmatpush2.bf16.msra.mxu1 %v8840_v38  ;;  %6521 = vmatprep.subr.bf16.mxu0 %v8845_v40  ;;  %v8885_v40 = vld [vmem:[%s9794_s27 + $0xe58] ss:$48 sps:$4 sm:$0xff]  }
 0x2fa   : > { %6562 = vmatprep.subr.bf16.mxu1 %v8848_v43  ;;  %v8888_v43 = vld [vmem:[%s9794_s27 + $0x1458] ss:$48 sps:$4 sm:$0xff]  }
 0x2fc   : > { %6522 = vmatpush2.bf16.msra.mxu0 %v8843_v51  ;;  %v8893_v51 = vld [vmem:[%s9794_s27 + $0xdfc] ss:$48 sps:$4 sm:$0xff]  }
 0x2fd   : > { %6563 = vmatpush2.bf16.msra.mxu1 %v8846_v53  ;;  %6523 = vmatprep.subr.bf16.mxu0 %v8851_v55 }
 0x2fe   : > { %6564 = vmatprep.subr.bf16.mxu1 %v8854_v57 }
 0x300   : > { %6524 = vmatpush2.bf16.msra.mxu0 %v8849_v58  ;;  %v10405_v58 = vsub.s32 %v7009_v36, %v9800_v46  ;;  %v8930_v36 = vld [vmem:[%s9794_s27 + $0x17b8] ss:$48 sps:$4 sm:$0xff]  }
 0x301   : > { %6565 = vmatpush2.bf16.msra.mxu1 %v8852_v60  ;;  %6525 = vmatprep.subr.bf16.mxu0 %v8857_v61  ;;  %v9263_v46 = vld [vmem:[%s9794_s27 + $0xec8] ss:$48 sps:$4 sm:$0xff]  }
 0x302   : > { %6566 = vmatprep.subr.bf16.mxu1 %v8860_v62 }
 0x304   : > { %6526 = vmatpush2.bf16.msra.mxu0 %v8855_v63  ;;  %v8891_v63 = vld [vmem:[%s9794_s27 + $0xdf8] ss:$48 sps:$4 sm:$0xff]  }
 0x305   : > { %6567 = vmatpush2.bf16.msra.mxu1 %v8858_v0  ;;  %6527 = vmatprep.subr.bf16.mxu0 %v8863_v1  ;;  %v8894_v1 = vld [vmem:[%s9794_s27 + $0x13f8] ss:$48 sps:$4 sm:$0xff]  }
 0x306   : > { %6568 = vmatprep.subr.bf16.mxu1 %v8866_v2  ;;  %v8899_v2 = vld [vmem:[%s9794_s27 + $0xd9c] ss:$48 sps:$4 sm:$0xff]  }
 0x308   : > { %6528 = vmatpush2.bf16.msra.mxu0 %v8861_v4 }
 0x309   : > { %6569 = vmatpush2.bf16.msra.mxu1 %v8864_v5  ;;  %6529 = vmatprep.subr.bf16.mxu0 %v8869_v8  ;;  %v8902_v8 = vld [vmem:[%s9794_s27 + $0x139c] ss:$48 sps:$4 sm:$0xff]  }
 0x30a   : > { %6570 = vmatprep.subr.bf16.mxu1 %v8872_v9  ;;  %v7013_v9 = vrot.slane %v7005_v15, %v10405_v58  ;;  %v8911_v15 = vld [vmem:[%s9794_s27 + $0xcdc] ss:$48 sps:$4 sm:$0xff]  }
 0x30c   : > { %6530 = vmatpush2.bf16.msra.mxu0 %v8867_v28 }
 0x30d   : > { %6571 = vmatpush2.bf16.msra.mxu1 %v8870_v10  ;;  %6531 = vmatprep.subr.bf16.mxu0 %v8875_v20  ;;  %v8897_v10 = vld [vmem:[%s9794_s27 + $0xd98] ss:$48 sps:$4 sm:$0xff]  }
 0x30e   : > { %6572 = vmatprep.subr.bf16.mxu1 %v8878_v13  ;;  %v8900_v20 = vld [vmem:[%s9794_s27 + $0x1398] ss:$48 sps:$4 sm:$0xff]  }
 0x310   : > { %6532 = vmatpush2.bf16.msra.mxu0 %v8873_v14  ;;  %v8914_v14 = vld [vmem:[%s9794_s27 + $0x12dc] ss:$48 sps:$4 sm:$0xff]  }
 0x311   : > { %6573 = vmatpush2.bf16.msra.mxu1 %v8876_v16  ;;  %6583 = vmatprep.subr.bf16.mxu0 %v8881_v17  ;;  %v8909_v16 = vld [vmem:[%s9794_s27 + $0xcd8] ss:$48 sps:$4 sm:$0xff]  }
 0x312   : > { %6624 = vmatprep.subr.bf16.mxu1 %v8884_v19  ;;  %v8912_v17 = vld [vmem:[%s9794_s27 + $0x12d8] ss:$48 sps:$4 sm:$0xff]   ;;  %v8920_v19 = vld [vmem:[%s9794_s27 + $0x127c] ss:$48 sps:$4 sm:$0xff]  }
 0x313   : > { %v6289_v39 = vpop.f32.mrf.mxu0  ;;  %6534 = vmatmul.mubr.bf16.vlgmr.msra.gmra.mxu0 %v9919_v49 }
 0x314   : > { %v6290_v37 = vadd.f32 %v6289_v39, %v6249_v33  ;;  %v6330_v38 = vpop.f32.mrf.mxu1  ;;  %6575 = vmatmul.mubr.bf16.vlgmr.msra.gmra.mxu1 %v9915_v45  ;;  %6584 = vmatpush1.bf16.msra.mxu0 %v8879_v59  ;;  %v8926_v59 = vld [vmem:[%s9794_s27 + $0x121c] ss:$48 sps:$4 sm:$0xff]   ;;  %v8924_v33 = vld [vmem:[%s9794_s27 + $0x1218] ss:$48 sps:$4 sm:$0xff]  }
 0x315   : > { %6615 = vmatprep.mubr.bf16.mxu0 %v10008_v27  ;;  %6625 = vmatpush1.bf16.msra.mxu1 %v8882_v6  ;;  %v6291_v41 = vpop.f32.mrf.mxu0  ;;  %v8921_v6 = vld [vmem:[%s9794_s27 + $0xc18] ss:$48 sps:$4 sm:$0xff]   ;;  %v8932_v39 = vld [vmem:[%s9794_s27 + $0x17bc] ss:$48 sps:$4 sm:$0xff]  }
 0x316   : > { %6656 = vmatprep.mubr.bf16.mxu1 %v10013_v31  ;;  %v6292_v53 = vadd.f32 %v6291_v41, %v6251_v3  ;;  %v6332_v55 = vpop.f32.mrf.mxu1  ;;  %6585 = vmatprep.subr.bf16.mxu0 %v8887_v34  ;;  %v6331_v60 = vadd.f32 %v6330_v38, %v6290_v37  ;;  %v8929_v34 = vld [vmem:[%s9794_s27 + $0x11bc] ss:$48 sps:$4 sm:$0xff]   ;;  %v8933_v38 = vld [vmem:[%s9794_s27 + $0x1158] ss:$48 sps:$4 sm:$0xff]  }
 0x317   : > { %v6293_v57 = vpop.f32.mrf.mxu0  ;;  %6626 = vmatprep.subr.bf16.mxu1 %v8890_v35  ;;  %v8927_v35 = vld [vmem:[%s9794_s27 + $0x11b8] ss:$48 sps:$4 sm:$0xff]   ;;  %v8935_v3 = vld [vmem:[%s9794_s27 + $0x115c] ss:$48 sps:$4 sm:$0xff]  }
 0x318   : > { %v6333_v61 = vadd.f32 %v6332_v55, %v6292_v53  ;;  %v6334_v62 = vpop.f32.mrf.mxu1  ;;  %6586 = vmatpush1.bf16.msra.mxu0 %v8885_v40  ;;  %v8938_v37 = vld [vmem:[%s9794_s27 + $0x175c] ss:$48 sps:$4 sm:$0xff]   ;;  %v8936_v40 = vld [vmem:[%s9794_s27 + $0x1758] ss:$48 sps:$4 sm:$0xff]  }
 0x319   : > { %6627 = vmatpush1.bf16.msra.mxu1 %v8888_v43  ;;  %v6294_v0 = vpop.f32.mrf.mxu0  ;;  %6587 = vmatprep.subr.bf16.mxu0 %v8893_v51  ;;  %v8941_v41 = vld [vmem:[%s9794_s27 + $0x10fc] ss:$48 sps:$4 sm:$0xff]   ;;  %v8939_v51 = vld [vmem:[%s9794_s27 + $0x10f8] ss:$48 sps:$4 sm:$0xff]  }
 0x31a   : > { %v7006_v4 = vcombine.low %v6331_v60, %v6333_v61  ;;  %v6335_v5 = vpop.f32.mrf.mxu1  ;;  %6628 = vmatprep.subr.bf16.mxu1 %v8896_v54  ;;  %v8944_v43 = vld [vmem:[%s9794_s27 + $0x16fc] ss:$48 sps:$4 sm:$0xff]   ;;  %v8942_v53 = vld [vmem:[%s9794_s27 + $0x16f8] ss:$48 sps:$4 sm:$0xff]  }
 0x31b   : > { %v8947_v55 = vld [vmem:[%s9794_s27 + $0x109c] ss:$48 sps:$4 sm:$0xff]   ;;  %v8945_v57 = vld [vmem:[%s9794_s27 + $0x1098] ss:$48 sps:$4 sm:$0xff]  }
 0x31c   : > { %v7020_v28 = vrot.slane %v7006_v4, %v10405_v58  ;;  %6588 = vmatpush1.bf16.msra.mxu0 %v8891_v63  ;;  %v8950_v54 = vld [vmem:[%s9794_s27 + $0x169c] ss:$48 sps:$4 sm:$0xff]   ;;  %v8948_v60 = vld [vmem:[%s9794_s27 + $0x1698] ss:$48 sps:$4 sm:$0xff]  }
 0x31d   : > { %6629 = vmatpush1.bf16.msra.mxu1 %v8894_v1  ;;  %6589 = vmatprep.subr.bf16.mxu0 %v8899_v2  ;;  %v8953_v61 = vld [vmem:[%s9794_s27 + $0x103c] ss:$48 sps:$4 sm:$0xff]   ;;  %v8951_v63 = vld [vmem:[%s9794_s27 + $0x1038] ss:$48 sps:$4 sm:$0xff]  }
 0x31e   : > { %v7021_v13 = vcombine.low %v7013_v9, %v7020_v28  ;;  %6630 = vmatprep.subr.bf16.mxu1 %v8902_v8  ;;  %v8956_v62 = vld [vmem:[%s9794_s27 + $0x163c] ss:$48 sps:$4 sm:$0xff]   ;;  %v8954_v0 = vld [vmem:[%s9794_s27 + $0x1638] ss:$48 sps:$4 sm:$0xff]  }
 0x31f   : > { %v8959_v1 = vld [vmem:[%s9794_s27 + $0xfdc] ss:$48 sps:$4 sm:$0xff]   ;;  %v8957_v4 = vld [vmem:[%s9794_s27 + $0xfd8] ss:$48 sps:$4 sm:$0xff]  }
 0x320   : > { %7059 = vst [vmem:[%s10421_s10] sm:$0xff] %v7021_v13  ;;  %6590 = vmatpush1.bf16.msra.mxu0 %v8897_v10  ;;  %v8962_v2 = vld [vmem:[%s9794_s27 + $0x15dc] ss:$48 sps:$4 sm:$0xff]   ;;  %v8960_v5 = vld [vmem:[%s9794_s27 + $0x15d8] ss:$48 sps:$4 sm:$0xff]  }
 0x321   : > { %6631 = vmatpush1.bf16.msra.mxu1 %v8900_v20  ;;  %6591 = vmatprep.subr.bf16.mxu0 %v8905_v12  ;;  %v8965_v8 = vld [vmem:[%s9794_s27 + $0xf7c] ss:$48 sps:$4 sm:$0xff]   ;;  %v8963_v28 = vld [vmem:[%s9794_s27 + $0xf78] ss:$48 sps:$4 sm:$0xff]  }
 0x322   : > { %6632 = vmatprep.subr.bf16.mxu1 %v8908_v32  ;;  %v8968_v9 = vld [vmem:[%s9794_s27 + $0x157c] ss:$48 sps:$4 sm:$0xff]   ;;  %v8966_v10 = vld [vmem:[%s9794_s27 + $0x1578] ss:$48 sps:$4 sm:$0xff]  }
 0x323   : > { %v8971_v20 = vld [vmem:[%s9794_s27 + $0xf1c] ss:$48 sps:$4 sm:$0xff]   ;;  %v8969_v13 = vld [vmem:[%s9794_s27 + $0xf18] ss:$48 sps:$4 sm:$0xff]  }
 0x324   : > { %6592 = vmatpush1.bf16.msra.mxu0 %v8903_v7  ;;  %v8974_v12 = vld [vmem:[%s9794_s27 + $0x151c] ss:$48 sps:$4 sm:$0xff]   ;;  %v8972_v32 = vld [vmem:[%s9794_s27 + $0x1518] ss:$48 sps:$4 sm:$0xff]   ;;  %v8977_v7 = vld [vmem:[%s9794_s27 + $0x2c4] ss:$48 sps:$4 sm:$0xff]  }
 0x325   : > { %6633 = vmatpush1.bf16.msra.mxu1 %v8906_v11  ;;  %6593 = vmatprep.subr.bf16.mxu0 %v8911_v15  ;;  %v8980_v11 = vld [vmem:[%s9794_s27 + $0x8c4] ss:$48 sps:$4 sm:$0xff]  }
 0x326   : > { %6634 = vmatprep.subr.bf16.mxu1 %v8914_v14  ;;  %v10473_v15 = vld [vmem:[%s10150_s9] sm:$0xff] }
 0x327   : > { %v2128_v14 = vrot.slane %v10473_v15, %v470_v42  ;;  %v8981_v42 = vld [vmem:[%s9794_s27 + $0x260] ss:$48 sps:$4 sm:$0xff]  }
 0x328   : > { %6594 = vmatpush1.bf16.msra.mxu0 %v8909_v16  ;;  %v8975_v16 = vld [vmem:[%s9794_s27 + $0x2c0] ss:$48 sps:$4 sm:$0xff]  }
 0x329   : > { %6635 = vmatpush1.bf16.msra.mxu1 %v8912_v17  ;;  %6595 = vmatprep.subr.bf16.mxu0 %v8917_v18  ;;  %v8978_v17 = vld [vmem:[%s9794_s27 + $0x8c0] ss:$48 sps:$4 sm:$0xff]   ;;  %v2132_v18 = vrot.slane %v10473_v15, %v474_v48 }
 0x32a   : > { %6636 = vmatprep.subr.bf16.mxu1 %v8920_v19  ;;  %v8983_v19 = vld [vmem:[%s9794_s27 + $0x264] ss:$48 sps:$4 sm:$0xff]  }
 0x32c   : > { %6596 = vmatpush1.bf16.msra.mxu0 %v8915_v29 }
 0x32d   : > { %6637 = vmatpush1.bf16.msra.mxu1 %v8918_v22  ;;  %6597 = vmatprep.subr.bf16.mxu0 %v8923_v56  ;;  %v8986_v22 = vld [vmem:[%s9794_s27 + $0x864] ss:$48 sps:$4 sm:$0xff]  }
 0x32e   : > { %6638 = vmatprep.subr.bf16.mxu1 %v8926_v59 }
 0x330   : > { %6598 = vmatpush1.bf16.msra.mxu0 %v8921_v6 }
 0x331   : > { %6639 = vmatpush1.bf16.msra.mxu1 %v8924_v33  ;;  %6599 = vmatprep.subr.bf16.mxu0 %v8929_v34  ;;  %v8984_v33 = vld [vmem:[%s9794_s27 + $0x860] ss:$48 sps:$4 sm:$0xff]   ;;  %v8989_v34 = vld [vmem:[%s9794_s27 + $0x204] ss:$48 sps:$4 sm:$0xff]  }
 0x332   : > { %6640 = vmatprep.subr.bf16.mxu1 %v8932_v39 }
 0x334   : > { %6600 = vmatpush2.bf16.msra.mxu0 %v8927_v35 }
 0x335   : > { %6641 = vmatpush2.bf16.msra.mxu1 %v8930_v36  ;;  %6601 = vmatprep.subr.bf16.mxu0 %v8935_v3  ;;  %v8992_v36 = vld [vmem:[%s9794_s27 + $0x804] ss:$48 sps:$4 sm:$0xff]  }
 0x336   : > { %6642 = vmatprep.subr.bf16.mxu1 %v8938_v37 }
 0x338   : > { %6602 = vmatpush2.bf16.msra.mxu0 %v8933_v38 }
 0x339   : > { %6643 = vmatpush2.bf16.msra.mxu1 %v8936_v40  ;;  %6603 = vmatprep.subr.bf16.mxu0 %v8941_v41  ;;  %v8987_v40 = vld [vmem:[%s9794_s27 + $0x200] ss:$48 sps:$4 sm:$0xff]  }
 0x33a   : > { %6644 = vmatprep.subr.bf16.mxu1 %v8944_v43  ;;  %v8990_v43 = vld [vmem:[%s9794_s27 + $0x800] ss:$48 sps:$4 sm:$0xff]  }
 0x33c   : > { %6604 = vmatpush2.bf16.msra.mxu0 %v8939_v51  ;;  %v8995_v51 = vld [vmem:[%s9794_s27 + $0x1a4] ss:$48 sps:$4 sm:$0xff]  }
 0x33d   : > { %6645 = vmatpush2.bf16.msra.mxu1 %v8942_v53  ;;  %6605 = vmatprep.subr.bf16.mxu0 %v8947_v55  ;;  %v8998_v55 = vld [vmem:[%s9794_s27 + $0x7a4] ss:$48 sps:$4 sm:$0xff]  }
 0x33e   : > { %6646 = vmatprep.subr.bf16.mxu1 %v8950_v54  ;;  %v8993_v54 = vld [vmem:[%s9794_s27 + $0x1a0] ss:$48 sps:$4 sm:$0xff]  }
 0x340   : > { %6606 = vmatpush2.bf16.msra.mxu0 %v8945_v57  ;;  %v8996_v57 = vld [vmem:[%s9794_s27 + $0x7a0] ss:$48 sps:$4 sm:$0xff]  }
 0x341   : > { %6647 = vmatpush2.bf16.msra.mxu1 %v8948_v60  ;;  %6607 = vmatprep.subr.bf16.mxu0 %v8953_v61  ;;  %v9001_v60 = vld [vmem:[%s9794_s27 + $0x144] ss:$48 sps:$4 sm:$0xff]  }
 0x342   : > { %6648 = vmatprep.subr.bf16.mxu1 %v8956_v62  ;;  %v9004_v61 = vld [vmem:[%s9794_s27 + $0x744] ss:$48 sps:$4 sm:$0xff]   ;;  %v8999_v62 = vld [vmem:[%s9794_s27 + $0x140] ss:$48 sps:$4 sm:$0xff]  }
 0x344   : > { %6608 = vmatpush2.bf16.msra.mxu0 %v8951_v63  ;;  %v9002_v63 = vld [vmem:[%s9794_s27 + $0x740] ss:$48 sps:$4 sm:$0xff]  }
 0x345   : > { %6649 = vmatpush2.bf16.msra.mxu1 %v8954_v0  ;;  %6609 = vmatprep.subr.bf16.mxu0 %v8959_v1  ;;  %v9007_v0 = vld [vmem:[%s9794_s27 + $0xe4] ss:$48 sps:$4 sm:$0xff]  }
 0x346   : > { %6650 = vmatprep.subr.bf16.mxu1 %v8962_v2  ;;  %v9010_v1 = vld [vmem:[%s9794_s27 + $0x6e4] ss:$48 sps:$4 sm:$0xff]   ;;  %v9005_v2 = vld [vmem:[%s9794_s27 + $0xe0] ss:$48 sps:$4 sm:$0xff]  }
 0x348   : > { %6610 = vmatpush2.bf16.msra.mxu0 %v8957_v4  ;;  %v9008_v4 = vld [vmem:[%s9794_s27 + $0x6e0] ss:$48 sps:$4 sm:$0xff]  }
 0x349   : > { %6651 = vmatpush2.bf16.msra.mxu1 %v8960_v5  ;;  %6611 = vmatprep.subr.bf16.mxu0 %v8965_v8  ;;  %v9013_v5 = vld [vmem:[%s9794_s27 + $0x84] ss:$48 sps:$4 sm:$0xff]  }
 0x34a   : > { %6652 = vmatprep.subr.bf16.mxu1 %v8968_v9  ;;  %v9016_v8 = vld [vmem:[%s9794_s27 + $0x684] ss:$48 sps:$4 sm:$0xff]   ;;  %v9011_v9 = vld [vmem:[%s9794_s27 + $0x80] ss:$48 sps:$4 sm:$0xff]  }
 0x34c   : > { %6612 = vmatpush2.bf16.msra.mxu0 %v8963_v28  ;;  %v9014_v28 = vld [vmem:[%s9794_s27 + $0x680] ss:$48 sps:$4 sm:$0xff]  }
 0x34d   : > { %6653 = vmatpush2.bf16.msra.mxu1 %v8966_v10  ;;  %6613 = vmatprep.subr.bf16.mxu0 %v8971_v20  ;;  %v9019_v10 = vld [vmem:[%s9794_s27 + $0x24] ss:$48 sps:$4 sm:$0xff]  }
 0x34e   : > { %6654 = vmatprep.subr.bf16.mxu1 %v8974_v12  ;;  %v9022_v20 = vld [vmem:[%s9794_s27 + $0x624] ss:$48 sps:$4 sm:$0xff]   ;;  %v9017_v12 = vld [vmem:[%s9794_s27 + $0x20] ss:$48 sps:$4 sm:$0xff]  }
 0x350   : > { %6614 = vmatpush2.bf16.msra.mxu0 %v8969_v13  ;;  %v9020_v13 = vld [vmem:[%s9794_s27 + $0x620] ss:$48 sps:$4 sm:$0xff]  }
 0x351   : > { %6655 = vmatpush2.bf16.msra.mxu1 %v8972_v32  ;;  %6665 = vmatprep.subr.bf16.mxu0 %v8977_v7  ;;  %v9025_v32 = vld [vmem:[%s9794_s27 + $0x5c4] ss:$48 sps:$4 sm:$0xff]  }
 0x352   : > { %6706 = vmatprep.subr.bf16.mxu1 %v8980_v11  ;;  %v9028_v7 = vld [vmem:[%s9794_s27 + $0xbc4] ss:$48 sps:$4 sm:$0xff]   ;;  %v9023_v11 = vld [vmem:[%s9794_s27 + $0x5c0] ss:$48 sps:$4 sm:$0xff]  }
 0x353   : > { %v6371_v29 = vpop.f32.mrf.mxu0  ;;  %6616 = vmatmul.mubr.bf16.vlgmr.msra.gmra.mxu0 %v10011_v30 }
 0x354   : > { %v6372_v56 = vadd.f32 %v6371_v29, %v2128_v14  ;;  %v6412_v59 = vpop.f32.mrf.mxu1  ;;  %6657 = vmatmul.mubr.bf16.vlgmr.msra.gmra.mxu1 %v10006_v26  ;;  %6666 = vmatpush1.bf16.msra.mxu0 %v8975_v16  ;;  %v9026_v14 = vld [vmem:[%s9794_s27 + $0xbc0] ss:$48 sps:$4 sm:$0xff]   ;;  %v9031_v16 = vld [vmem:[%s9794_s27 + $0x564] ss:$48 sps:$4 sm:$0xff]  }
 0x355   : > { %6697 = vmatprep.mubr.bf16.mxu0 %v9917_v47  ;;  %6707 = vmatpush1.bf16.msra.mxu1 %v8978_v17  ;;  %v6373_v6 = vpop.f32.mrf.mxu0  ;;  %v9034_v17 = vld [vmem:[%s9794_s27 + $0xb64] ss:$48 sps:$4 sm:$0xff]  }
 0x356   : > { %v10491_v48 = vadd.f32 %v6412_v59, %v6372_v56  ;;  %6738 = vmatprep.mubr.bf16.mxu1 %v9921_v50  ;;  %v6374_v39 = vadd.f32 %v6373_v6, %v2132_v18  ;;  %v6414_v35 = vpop.f32.mrf.mxu1  ;;  %6667 = vmatprep.subr.bf16.mxu0 %v8983_v19  ;;  %v9029_v18 = vld [vmem:[%s9794_s27 + $0x560] ss:$48 sps:$4 sm:$0xff]   ;;  %v9037_v29 = vld [vmem:[%s9794_s27 + $0x504] ss:$48 sps:$4 sm:$0xff]  }
 0x357   : > { %v6375_v3 = vpop.f32.mrf.mxu0  ;;  %6708 = vmatprep.subr.bf16.mxu1 %v8986_v22  ;;  %v9032_v19 = vld [vmem:[%s9794_s27 + $0xb60] ss:$48 sps:$4 sm:$0xff]   ;;  %v9040_v22 = vld [vmem:[%s9794_s27 + $0xb04] ss:$48 sps:$4 sm:$0xff]  }
 0x358   : > { %v10495_v37 = vadd.f32 %v6414_v35, %v6374_v39  ;;  %v6416_v38 = vpop.f32.mrf.mxu1  ;;  %6668 = vmatpush1.bf16.msra.mxu0 %v8981_v42  ;;  %v9035_v56 = vld [vmem:[%s9794_s27 + $0x500] ss:$48 sps:$4 sm:$0xff]   ;;  %v9043_v42 = vld [vmem:[%s9794_s27 + $0x4a4] ss:$48 sps:$4 sm:$0xff]  }
 0x359   : > { %6709 = vmatpush1.bf16.msra.mxu1 %v8984_v33  ;;  %v6376_v41 = vpop.f32.mrf.mxu0  ;;  %6669 = vmatprep.subr.bf16.mxu0 %v8989_v34  ;;  %v9038_v59 = vld [vmem:[%s9794_s27 + $0xb00] ss:$48 sps:$4 sm:$0xff]   ;;  %v9046_v6 = vld [vmem:[%s9794_s27 + $0xaa4] ss:$48 sps:$4 sm:$0xff]  }
 0x35a   : > { %v6417_v53 = vpop.f32.mrf.mxu1  ;;  %6710 = vmatprep.subr.bf16.mxu1 %v8992_v36  ;;  %v9041_v33 = vld [vmem:[%s9794_s27 + $0x4a0] ss:$48 sps:$4 sm:$0xff]   ;;  %v9049_v39 = vld [vmem:[%s9794_s27 + $0x444] ss:$48 sps:$4 sm:$0xff]  }
 0x35b   : > { %v9044_v34 = vld [vmem:[%s9794_s27 + $0xaa0] ss:$48 sps:$4 sm:$0xff]   ;;  %v9052_v35 = vld [vmem:[%s9794_s27 + $0xa44] ss:$48 sps:$4 sm:$0xff]  }
 0x35c   : > { %6670 = vmatpush1.bf16.msra.mxu0 %v8987_v40  ;;  %v9047_v36 = vld [vmem:[%s9794_s27 + $0x440] ss:$48 sps:$4 sm:$0xff]   ;;  %v9055_v38 = vld [vmem:[%s9794_s27 + $0x3e4] ss:$48 sps:$4 sm:$0xff]  }
 0x35d   : > { %6711 = vmatpush1.bf16.msra.mxu1 %v8990_v43  ;;  %6671 = vmatprep.subr.bf16.mxu0 %v8995_v51  ;;  %v9050_v3 = vld [vmem:[%s9794_s27 + $0xa40] ss:$48 sps:$4 sm:$0xff]   ;;  %v9058_v40 = vld [vmem:[%s9794_s27 + $0x9e4] ss:$48 sps:$4 sm:$0xff]  }
 0x35e   : > { %6712 = vmatprep.subr.bf16.mxu1 %v8998_v55  ;;  %v9053_v41 = vld [vmem:[%s9794_s27 + $0x3e0] ss:$48 sps:$4 sm:$0xff]   ;;  %v9061_v51 = vld [vmem:[%s9794_s27 + $0x384] ss:$48 sps:$4 sm:$0xff]  }
 0x35f   : > { %v9056_v43 = vld [vmem:[%s9794_s27 + $0x9e0] ss:$48 sps:$4 sm:$0xff]   ;;  %v9064_v53 = vld [vmem:[%s9794_s27 + $0x984] ss:$48 sps:$4 sm:$0xff]  }
 0x360   : > { %6672 = vmatpush1.bf16.msra.mxu0 %v8993_v54  ;;  %v9059_v55 = vld [vmem:[%s9794_s27 + $0x380] ss:$48 sps:$4 sm:$0xff]  }
 0x361   : > { %6713 = vmatpush1.bf16.msra.mxu1 %v8996_v57  ;;  %6673 = vmatprep.subr.bf16.mxu0 %v9001_v60  ;;  %v9062_v54 = vld [vmem:[%s9794_s27 + $0x980] ss:$48 sps:$4 sm:$0xff]   ;;  %v9067_v57 = vld [vmem:[%s9794_s27 + $0x324] ss:$48 sps:$4 sm:$0xff]  }
 0x362   : > { %6714 = vmatprep.subr.bf16.mxu1 %v9004_v61  ;;  %v9070_v60 = vld [vmem:[%s9794_s27 + $0x924] ss:$48 sps:$4 sm:$0xff]   ;;  %v9065_v61 = vld [vmem:[%s9794_s27 + $0x320] ss:$48 sps:$4 sm:$0xff]  }
 0x364   : > { %6674 = vmatpush1.bf16.msra.mxu0 %v8999_v62  ;;  %v9068_v62 = vld [vmem:[%s9794_s27 + $0x920] ss:$48 sps:$4 sm:$0xff]  }
 0x365   : > { %6715 = vmatpush1.bf16.msra.mxu1 %v9002_v63  ;;  %6675 = vmatprep.subr.bf16.mxu0 %v9007_v0  ;;  %v9073_v63 = vld [vmem:[%s9794_s27 + $0xec4] ss:$48 sps:$4 sm:$0xff]  }
 0x366   : > { %6716 = vmatprep.subr.bf16.mxu1 %v9010_v1  ;;  %v9076_v0 = vld [vmem:[%s9794_s27 + $0x14c4] ss:$48 sps:$4 sm:$0xff]   ;;  %v9071_v1 = vld [vmem:[%s9794_s27 + $0xec0] ss:$48 sps:$4 sm:$0xff]  }
 0x368   : > { %6676 = vmatpush1.bf16.msra.mxu0 %v9005_v2  ;;  %v9074_v2 = vld [vmem:[%s9794_s27 + $0x14c0] ss:$48 sps:$4 sm:$0xff]  }
 0x369   : > { %6717 = vmatpush1.bf16.msra.mxu1 %v9008_v4  ;;  %6677 = vmatprep.subr.bf16.mxu0 %v9013_v5  ;;  %v9079_v4 = vld [vmem:[%s9794_s27 + $0xe64] ss:$48 sps:$4 sm:$0xff]  }
 0x36a   : > { %6718 = vmatprep.subr.bf16.mxu1 %v9016_v8  ;;  %v9082_v8 = vld [vmem:[%s9794_s27 + $0x1464] ss:$48 sps:$4 sm:$0xff]  }
 0x36c   : > { %6678 = vmatpush1.bf16.msra.mxu0 %v9011_v9 }
 0x36d   : > { %6719 = vmatpush1.bf16.msra.mxu1 %v9014_v28  ;;  %6679 = vmatprep.subr.bf16.mxu0 %v9019_v10  ;;  %v9077_v10 = vld [vmem:[%s9794_s27 + $0xe60] ss:$48 sps:$4 sm:$0xff]  }
 0x36e   : > { %6720 = vmatprep.subr.bf16.mxu1 %v9022_v20 }
 0x370   : > { %6680 = vmatpush1.bf16.msra.mxu0 %v9017_v12  ;;  %v9080_v12 = vld [vmem:[%s9794_s27 + $0x1460] ss:$48 sps:$4 sm:$0xff]  }
 0x371   : > { %6721 = vmatpush1.bf16.msra.mxu1 %v9020_v13  ;;  %6681 = vmatprep.subr.bf16.mxu0 %v9025_v32  ;;  %v9085_v13 = vld [vmem:[%s9794_s27 + $0xe04] ss:$48 sps:$4 sm:$0xff]  }
 0x372   : > { %6722 = vmatprep.subr.bf16.mxu1 %v9028_v7 }
 0x374   : > { %6682 = vmatpush2.bf16.msra.mxu0 %v9023_v11  ;;  %v9088_v11 = vld [vmem:[%s9794_s27 + $0x1404] ss:$48 sps:$4 sm:$0xff]  }
 0x375   : > { %6723 = vmatpush2.bf16.msra.mxu1 %v9026_v14  ;;  %6683 = vmatprep.subr.bf16.mxu0 %v9031_v16 }
 0x376   : > { %6724 = vmatprep.subr.bf16.mxu1 %v9034_v17 }
 0x378   : > { %6684 = vmatpush2.bf16.msra.mxu0 %v9029_v18  ;;  %v9083_v18 = vld [vmem:[%s9794_s27 + $0xe00] ss:$48 sps:$4 sm:$0xff]  }
 0x379   : > { %6725 = vmatpush2.bf16.msra.mxu1 %v9032_v19  ;;  %6685 = vmatprep.subr.bf16.mxu0 %v9037_v29  ;;  %v9091_v29 = vld [vmem:[%s9794_s27 + $0xda4] ss:$48 sps:$4 sm:$0xff]  }
 0x37a   : > { %6726 = vmatprep.subr.bf16.mxu1 %v9040_v22 }
 0x37c   : > { %6686 = vmatpush2.bf16.msra.mxu0 %v9035_v56 }
 0x37d   : > { %6727 = vmatpush2.bf16.msra.mxu1 %v9038_v59  ;;  %6687 = vmatprep.subr.bf16.mxu0 %v9043_v42  ;;  %v9094_v59 = vld [vmem:[%s9794_s27 + $0x13a4] ss:$48 sps:$4 sm:$0xff]   ;;  %v9089_v42 = vld [vmem:[%s9794_s27 + $0xda0] ss:$48 sps:$4 sm:$0xff]  }
 0x37e   : > { %6728 = vmatprep.subr.bf16.mxu1 %v9046_v6  ;;  %v9092_v6 = vld [vmem:[%s9794_s27 + $0x13a0] ss:$48 sps:$4 sm:$0xff]  }
 0x380   : > { %6688 = vmatpush2.bf16.msra.mxu0 %v9041_v33  ;;  %v9097_v33 = vld [vmem:[%s9794_s27 + $0xd44] ss:$48 sps:$4 sm:$0xff]  }
 0x381   : > { %6729 = vmatpush2.bf16.msra.mxu1 %v9044_v34  ;;  %6689 = vmatprep.subr.bf16.mxu0 %v9049_v39  ;;  %v9100_v34 = vld [vmem:[%s9794_s27 + $0x1344] ss:$48 sps:$4 sm:$0xff]   ;;  %v9095_v39 = vld [vmem:[%s9794_s27 + $0xd40] ss:$48 sps:$4 sm:$0xff]  }
 0x382   : > { %6730 = vmatprep.subr.bf16.mxu1 %v9052_v35  ;;  %v9098_v35 = vld [vmem:[%s9794_s27 + $0x1340] ss:$48 sps:$4 sm:$0xff]  }
 0x384   : > { %6690 = vmatpush2.bf16.msra.mxu0 %v9047_v36  ;;  %v9103_v36 = vld [vmem:[%s9794_s27 + $0xce4] ss:$48 sps:$4 sm:$0xff]  }
 0x385   : > { %6731 = vmatpush2.bf16.msra.mxu1 %v9050_v3  ;;  %6691 = vmatprep.subr.bf16.mxu0 %v9055_v38  ;;  %v9106_v3 = vld [vmem:[%s9794_s27 + $0x12e4] ss:$48 sps:$4 sm:$0xff]   ;;  %v9101_v38 = vld [vmem:[%s9794_s27 + $0xce0] ss:$48 sps:$4 sm:$0xff]  }
 0x386   : > { %6732 = vmatprep.subr.bf16.mxu1 %v9058_v40  ;;  %v9104_v40 = vld [vmem:[%s9794_s27 + $0x12e0] ss:$48 sps:$4 sm:$0xff]  }
 0x388   : > { %6692 = vmatpush2.bf16.msra.mxu0 %v9053_v41  ;;  %v9109_v41 = vld [vmem:[%s9794_s27 + $0xc84] ss:$48 sps:$4 sm:$0xff]  }
 0x389   : > { %6733 = vmatpush2.bf16.msra.mxu1 %v9056_v43  ;;  %6693 = vmatprep.subr.bf16.mxu0 %v9061_v51  ;;  %v9112_v43 = vld [vmem:[%s9794_s27 + $0x1284] ss:$48 sps:$4 sm:$0xff]   ;;  %v9107_v51 = vld [vmem:[%s9794_s27 + $0xc80] ss:$48 sps:$4 sm:$0xff]  }
 0x38a   : > { %6734 = vmatprep.subr.bf16.mxu1 %v9064_v53  ;;  %v9110_v53 = vld [vmem:[%s9794_s27 + $0x1280] ss:$48 sps:$4 sm:$0xff]  }
 0x38c   : > { %6694 = vmatpush2.bf16.msra.mxu0 %v9059_v55  ;;  %v9115_v55 = vld [vmem:[%s9794_s27 + $0xc24] ss:$48 sps:$4 sm:$0xff]  }
 0x38d   : > { %6735 = vmatpush2.bf16.msra.mxu1 %v9062_v54  ;;  %6695 = vmatprep.subr.bf16.mxu0 %v9067_v57  ;;  %v9118_v54 = vld [vmem:[%s9794_s27 + $0x1224] ss:$48 sps:$4 sm:$0xff]   ;;  %v9113_v57 = vld [vmem:[%s9794_s27 + $0xc20] ss:$48 sps:$4 sm:$0xff]  }
 0x38e   : > { %6736 = vmatprep.subr.bf16.mxu1 %v9070_v60  ;;  %v9116_v60 = vld [vmem:[%s9794_s27 + $0x1220] ss:$48 sps:$4 sm:$0xff]  }
 0x390   : > { %6696 = vmatpush2.bf16.msra.mxu0 %v9065_v61  ;;  %v9121_v61 = vld [vmem:[%s9794_s27 + $0x11c4] ss:$48 sps:$4 sm:$0xff]  }
 0x391   : > { %6737 = vmatpush2.bf16.msra.mxu1 %v9068_v62  ;;  %6747 = vmatprep.subr.bf16.mxu0 %v9073_v63  ;;  %v9124_v62 = vld [vmem:[%s9794_s27 + $0x17c4] ss:$48 sps:$4 sm:$0xff]   ;;  %v9119_v63 = vld [vmem:[%s9794_s27 + $0x11c0] ss:$48 sps:$4 sm:$0xff]  }
 0x392   : > { %6788 = vmatprep.subr.bf16.mxu1 %v9076_v0  ;;  %v9122_v0 = vld [vmem:[%s9794_s27 + $0x17c0] ss:$48 sps:$4 sm:$0xff]  }
 0x393   : > { %v6453_v5 = vpop.f32.mrf.mxu0  ;;  %6698 = vmatmul.mubr.bf16.vlgmr.msra.gmra.mxu0 %v9919_v49 }
 0x394   : > { %v6454_v9 = vadd.f32 %v6453_v5, %v10491_v48  ;;  %v6494_v28 = vpop.f32.mrf.mxu1  ;;  %6739 = vmatmul.mubr.bf16.vlgmr.msra.gmra.mxu1 %v9915_v45  ;;  %6748 = vmatpush1.bf16.msra.mxu0 %v9071_v1  ;;  %v9127_v1 = vld [vmem:[%s9794_s27 + $0x1164] ss:$48 sps:$4 sm:$0xff]   ;;  %v9128_v5 = vld [vmem:[%s9794_s27 + $0x1760] ss:$48 sps:$4 sm:$0xff]  }
 0x395   : > { %6779 = vmatprep.mubr.bf16.mxu0 %v10008_v27  ;;  %6789 = vmatpush1.bf16.msra.mxu1 %v9074_v2  ;;  %v6455_v20 = vpop.f32.mrf.mxu0  ;;  %v9130_v2 = vld [vmem:[%s9794_s27 + $0x1764] ss:$48 sps:$4 sm:$0xff]  }
 0x396   : > { %v10564_v32 = vadd.f32 %v6494_v28, %v6454_v9  ;;  %6820 = vmatprep.mubr.bf16.mxu1 %v10013_v31  ;;  %v6456_v48 = vadd.f32 %v6455_v20, %v10495_v37  ;;  %v6496_v7 = vpop.f32.mrf.mxu1  ;;  %6749 = vmatprep.subr.bf16.mxu0 %v9079_v4  ;;  %v9086_v37 = vld [vmem:[%s9794_s27 + $0x1400] ss:$48 sps:$4 sm:$0xff]   ;;  %v9136_v9 = vld [vmem:[%s9794_s27 + $0x1704] ss:$48 sps:$4 sm:$0xff]  }
 0x397   : > { %v6457_v14 = vpop.f32.mrf.mxu0  ;;  %6790 = vmatprep.subr.bf16.mxu1 %v9082_v8  ;;  %v9125_v4 = vld [vmem:[%s9794_s27 + $0x1160] ss:$48 sps:$4 sm:$0xff]   ;;  %v9133_v8 = vld [vmem:[%s9794_s27 + $0x1104] ss:$48 sps:$4 sm:$0xff]  }
 0x398   : > { %v10569_v16 = vadd.f32 %v6496_v7, %v6456_v48  ;;  %v6498_v17 = vpop.f32.mrf.mxu1  ;;  %6750 = vmatpush1.bf16.msra.mxu0 %v9077_v10  ;;  %v9131_v28 = vld [vmem:[%s9794_s27 + $0x1100] ss:$48 sps:$4 sm:$0xff]   ;;  %v9139_v20 = vld [vmem:[%s9794_s27 + $0x10a4] ss:$48 sps:$4 sm:$0xff]  }
 0x399   : > { %6791 = vmatpush1.bf16.msra.mxu1 %v9080_v12  ;;  %v6458_v19 = vpop.f32.mrf.mxu0  ;;  %6751 = vmatprep.subr.bf16.mxu0 %v9085_v13  ;;  %v9134_v10 = vld [vmem:[%s9794_s27 + $0x1700] ss:$48 sps:$4 sm:$0xff]   ;;  %v9142_v12 = vld [vmem:[%s9794_s27 + $0x16a4] ss:$48 sps:$4 sm:$0xff]  }
 0x39a   : > { %v7022_v22 = vcombine.low %v10564_v32, %v10569_v16  ;;  %v6499_v56 = vpop.f32.mrf.mxu1  ;;  %6792 = vmatprep.subr.bf16.mxu1 %v9088_v11  ;;  %v9137_v13 = vld [vmem:[%s9794_s27 + $0x10a0] ss:$48 sps:$4 sm:$0xff]   ;;  %v9145_v7 = vld [vmem:[%s9794_s27 + $0x1044] ss:$48 sps:$4 sm:$0xff]   ;;  %v9287_v32 = vld [vmem:[%s9794_s27 + $0xd48] ss:$48 sps:$4 sm:$0xff]  }
 0x39b   : > { %v9140_v48 = vld [vmem:[%s9794_s27 + $0x16a0] ss:$48 sps:$4 sm:$0xff]   ;;  %v9148_v11 = vld [vmem:[%s9794_s27 + $0x1644] ss:$48 sps:$4 sm:$0xff]   ;;  %v9290_v16 = vld [vmem:[%s9794_s27 + $0x1348] ss:$48 sps:$4 sm:$0xff]  }
 0x39c   : > { %6752 = vmatpush1.bf16.msra.mxu0 %v9083_v18  ;;  %v9143_v14 = vld [vmem:[%s9794_s27 + $0x1040] ss:$48 sps:$4 sm:$0xff]   ;;  %v9151_v18 = vld [vmem:[%s9794_s27 + $0xfe4] ss:$48 sps:$4 sm:$0xff]  }
 0x39d   : > { %6793 = vmatpush1.bf16.msra.mxu1 %v9086_v37  ;;  %6753 = vmatprep.subr.bf16.mxu0 %v9091_v29  ;;  %v9146_v17 = vld [vmem:[%s9794_s27 + $0x1640] ss:$48 sps:$4 sm:$0xff]   ;;  %v9154_v19 = vld [vmem:[%s9794_s27 + $0x15e4] ss:$48 sps:$4 sm:$0xff]  }
 0x39e   : > { %6794 = vmatprep.subr.bf16.mxu1 %v9094_v59  ;;  %v9149_v37 = vld [vmem:[%s9794_s27 + $0xfe0] ss:$48 sps:$4 sm:$0xff]   ;;  %v9157_v56 = vld [vmem:[%s9794_s27 + $0xf84] ss:$48 sps:$4 sm:$0xff]  }
 0x39f   : > { %v9152_v29 = vld [vmem:[%s9794_s27 + $0x15e0] ss:$48 sps:$4 sm:$0xff]   ;;  %v9160_v59 = vld [vmem:[%s9794_s27 + $0x1584] ss:$48 sps:$4 sm:$0xff]  }
 0x3a0   : > { %6754 = vmatpush1.bf16.msra.mxu0 %v9089_v42  ;;  %v9155_v42 = vld [vmem:[%s9794_s27 + $0xf80] ss:$48 sps:$4 sm:$0xff]  }
 0x3a1   : > { %6795 = vmatpush1.bf16.msra.mxu1 %v9092_v6  ;;  %6755 = vmatprep.subr.bf16.mxu0 %v9097_v33  ;;  %v9158_v6 = vld [vmem:[%s9794_s27 + $0x1580] ss:$48 sps:$4 sm:$0xff]   ;;  %v9163_v33 = vld [vmem:[%s9794_s27 + $0xf24] ss:$48 sps:$4 sm:$0xff]  }
 0x3a2   : > { %6796 = vmatprep.subr.bf16.mxu1 %v9100_v34  ;;  %v9166_v34 = vld [vmem:[%s9794_s27 + $0x1524] ss:$48 sps:$4 sm:$0xff]  }
 0x3a4   : > { %6756 = vmatpush1.bf16.msra.mxu0 %v9095_v39  ;;  %v9161_v39 = vld [vmem:[%s9794_s27 + $0xf20] ss:$48 sps:$4 sm:$0xff]  }
 0x3a5   : > { %6797 = vmatpush1.bf16.msra.mxu1 %v9098_v35  ;;  %6757 = vmatprep.subr.bf16.mxu0 %v9103_v36  ;;  %v9164_v35 = vld [vmem:[%s9794_s27 + $0x1520] ss:$48 sps:$4 sm:$0xff]   ;;  %v9169_v36 = vld [vmem:[%s9794_s27 + $0x2cc] ss:$48 sps:$4 sm:$0xff]  }
 0x3a6   : > { %6798 = vmatprep.subr.bf16.mxu1 %v9106_v3  ;;  %v9172_v3 = vld [vmem:[%s9794_s27 + $0x8cc] ss:$48 sps:$4 sm:$0xff]  }
 0x3a8   : > { %6758 = vmatpush1.bf16.msra.mxu0 %v9101_v38  ;;  %v9167_v38 = vld [vmem:[%s9794_s27 + $0x2c8] ss:$48 sps:$4 sm:$0xff]  }
 0x3a9   : > { %6799 = vmatpush1.bf16.msra.mxu1 %v9104_v40  ;;  %6759 = vmatprep.subr.bf16.mxu0 %v9109_v41  ;;  %v9170_v40 = vld [vmem:[%s9794_s27 + $0x8c8] ss:$48 sps:$4 sm:$0xff]   ;;  %v9175_v41 = vld [vmem:[%s9794_s27 + $0x26c] ss:$48 sps:$4 sm:$0xff]  }
 0x3aa   : > { %6800 = vmatprep.subr.bf16.mxu1 %v9112_v43 }
 0x3ac   : > { %6760 = vmatpush1.bf16.msra.mxu0 %v9107_v51  ;;  %v9178_v51 = vld [vmem:[%s9794_s27 + $0x86c] ss:$48 sps:$4 sm:$0xff]  }
 0x3ad   : > { %6801 = vmatpush1.bf16.msra.mxu1 %v9110_v53  ;;  %6761 = vmatprep.subr.bf16.mxu0 %v9115_v55  ;;  %v9173_v55 = vld [vmem:[%s9794_s27 + $0x268] ss:$48 sps:$4 sm:$0xff]  }
 0x3ae   : > { %6802 = vmatprep.subr.bf16.mxu1 %v9118_v54 }
 0x3b0   : > { %6762 = vmatpush1.bf16.msra.mxu0 %v9113_v57  ;;  %v9176_v57 = vld [vmem:[%s9794_s27 + $0x868] ss:$48 sps:$4 sm:$0xff]  }
 0x3b1   : > { %6803 = vmatpush1.bf16.msra.mxu1 %v9116_v60  ;;  %6763 = vmatprep.subr.bf16.mxu0 %v9121_v61  ;;  %v9181_v60 = vld [vmem:[%s9794_s27 + $0x20c] ss:$48 sps:$4 sm:$0xff]  }
 0x3b2   : > { %6804 = vmatprep.subr.bf16.mxu1 %v9124_v62  ;;  %v9184_v62 = vld [vmem:[%s9794_s27 + $0x80c] ss:$48 sps:$4 sm:$0xff]  }
 0x3b4   : > { %6764 = vmatpush2.bf16.msra.mxu0 %v9119_v63 }
 0x3b5   : > { %6805 = vmatpush2.bf16.msra.mxu1 %v9122_v0  ;;  %6765 = vmatprep.subr.bf16.mxu0 %v9127_v1 }
 0x3b6   : > { %6806 = vmatprep.subr.bf16.mxu1 %v9130_v2  ;;  %v9182_v2 = vld [vmem:[%s9794_s27 + $0x808] ss:$48 sps:$4 sm:$0xff]  }
 0x3b8   : > { %6766 = vmatpush2.bf16.msra.mxu0 %v9125_v4 }
 0x3b9   : > { %6807 = vmatpush2.bf16.msra.mxu1 %v9128_v5  ;;  %6767 = vmatprep.subr.bf16.mxu0 %v9133_v8  ;;  %v9190_v5 = vld [vmem:[%s9794_s27 + $0x7ac] ss:$48 sps:$4 sm:$0xff]   ;;  %v9185_v8 = vld [vmem:[%s9794_s27 + $0x1a8] ss:$48 sps:$4 sm:$0xff]  }
 0x3ba   : > { %6808 = vmatprep.subr.bf16.mxu1 %v9136_v9  ;;  %v9188_v9 = vld [vmem:[%s9794_s27 + $0x7a8] ss:$48 sps:$4 sm:$0xff]  }
 0x3bc   : > { %6768 = vmatpush2.bf16.msra.mxu0 %v9131_v28  ;;  %v9193_v28 = vld [vmem:[%s9794_s27 + $0x14c] ss:$48 sps:$4 sm:$0xff]  }
 0x3bd   : > { %6809 = vmatpush2.bf16.msra.mxu1 %v9134_v10  ;;  %6769 = vmatprep.subr.bf16.mxu0 %v9139_v20  ;;  %v9196_v10 = vld [vmem:[%s9794_s27 + $0x74c] ss:$48 sps:$4 sm:$0xff]   ;;  %v9191_v20 = vld [vmem:[%s9794_s27 + $0x148] ss:$48 sps:$4 sm:$0xff]  }
 0x3be   : > { %6810 = vmatprep.subr.bf16.mxu1 %v9142_v12  ;;  %v9194_v12 = vld [vmem:[%s9794_s27 + $0x748] ss:$48 sps:$4 sm:$0xff]  }
 0x3c0   : > { %6770 = vmatpush2.bf16.msra.mxu0 %v9137_v13  ;;  %v9199_v13 = vld [vmem:[%s9794_s27 + $0xec] ss:$48 sps:$4 sm:$0xff]  }
 0x3c1   : > { %6811 = vmatpush2.bf16.msra.mxu1 %v9140_v48  ;;  %6771 = vmatprep.subr.bf16.mxu0 %v9145_v7  ;;  %v9202_v48 = vld [vmem:[%s9794_s27 + $0x6ec] ss:$48 sps:$4 sm:$0xff]   ;;  %v9197_v7 = vld [vmem:[%s9794_s27 + $0xe8] ss:$48 sps:$4 sm:$0xff]  }
 0x3c2   : > { %6812 = vmatprep.subr.bf16.mxu1 %v9148_v11  ;;  %v9200_v11 = vld [vmem:[%s9794_s27 + $0x6e8] ss:$48 sps:$4 sm:$0xff]  }
 0x3c4   : > { %6772 = vmatpush2.bf16.msra.mxu0 %v9143_v14  ;;  %v9205_v14 = vld [vmem:[%s9794_s27 + $0x8c] ss:$48 sps:$4 sm:$0xff]  }
 0x3c5   : > { %6813 = vmatpush2.bf16.msra.mxu1 %v9146_v17  ;;  %6773 = vmatprep.subr.bf16.mxu0 %v9151_v18  ;;  %v9208_v17 = vld [vmem:[%s9794_s27 + $0x68c] ss:$48 sps:$4 sm:$0xff]   ;;  %v9203_v18 = vld [vmem:[%s9794_s27 + $0x88] ss:$48 sps:$4 sm:$0xff]  }
 0x3c6   : > { %6814 = vmatprep.subr.bf16.mxu1 %v9154_v19  ;;  %v9206_v19 = vld [vmem:[%s9794_s27 + $0x688] ss:$48 sps:$4 sm:$0xff]  }
 0x3c8   : > { %6774 = vmatpush2.bf16.msra.mxu0 %v9149_v37  ;;  %v9211_v37 = vld [vmem:[%s9794_s27 + $0x2c] ss:$48 sps:$4 sm:$0xff]  }
 0x3c9   : > { %6815 = vmatpush2.bf16.msra.mxu1 %v9152_v29  ;;  %6775 = vmatprep.subr.bf16.mxu0 %v9157_v56  ;;  %v9214_v29 = vld [vmem:[%s9794_s27 + $0x62c] ss:$48 sps:$4 sm:$0xff]   ;;  %v9209_v56 = vld [vmem:[%s9794_s27 + $0x28] ss:$48 sps:$4 sm:$0xff]  }
 0x3ca   : > { %6816 = vmatprep.subr.bf16.mxu1 %v9160_v59  ;;  %v9212_v59 = vld [vmem:[%s9794_s27 + $0x628] ss:$48 sps:$4 sm:$0xff]  }
 0x3cc   : > { %6776 = vmatpush2.bf16.msra.mxu0 %v9155_v42  ;;  %v9217_v42 = vld [vmem:[%s9794_s27 + $0x5cc] ss:$48 sps:$4 sm:$0xff]  }
 0x3cd   : > { %6817 = vmatpush2.bf16.msra.mxu1 %v9158_v6  ;;  %6777 = vmatprep.subr.bf16.mxu0 %v9163_v33  ;;  %v9220_v6 = vld [vmem:[%s9794_s27 + $0xbcc] ss:$48 sps:$4 sm:$0xff]   ;;  %v9215_v33 = vld [vmem:[%s9794_s27 + $0x5c8] ss:$48 sps:$4 sm:$0xff]  }
 0x3ce   : > { %6818 = vmatprep.subr.bf16.mxu1 %v9166_v34  ;;  %v9218_v34 = vld [vmem:[%s9794_s27 + $0xbc8] ss:$48 sps:$4 sm:$0xff]  }
 0x3d0   : > { %6778 = vmatpush2.bf16.msra.mxu0 %v9161_v39  ;;  %v9223_v39 = vld [vmem:[%s9794_s27 + $0x56c] ss:$48 sps:$4 sm:$0xff]  }
 0x3d1   : > { %6819 = vmatpush2.bf16.msra.mxu1 %v9164_v35  ;;  %6829 = vmatprep.subr.bf16.mxu0 %v9169_v36  ;;  %v9226_v35 = vld [vmem:[%s9794_s27 + $0xb6c] ss:$48 sps:$4 sm:$0xff]   ;;  %v9221_v36 = vld [vmem:[%s9794_s27 + $0x568] ss:$48 sps:$4 sm:$0xff]  }
 0x3d2   : > { %6870 = vmatprep.subr.bf16.mxu1 %v9172_v3  ;;  %v9224_v3 = vld [vmem:[%s9794_s27 + $0xb68] ss:$48 sps:$4 sm:$0xff]  }
 0x3d3   : > { %v10632_v43 = vpop.f32.mrf.mxu0  ;;  %6780 = vmatmul.mubr.bf16.vlgmr.msra.gmra.mxu0 %v10011_v30 }
 0x3d4   : > { %v10636_v53 = vpop.f32.mrf.mxu1  ;;  %6821 = vmatmul.mubr.bf16.vlgmr.msra.gmra.mxu1 %v10006_v26  ;;  %6830 = vmatpush1.bf16.msra.mxu0 %v9167_v38  ;;  %v9229_v38 = vld [vmem:[%s9794_s27 + $0x50c] ss:$48 sps:$4 sm:$0xff]  }
 0x3d5   : > { %6861 = vmatprep.mubr.bf16.mxu0 %v9917_v47  ;;  %6871 = vmatpush1.bf16.msra.mxu1 %v9170_v40  ;;  %v10641_v54 = vpop.f32.mrf.mxu0  ;;  %v9179_v47 = vld [vmem:[%s9794_s27 + $0x208] ss:$48 sps:$4 sm:$0xff]   ;;  %v9232_v40 = vld [vmem:[%s9794_s27 + $0xb0c] ss:$48 sps:$4 sm:$0xff]  }
 0x3d6   : > { %6902 = vmatprep.mubr.bf16.mxu1 %v9921_v50  ;;  %v10646_v61 = vpop.f32.mrf.mxu1  ;;  %6831 = vmatprep.subr.bf16.mxu0 %v9175_v41  ;;  %v9187_v50 = vld [vmem:[%s9794_s27 + $0x1ac] ss:$48 sps:$4 sm:$0xff]   ;;  %v9227_v41 = vld [vmem:[%s9794_s27 + $0x508] ss:$48 sps:$4 sm:$0xff]  }
 0x3d7   : > { %v6539_v63 = vpop.f32.mrf.mxu0  ;;  %6872 = vmatprep.subr.bf16.mxu1 %v9178_v51  ;;  %v9230_v51 = vld [vmem:[%s9794_s27 + $0xb08] ss:$48 sps:$4 sm:$0xff]  }
 0x3d8   : > { %v6580_v0 = vpop.f32.mrf.mxu1  ;;  %6832 = vmatpush1.bf16.msra.mxu0 %v9173_v55  ;;  %v9235_v55 = vld [vmem:[%s9794_s27 + $0x4ac] ss:$48 sps:$4 sm:$0xff]  }
 0x3d9   : > { %6873 = vmatpush1.bf16.msra.mxu1 %v9176_v57  ;;  %v6540_v1 = vpop.f32.mrf.mxu0  ;;  %6833 = vmatprep.subr.bf16.mxu0 %v9181_v60  ;;  %v9238_v57 = vld [vmem:[%s9794_s27 + $0xaac] ss:$48 sps:$4 sm:$0xff]   ;;  %v9233_v60 = vld [vmem:[%s9794_s27 + $0x4a8] ss:$48 sps:$4 sm:$0xff]  }
 0x3da   : > { %v6581_v4 = vpop.f32.mrf.mxu1  ;;  %6874 = vmatprep.subr.bf16.mxu1 %v9184_v62  ;;  %v9236_v62 = vld [vmem:[%s9794_s27 + $0xaa8] ss:$48 sps:$4 sm:$0xff]   ;;  %v9241_v63 = vld [vmem:[%s9794_s27 + $0x44c] ss:$48 sps:$4 sm:$0xff]  }
 0x3db   : > { %v9244_v0 = vld [vmem:[%s9794_s27 + $0xa4c] ss:$48 sps:$4 sm:$0xff]   ;;  %v9242_v1 = vld [vmem:[%s9794_s27 + $0xa48] ss:$48 sps:$4 sm:$0xff]  }
 0x3dc   : > { %6834 = vmatpush1.bf16.msra.mxu0 %v9179_v47  ;;  %v9239_v47 = vld [vmem:[%s9794_s27 + $0x448] ss:$48 sps:$4 sm:$0xff]  }
 0x3dd   : > { %6875 = vmatpush1.bf16.msra.mxu1 %v9182_v2  ;;  %6835 = vmatprep.subr.bf16.mxu0 %v9187_v50  ;;  %v9247_v2 = vld [vmem:[%s9794_s27 + $0x3ec] ss:$48 sps:$4 sm:$0xff]   ;;  %v9245_v4 = vld [vmem:[%s9794_s27 + $0x3e8] ss:$48 sps:$4 sm:$0xff]  }
 0x3de   : > { %6876 = vmatprep.subr.bf16.mxu1 %v9190_v5  ;;  %v9250_v50 = vld [vmem:[%s9794_s27 + $0x9ec] ss:$48 sps:$4 sm:$0xff]   ;;  %v9248_v5 = vld [vmem:[%s9794_s27 + $0x9e8] ss:$48 sps:$4 sm:$0xff]  }
 0x3e0   : > { %6836 = vmatpush1.bf16.msra.mxu0 %v9185_v8  ;;  %v9253_v8 = vld [vmem:[%s9794_s27 + $0x38c] ss:$48 sps:$4 sm:$0xff]  }
 0x3e1   : > { %6877 = vmatpush1.bf16.msra.mxu1 %v9188_v9  ;;  %6837 = vmatprep.subr.bf16.mxu0 %v9193_v28  ;;  %v9256_v9 = vld [vmem:[%s9794_s27 + $0x98c] ss:$48 sps:$4 sm:$0xff]   ;;  %v9251_v28 = vld [vmem:[%s9794_s27 + $0x388] ss:$48 sps:$4 sm:$0xff]  }
 0x3e2   : > { %6878 = vmatprep.subr.bf16.mxu1 %v9196_v10  ;;  %v9254_v10 = vld [vmem:[%s9794_s27 + $0x988] ss:$48 sps:$4 sm:$0xff]  }
 0x3e4   : > { %6838 = vmatpush1.bf16.msra.mxu0 %v9191_v20  ;;  %v9259_v20 = vld [vmem:[%s9794_s27 + $0x32c] ss:$48 sps:$4 sm:$0xff]  }
 0x3e5   : > { %6879 = vmatpush1.bf16.msra.mxu1 %v9194_v12  ;;  %6839 = vmatprep.subr.bf16.mxu0 %v9199_v13  ;;  %v2136_v12 = vrot.slane %v10473_v15, %v478_v44  ;;  %v9262_v13 = vld [vmem:[%s9794_s27 + $0x92c] ss:$48 sps:$4 sm:$0xff]  }
 0x3e6   : > { %6880 = vmatprep.subr.bf16.mxu1 %v9202_v48  ;;  %v2140_v48 = vrot.slane %v10473_v15, %v482_v52  ;;  %v9266_v52 = vld [vmem:[%s9794_s27 + $0x14c8] ss:$48 sps:$4 sm:$0xff]  }
 0x3e8   : > { %6840 = vmatpush1.bf16.msra.mxu0 %v9197_v7  ;;  %v9257_v7 = vld [vmem:[%s9794_s27 + $0x328] ss:$48 sps:$4 sm:$0xff]   ;;  %v6538_v44 = vadd.f32 %v10641_v54, %v2140_v48 }
 0x3e9   : > { %6881 = vmatpush1.bf16.msra.mxu1 %v9200_v11  ;;  %6841 = vmatprep.subr.bf16.mxu0 %v9205_v14  ;;  %v9260_v11 = vld [vmem:[%s9794_s27 + $0x928] ss:$48 sps:$4 sm:$0xff]   ;;  %v9265_v14 = vld [vmem:[%s9794_s27 + $0xecc] ss:$48 sps:$4 sm:$0xff]  }
 0x3ea   : > { %6882 = vmatprep.subr.bf16.mxu1 %v9208_v17  ;;  %v6536_v17 = vadd.f32 %v10632_v43, %v2136_v12  ;;  %v9274_v43 = vld [vmem:[%s9794_s27 + $0x146c] ss:$48 sps:$4 sm:$0xff]   ;;  %v9311_v48 = vld [vmem:[%s9794_s27 + $0x11c8] ss:$48 sps:$4 sm:$0xff]  }
 0x3eb   : > { %v9313_v12 = vld [vmem:[%s9794_s27 + $0x11cc] ss:$48 sps:$4 sm:$0xff]  }
 0x3ec   : > { %6842 = vmatpush1.bf16.msra.mxu0 %v9203_v18  ;;  %v9268_v18 = vld [vmem:[%s9794_s27 + $0x14cc] ss:$48 sps:$4 sm:$0xff]   ;;  %v6577_v15 = vadd.f32 %v10636_v53, %v6536_v17  ;;  %v9317_v17 = vld [vmem:[%s9794_s27 + $0x1168] ss:$48 sps:$4 sm:$0xff]  }
 0x3ed   : > { %6883 = vmatpush1.bf16.msra.mxu1 %v9206_v19  ;;  %6843 = vmatprep.subr.bf16.mxu0 %v9211_v37  ;;  %v9271_v19 = vld [vmem:[%s9794_s27 + $0xe6c] ss:$48 sps:$4 sm:$0xff]  }
 0x3ee   : > { %6884 = vmatprep.subr.bf16.mxu1 %v9214_v29  ;;  %v6579_v29 = vadd.f32 %v10646_v61, %v6538_v44  ;;  %v9280_v61 = vld [vmem:[%s9794_s27 + $0x140c] ss:$48 sps:$4 sm:$0xff]  }
 0x3ef   : > { %v9325_v44 = vld [vmem:[%s9794_s27 + $0x110c] ss:$48 sps:$4 sm:$0xff]  }
 0x3f0   : > { %6844 = vmatpush1.bf16.msra.mxu0 %v9209_v56 }
 0x3f1   : > { %6885 = vmatpush1.bf16.msra.mxu1 %v9212_v59  ;;  %6845 = vmatprep.subr.bf16.mxu0 %v9217_v42  ;;  %v9269_v59 = vld [vmem:[%s9794_s27 + $0xe68] ss:$48 sps:$4 sm:$0xff]  }
 0x3f2   : > { %6886 = vmatprep.subr.bf16.mxu1 %v9220_v6  ;;  %v9272_v42 = vld [vmem:[%s9794_s27 + $0x1468] ss:$48 sps:$4 sm:$0xff]   ;;  %v9277_v6 = vld [vmem:[%s9794_s27 + $0xe0c] ss:$48 sps:$4 sm:$0xff]  }
 0x3f4   : > { %6846 = vmatpush2.bf16.msra.mxu0 %v9215_v33 }
 0x3f5   : > { %6887 = vmatpush2.bf16.msra.mxu1 %v9218_v34  ;;  %6847 = vmatprep.subr.bf16.mxu0 %v9223_v39 }
 0x3f6   : > { %6888 = vmatprep.subr.bf16.mxu1 %v9226_v35  ;;  %v9275_v35 = vld [vmem:[%s9794_s27 + $0xe08] ss:$48 sps:$4 sm:$0xff]  }
 0x3f8   : > { %6848 = vmatpush2.bf16.msra.mxu0 %v9221_v36 }
 0x3f9   : > { %6889 = vmatpush2.bf16.msra.mxu1 %v9224_v3  ;;  %6849 = vmatprep.subr.bf16.mxu0 %v9229_v38  ;;  %v9283_v3 = vld [vmem:[%s9794_s27 + $0xdac] ss:$48 sps:$4 sm:$0xff]  }
 0x3fa   : > { %6890 = vmatprep.subr.bf16.mxu1 %v9232_v40 }
 0x3fc   : > { %6850 = vmatpush2.bf16.msra.mxu0 %v9227_v41  ;;  %v9286_v41 = vld [vmem:[%s9794_s27 + $0x13ac] ss:$48 sps:$4 sm:$0xff]  }
 0x3fd   : > { %6891 = vmatpush2.bf16.msra.mxu1 %v9230_v51  ;;  %6851 = vmatprep.subr.bf16.mxu0 %v9235_v55  ;;  %v7030_v51 = vrot.slane %v7022_v22, %v10405_v58  ;;  %v9295_v22 = vld [vmem:[%s9794_s27 + $0xcec] ss:$48 sps:$4 sm:$0xff]  }
 0x3fe   : > { %6892 = vmatprep.subr.bf16.mxu1 %v9238_v57  ;;  %v9281_v57 = vld [vmem:[%s9794_s27 + $0xda8] ss:$48 sps:$4 sm:$0xff]  }
 0x400   : > { %6852 = vmatpush2.bf16.msra.mxu0 %v9233_v60  ;;  %v9284_v60 = vld [vmem:[%s9794_s27 + $0x13a8] ss:$48 sps:$4 sm:$0xff]  }
 0x401   : > { %6893 = vmatpush2.bf16.msra.mxu1 %v9236_v62  ;;  %6853 = vmatprep.subr.bf16.mxu0 %v9241_v63  ;;  %v9289_v62 = vld [vmem:[%s9794_s27 + $0xd4c] ss:$48 sps:$4 sm:$0xff]  }
 0x402   : > { %6894 = vmatprep.subr.bf16.mxu1 %v9244_v0  ;;  %v9292_v0 = vld [vmem:[%s9794_s27 + $0x134c] ss:$48 sps:$4 sm:$0xff]  }
 0x404   : > { %6854 = vmatpush2.bf16.msra.mxu0 %v9239_v47  ;;  %v9298_v47 = vld [vmem:[%s9794_s27 + $0x12ec] ss:$48 sps:$4 sm:$0xff]  }
 0x405   : > { %6895 = vmatpush2.bf16.msra.mxu1 %v9242_v1  ;;  %6855 = vmatprep.subr.bf16.mxu0 %v9247_v2  ;;  %v9293_v1 = vld [vmem:[%s9794_s27 + $0xce8] ss:$48 sps:$4 sm:$0xff]  }
 0x406   : > { %6896 = vmatprep.subr.bf16.mxu1 %v9250_v50  ;;  %v9296_v2 = vld [vmem:[%s9794_s27 + $0x12e8] ss:$48 sps:$4 sm:$0xff]   ;;  %v9301_v50 = vld [vmem:[%s9794_s27 + $0xc8c] ss:$48 sps:$4 sm:$0xff]  }
 0x408   : > { %6856 = vmatpush2.bf16.msra.mxu0 %v9245_v4  ;;  %v9304_v4 = vld [vmem:[%s9794_s27 + $0x128c] ss:$48 sps:$4 sm:$0xff]  }
 0x409   : > { %6897 = vmatpush2.bf16.msra.mxu1 %v9248_v5  ;;  %6857 = vmatprep.subr.bf16.mxu0 %v9253_v8  ;;  %v9299_v5 = vld [vmem:[%s9794_s27 + $0xc88] ss:$48 sps:$4 sm:$0xff]  }
 0x40a   : > { %6898 = vmatprep.subr.bf16.mxu1 %v9256_v9  ;;  %v9302_v8 = vld [vmem:[%s9794_s27 + $0x1288] ss:$48 sps:$4 sm:$0xff]   ;;  %v9307_v9 = vld [vmem:[%s9794_s27 + $0xc2c] ss:$48 sps:$4 sm:$0xff]  }
 0x40c   : > { %6858 = vmatpush2.bf16.msra.mxu0 %v9251_v28  ;;  %v9310_v28 = vld [vmem:[%s9794_s27 + $0x122c] ss:$48 sps:$4 sm:$0xff]  }
 0x40d   : > { %6899 = vmatpush2.bf16.msra.mxu1 %v9254_v10  ;;  %6859 = vmatprep.subr.bf16.mxu0 %v9259_v20  ;;  %v9305_v10 = vld [vmem:[%s9794_s27 + $0xc28] ss:$48 sps:$4 sm:$0xff]  }
 0x40e   : > { %6900 = vmatprep.subr.bf16.mxu1 %v9262_v13  ;;  %v9308_v20 = vld [vmem:[%s9794_s27 + $0x1228] ss:$48 sps:$4 sm:$0xff]   ;;  %v9316_v13 = vld [vmem:[%s9794_s27 + $0x17cc] ss:$48 sps:$4 sm:$0xff]  }
 0x410   : > { %6860 = vmatpush2.bf16.msra.mxu0 %v9257_v7  ;;  %v9314_v7 = vld [vmem:[%s9794_s27 + $0x17c8] ss:$48 sps:$4 sm:$0xff]  }
 0x411   : > { %6901 = vmatpush2.bf16.msra.mxu1 %v9260_v11  ;;  %6911 = vmatprep.subr.bf16.mxu0 %v9265_v14  ;;  %v9319_v11 = vld [vmem:[%s9794_s27 + $0x116c] ss:$48 sps:$4 sm:$0xff]  }
 0x412   : > { %6952 = vmatprep.subr.bf16.mxu1 %v9268_v18  ;;  %v9322_v14 = vld [vmem:[%s9794_s27 + $0x176c] ss:$48 sps:$4 sm:$0xff]   ;;  %v9320_v18 = vld [vmem:[%s9794_s27 + $0x1768] ss:$48 sps:$4 sm:$0xff]  }
 0x413   : > { %v6617_v37 = vpop.f32.mrf.mxu0  ;;  %6862 = vmatmul.mubr.bf16.vlgmr.msra.gmra.mxu0 %v9919_v49 }
 0x414   : > { %v6618_v54 = vadd.f32 %v6617_v37, %v6577_v15  ;;  %v6658_v56 = vpop.f32.mrf.mxu1  ;;  %6903 = vmatmul.mubr.bf16.vlgmr.msra.gmra.mxu1 %v9915_v45  ;;  %6912 = vmatpush1.bf16.msra.mxu0 %v9263_v46  ;;  %v9328_v46 = vld [vmem:[%s9794_s27 + $0x170c] ss:$48 sps:$4 sm:$0xff]   ;;  %v9326_v15 = vld [vmem:[%s9794_s27 + $0x1708] ss:$48 sps:$4 sm:$0xff]  }
 0x415   : > { %6943 = vmatprep.mubr.bf16.mxu0 %v10008_v27  ;;  %6953 = vmatpush1.bf16.msra.mxu1 %v9266_v52  ;;  %v6619_v53 = vpop.f32.mrf.mxu0  ;;  %v9323_v52 = vld [vmem:[%s9794_s27 + $0x1108] ss:$48 sps:$4 sm:$0xff]   ;;  %v9334_v37 = vld [vmem:[%s9794_s27 + $0x16ac] ss:$48 sps:$4 sm:$0xff]  }
 0x416   : > { %6984 = vmatprep.mubr.bf16.mxu1 %v10013_v31  ;;  %v6620_v49 = vadd.f32 %v6619_v53, %v6579_v29  ;;  %v6660_v33 = vpop.f32.mrf.mxu1  ;;  %6913 = vmatprep.subr.bf16.mxu0 %v9271_v19  ;;  %v6659_v45 = vadd.f32 %v6658_v56, %v6618_v54  ;;  %v9278_v31 = vld [vmem:[%s9794_s27 + $0x1408] ss:$48 sps:$4 sm:$0xff]   ;;  %v9331_v19 = vld [vmem:[%s9794_s27 + $0x10ac] ss:$48 sps:$4 sm:$0xff]  }
 0x417   : > { %v6621_v34 = vpop.f32.mrf.mxu0  ;;  %6954 = vmatprep.subr.bf16.mxu1 %v9274_v43  ;;  %v9329_v43 = vld [vmem:[%s9794_s27 + $0x10a8] ss:$48 sps:$4 sm:$0xff]   ;;  %v9337_v54 = vld [vmem:[%s9794_s27 + $0x104c] ss:$48 sps:$4 sm:$0xff]  }
 0x418   : > { %v6661_v39 = vadd.f32 %v6660_v33, %v6620_v49  ;;  %v6662_v27 = vpop.f32.mrf.mxu1  ;;  %6914 = vmatpush1.bf16.msra.mxu0 %v9269_v59  ;;  %v9332_v29 = vld [vmem:[%s9794_s27 + $0x16a8] ss:$48 sps:$4 sm:$0xff]   ;;  %v9340_v56 = vld [vmem:[%s9794_s27 + $0x164c] ss:$48 sps:$4 sm:$0xff]  }
 0x419   : > { %6955 = vmatpush1.bf16.msra.mxu1 %v9272_v42  ;;  %v6622_v36 = vpop.f32.mrf.mxu0  ;;  %6915 = vmatprep.subr.bf16.mxu0 %v9277_v6  ;;  %v9335_v59 = vld [vmem:[%s9794_s27 + $0x1048] ss:$48 sps:$4 sm:$0xff]   ;;  %v9343_v42 = vld [vmem:[%s9794_s27 + $0xfec] ss:$48 sps:$4 sm:$0xff]  }
 0x41a   : > { %v7023_v38 = vcombine.low %v6659_v45, %v6661_v39  ;;  %v6663_v40 = vpop.f32.mrf.mxu1  ;;  %6956 = vmatprep.subr.bf16.mxu1 %v9280_v61  ;;  %v9338_v53 = vld [vmem:[%s9794_s27 + $0x1648] ss:$48 sps:$4 sm:$0xff]   ;;  %v9346_v6 = vld [vmem:[%s9794_s27 + $0x15ec] ss:$48 sps:$4 sm:$0xff]  }
 0x41b   : > { %v9341_v49 = vld [vmem:[%s9794_s27 + $0xfe8] ss:$48 sps:$4 sm:$0xff]   ;;  %v9349_v61 = vld [vmem:[%s9794_s27 + $0xf8c] ss:$48 sps:$4 sm:$0xff]  }
 0x41c   : > { %v7037_v55 = vrot.slane %v7023_v38, %v10405_v58  ;;  %6916 = vmatpush1.bf16.msra.mxu0 %v9275_v35  ;;  %v9344_v33 = vld [vmem:[%s9794_s27 + $0x15e8] ss:$48 sps:$4 sm:$0xff]   ;;  %v9352_v34 = vld [vmem:[%s9794_s27 + $0x158c] ss:$48 sps:$4 sm:$0xff]  }
 0x41d   : > { %6957 = vmatpush1.bf16.msra.mxu1 %v9278_v31  ;;  %6917 = vmatprep.subr.bf16.mxu0 %v9283_v3  ;;  %v9347_v45 = vld [vmem:[%s9794_s27 + $0xf88] ss:$48 sps:$4 sm:$0xff]   ;;  %v9355_v27 = vld [vmem:[%s9794_s27 + $0xf2c] ss:$48 sps:$4 sm:$0xff]  }
 0x41e   : > { %v7038_v63 = vcombine.low %v7030_v51, %v7037_v55  ;;  %6958 = vmatprep.subr.bf16.mxu1 %v9286_v41  ;;  %v9350_v39 = vld [vmem:[%s9794_s27 + $0x1588] ss:$48 sps:$4 sm:$0xff]   ;;  %v9358_v35 = vld [vmem:[%s9794_s27 + $0x152c] ss:$48 sps:$4 sm:$0xff]  }
 0x41f   : > { %v9353_v36 = vld [vmem:[%s9794_s27 + $0xf28] ss:$48 sps:$4 sm:$0xff]  }
 0x420   : > { %7060 = vst [vmem:[%s10421_s10 + $0x8] sm:$0xff] %v7038_v63  ;;  %6918 = vmatpush1.bf16.msra.mxu0 %v9281_v57  ;;  %v9356_v31 = vld [vmem:[%s9794_s27 + $0x1528] ss:$48 sps:$4 sm:$0xff]  }
 0x421   : > { %6959 = vmatpush1.bf16.msra.mxu1 %v9284_v60  ;;  %6919 = vmatprep.subr.bf16.mxu0 %v9289_v62  ;;  %v2106_v3 = vld [vmem:[%s10150_s9 + $0x8] sm:$0xf] }
 0x422   : > { %6960 = vmatprep.subr.bf16.mxu1 %v9292_v0  ;;  %v2144_v38 = vrot.slane %v2106_v3, %v9893_v21  ;;  %v2148_v40 = vrot.slane %v2106_v3, %v9899_v24 }
 0x424   : > { %6920 = vmatpush1.bf16.msra.mxu0 %v9287_v32 }
 0x425   : > { %6961 = vmatpush1.bf16.msra.mxu1 %v9290_v16  ;;  %6921 = vmatprep.subr.bf16.mxu0 %v9295_v22 }
 0x426   : > { %6962 = vmatprep.subr.bf16.mxu1 %v9298_v47 }
 0x428   : > { %6922 = vmatpush1.bf16.msra.mxu0 %v9293_v1 }
 0x429   : > { %6963 = vmatpush1.bf16.msra.mxu1 %v9296_v2  ;;  %6923 = vmatprep.subr.bf16.mxu0 %v9301_v50 }
 0x42a   : > { %6964 = vmatprep.subr.bf16.mxu1 %v9304_v4 }
 0x42c   : > { %6924 = vmatpush1.bf16.msra.mxu0 %v9299_v5 }
 0x42d   : > { %6965 = vmatpush1.bf16.msra.mxu1 %v9302_v8  ;;  %6925 = vmatprep.subr.bf16.mxu0 %v9307_v9 }
 0x42e   : > { %6966 = vmatprep.subr.bf16.mxu1 %v9310_v28 }
 0x430   : > { %6926 = vmatpush1.bf16.msra.mxu0 %v9305_v10 }
 0x431   : > { %6967 = vmatpush1.bf16.msra.mxu1 %v9308_v20  ;;  %6927 = vmatprep.subr.bf16.mxu0 %v9313_v12 }
 0x432   : > { %6968 = vmatprep.subr.bf16.mxu1 %v9316_v13 }
 0x434   : > { %6928 = vmatpush2.bf16.msra.mxu0 %v9311_v48 }
 0x435   : > { %6969 = vmatpush2.bf16.msra.mxu1 %v9314_v7  ;;  %6929 = vmatprep.subr.bf16.mxu0 %v9319_v11 }
 0x436   : > { %6970 = vmatprep.subr.bf16.mxu1 %v9322_v14 }
 0x438   : > { %6930 = vmatpush2.bf16.msra.mxu0 %v9317_v17 }
 0x439   : > { %6971 = vmatpush2.bf16.msra.mxu1 %v9320_v18  ;;  %6931 = vmatprep.subr.bf16.mxu0 %v9325_v44  ;;  %v2152_v18 = vrot.slane %v2106_v3, %v9896_v23  ;;  %v2156_v44 = vrot.slane %v2106_v3, %v9902_v25 }
 0x43a   : > { %6972 = vmatprep.subr.bf16.mxu1 %v9328_v46 }
 0x43c   : > { %6932 = vmatpush2.bf16.msra.mxu0 %v9323_v52 }
 0x43d   : > { %6973 = vmatpush2.bf16.msra.mxu1 %v9326_v15  ;;  %6933 = vmatprep.subr.bf16.mxu0 %v9331_v19 }
 0x43e   : > { %6974 = vmatprep.subr.bf16.mxu1 %v9334_v37 }
 0x440   : > { %6934 = vmatpush2.bf16.msra.mxu0 %v9329_v43 }
 0x441   : > { %6975 = vmatpush2.bf16.msra.mxu1 %v9332_v29  ;;  %6935 = vmatprep.subr.bf16.mxu0 %v9337_v54 }
 0x442   : > { %6976 = vmatprep.subr.bf16.mxu1 %v9340_v56 }
 0x444   : > { %6936 = vmatpush2.bf16.msra.mxu0 %v9335_v59 }
 0x445   : > { %6977 = vmatpush2.bf16.msra.mxu1 %v9338_v53  ;;  %6937 = vmatprep.subr.bf16.mxu0 %v9343_v42 }
 0x446   : > { %6978 = vmatprep.subr.bf16.mxu1 %v9346_v6 }
 0x448   : > { %6938 = vmatpush2.bf16.msra.mxu0 %v9341_v49 }
 0x449   : > { %6979 = vmatpush2.bf16.msra.mxu1 %v9344_v33  ;;  %6939 = vmatprep.subr.bf16.mxu0 %v9349_v61 }
 0x44a   : > { %6980 = vmatprep.subr.bf16.mxu1 %v9352_v34 }
 0x44c   : > { %6940 = vmatpush2.bf16.msra.mxu0 %v9347_v45 }
 0x44d   : > { %6981 = vmatpush2.bf16.msra.mxu1 %v9350_v39  ;;  %6941 = vmatprep.subr.bf16.mxu0 %v9355_v27 }
 0x44e   : > { %6982 = vmatprep.subr.bf16.mxu1 %v9358_v35 }
 0x450   : > { %6942 = vmatpush2.bf16.msra.mxu0 %v9353_v36 }
 0x451   : > { %6983 = vmatpush2.bf16.msra.mxu1 %v9356_v31 }
 0x453   : > { %v6699_v41 = vpop.f32.mrf.mxu0  ;;  %6944 = vmatmul.mubr.bf16.vlgmr.msra.gmra.mxu0 %v10011_v30 }
 0x454   : > { %v6700_v51 = vadd.f32 %v6699_v41, %v2144_v38  ;;  %v6740_v55 = vpop.f32.mrf.mxu1  ;;  %6985 = vmatmul.mubr.bf16.vlgmr.msra.gmra.mxu1 %v10006_v26 }
 0x455   : > { %v6701_v57 = vpop.f32.mrf.mxu0 }
 0x456   : > { %v6741_v60 = vadd.f32 %v6740_v55, %v6700_v51  ;;  %v6702_v62 = vadd.f32 %v6701_v57, %v2148_v40  ;;  %v6742_v63 = vpop.f32.mrf.mxu1 }
 0x457   : > { %v6703_v0 = vpop.f32.mrf.mxu0 }
 0x458   : > { %v6743_v32 = vadd.f32 %v6742_v63, %v6702_v62  ;;  %v6744_v16 = vpop.f32.mrf.mxu1 }
 0x459   : > { %v6704_v22 = vpop.f32.mrf.mxu0 }
 0x45a   : > { %v6745_v47 = vpop.f32.mrf.mxu1 }
 0x493   : > { %v6781_v21 = vpop.f32.mrf.mxu0 }
 0x494   : > { %v6782_v1 = vadd.f32 %v6781_v21, %v6741_v60  ;;  %v6822_v2 = vpop.f32.mrf.mxu1 }
 0x495   : > { %v6783_v24 = vpop.f32.mrf.mxu0 }
 0x496   : > { %v6823_v50 = vadd.f32 %v6822_v2, %v6782_v1  ;;  %v6784_v4 = vadd.f32 %v6783_v24, %v6743_v32  ;;  %v6824_v30 = vpop.f32.mrf.mxu1 }
 0x497   : > { %v6785_v5 = vpop.f32.mrf.mxu0 }
 0x498   : > { %v6825_v8 = vadd.f32 %v6824_v30, %v6784_v4  ;;  %v6826_v9 = vpop.f32.mrf.mxu1 }
 0x499   : > { %v6786_v26 = vpop.f32.mrf.mxu0 }
 0x49a   : > { %v7039_v28 = vcombine.low %v6823_v50, %v6825_v8  ;;  %v6827_v10 = vpop.f32.mrf.mxu1 }
 0x49c   : > { %v7047_v61 = vrot.slane %v7039_v28, %v10405_v58 }
 0x4d3   : > { %v6863_v20 = vpop.f32.mrf.mxu0 }
 0x4d4   : > { %v6904_v12 = vpop.f32.mrf.mxu1  ;;  %v6864_v46 = vadd.f32 %v6863_v20, %v2152_v18 }
 0x4d5   : > { %v6865_v13 = vpop.f32.mrf.mxu0 }
 0x4d6   : > { %v6906_v48 = vpop.f32.mrf.mxu1  ;;  %v6866_v52 = vadd.f32 %v6865_v13, %v2156_v44  ;;  %v6905_v15 = vadd.f32 %v6904_v12, %v6864_v46 }
 0x4d7   : > { %v6867_v7 = vpop.f32.mrf.mxu0 }
 0x4d8   : > { %v6908_v11 = vpop.f32.mrf.mxu1  ;;  %v6907_v37 = vadd.f32 %v6906_v48, %v6866_v52 }
 0x4d9   : > { %v6868_v14 = vpop.f32.mrf.mxu0 }
 0x4da   : > { %v6909_v17 = vpop.f32.mrf.mxu1 }
 0x513   : > { %v6945_v19 = vpop.f32.mrf.mxu0 }
 0x514   : > { %v6946_v43 = vadd.f32 %v6945_v19, %v6905_v15  ;;  %v6986_v29 = vpop.f32.mrf.mxu1 }
 0x515   : > { %v6947_v54 = vpop.f32.mrf.mxu0 }
 0x516   : > { %v6948_v56 = vadd.f32 %v6947_v54, %v6907_v37  ;;  %v6988_v59 = vpop.f32.mrf.mxu1  ;;  %v6987_v42 = vadd.f32 %v6986_v29, %v6946_v43 }
 0x517   : > { %v6949_v53 = vpop.f32.mrf.mxu0 }
 0x518   : > { %v6989_v6 = vadd.f32 %v6988_v59, %v6948_v56  ;;  %v6990_v23 = vpop.f32.mrf.mxu1 }
 0x519   : > { %v6950_v25 = vpop.f32.mrf.mxu0 }
 0x51a   : > { %v7040_v49 = vcombine.low %v6987_v42, %v6989_v6  ;;  %v6991_v33 = vpop.f32.mrf.mxu1 }
 0x51c   : > { %v7054_v34 = vrot.slane %v7040_v49, %v10405_v58 }
 0x51e   : > { %v7055_v45 = vcombine.low %v7047_v61, %v7054_v34 }
 0x520   : > { %7061 = vst [vmem:[%s10421_s10 + $0x10] sm:$0xff] %v7055_v45 }
 0x521   : > { %9507 = shalt.err (!%p9504_p12)
}
 0x522   : > { %s9508_s7 = scalar_lea.hbm %s7075_s26, 384  ;;  %s9512_s27 = scalar_lea.hbm %s10838_s5, 768 }
 0x523   : > { %p9509_p9 = scmp.ne.s32.totalorder %s7075_s26, %s9508_s7  ;;  %p9513_p1 = scmp.lt.s32.totalorder %s7075_s26, %s10838_s5 }
 0x524   : > { %p9514_p5 = scmp.lt.s32.totalorder %s9512_s27, %s9508_s7 }
 0x525   : > { %p9510_p2 = pnand %p9509_p9, %p10868_p3 }
 0x526   : > { %p9515_p6 = por %p9514_p5, %p9513_p1 }
 0x527   : > { %p9511_p10 = pneg %p9510_p2 }
 0x529   : > { %p9516_p11 = pnand %p9515_p6, %p9511_p10 }
 0x52b   : > { %9519 = shalt.err (!%p9516_p11)
}
 0x52c   : > { %8134 = dma.vmem_to_hbm [thread:$0]  (%p10868_p3), %s7078_s23, 384, %s7075_s26, %s7063_s8  }
 0x52d PF: > { %s7089_s28 = sand.u32 1, %s9554_s18   ;;  %p10869_p4 = scmp.ne.s32.totalorder %s10852_s6, 0 }
 0x52e   : > { %p10870_p13 = scmp.ge.s32.totalorder %s9566_s21, 2  ;;  %s7090_s10 = scalar_lea.sflag [#allocation4], %s7089_s28 }
 0x530   : > { %p8154_p0 = pnand %p10870_p13, %p10869_p4 }
 0x532   : > { %p8155_p8 = pneg %p8154_p0 }
 0x534   : > { %9549 = dma.done.wait (%p8155_p8), %s7090_s10, 384  }
 0x535   : > { %9551 = vsyncadd (%p8155_p8), %s7090_s10, 4294966912  ;;  %s10871_s15 = sld [smem:[#allocation16_spill]]  ;;  %p20_p7 = scmp.ge.s32.totalorder %s9636_s24, 4  }
 0x536   : > { %s10872_s18 = smov %s9558_s19  ;;  %s10873_s19 = smov %s9562_s20 }
 0x537   : > { %s10875_s21 = smov %s9636_s24  ;;  %22 = sbr.rel (!%p20_p7) target bundleno = 7 (0x7), region = 109 }
 0x53b   : > { %s10874_s20 = smov %s10871_s15 }
 0x53c   :  { %7095 = vsyncpa [#allocation3], 1 }
 0x53d   :  { %7097 = vsyncpa [#allocation3 + $0x1], 1 }
 0x53e   :  { %7098 = vsyncpa [#allocation6], 1 }
 0x53f   :  { %7099 = vsyncpa [#allocation9], 1 }
 0x540   :  { %7101 = vsyncpa [#allocation9 + $0x1], 1 }
 0x541   :  { %7102 = vsyncpa [#allocation4], 1 }
 0x542   :  { %7104 = vsyncpa [#allocation4 + $0x1], 1 }

</bundles_post_ra>
